<compile_context>
chip_gen: v7x
topology: tpu7x:2x2x1
jax: 0.10.0
libtpu: 0.0.40
codegen_flags: <defaults>
</compile_context>

<pallas_src>
import functools

import jax
import jax.numpy as jnp
from jax import lax
from jax.experimental import pallas as pl
from jax.experimental.pallas import tpu as pltpu

LARGE_NUM = 1.0e9


def _round_up(x, m):
    return ((x + m - 1) // m) * m


def _vmem_capacity_bytes():
    try:
        return int(pltpu.get_tpu_info().vmem_capacity_bytes)
    except Exception:
        return 64 << 20          # conservative fallback (v7x per-TensorCore)


def _ial_kernel(pad_ref, xs_ref, xt_ref, out_ref, *, B, Bp, tm, inversion,
                has_pad):
    """One grid step: link rows [i0, i0+tm) of the (padded) batch.

    pad_ref : (1, 2*Bp) f32 additive column mask (0 valid, -1e9 padded col).
    xs_ref / xt_ref : (2*Bp, Dp) bf16/f32, pre-scaled by sqrt(1/tau):
        rows [0, B)     = normalized *_zis rows,
        rows [Bp, Bp+B) = normalized *_zjs rows,
        remaining rows  = zero padding.
    Writes this block's partial loss_a / loss_b row-sums into lanes 0 / 1.
    """
    blk = pl.program_id(0)
    i0 = pl.multiple_of(blk * tm, tm)
    j0 = pl.multiple_of(i0 + Bp, tm)
    dn = (((1,), (1,)), ((), ()))        # contract the feature dim of both sides

    def gram(x_ref):
        # One merged (2*tm, Dp) @ (Dp, 2*Bp) MXU matmul per operand: top tm
        # rows = zis LHS slab, bottom tm rows = zjs LHS slab.  Operands are
        # already cast + tau-scaled in the wrapper (no per-step VPU work).
        lhs = jnp.concatenate(
            [x_ref[pl.ds(i0, tm), :], x_ref[pl.ds(j0, tm), :]], axis=0)
        return lax.dot_general(lhs, x_ref[...], dn,
                               preferred_element_type=jnp.float32)

    Gs = gram(xs_ref)                    # (2*tm, 2*Bp) f32
    Gt = gram(xt_ref)

    row_i = i0 + lax.broadcasted_iota(jnp.int32, (tm, 1), 0)   # global link id
    row_valid = row_i < B

    def kl_row_sum(pairs):
        # Joint softmax over the logically-concatenated column groups in
        # `pairs` (list of (P, Q) masked-logit slabs).  Uses the identity
        #   sum_q q*((Q-qlse)-(P-plse)) = sum_q q*(Q-P) + (plse - qlse)
        # (sum q == 1), reusing the LSE exponentials for softmax(Q); masked /
        # padded columns underflow to q == 0 exactly and contribute 0 (same as
        # torch's kl_div on the -1e9-masked logits).
        pm = pairs[0][0].max(axis=1, keepdims=True)
        qm = pairs[0][1].max(axis=1, keepdims=True)
        for P, Q in pairs[1:]:
            pm = jnp.maximum(pm, P.max(axis=1, keepdims=True))
            qm = jnp.maximum(qm, Q.max(axis=1, keepdims=True))
        sp = None
        sq = None
        e_qs = []
        for P, Q in pairs:
            sp_c = jnp.sum(jnp.exp(P - pm), axis=1, keepdims=True)
            e_q = jnp.exp(Q - qm)
            e_qs.append(e_q)
            sq_c = jnp.sum(e_q, axis=1, keepdims=True)
            sp = sp_c if sp is None else sp + sp_c
            sq = sq_c if sq is None else sq + sq_c
        plse = pm + jnp.log(sp)
        qlse = qm + jnp.log(sq)
        inv_sq = pl.reciprocal(sq)                 # exact; only tm values
        acc = None
        for (P, Q), e_q in zip(pairs, e_qs):
            c = jnp.sum((e_q * inv_sq) * (Q - P), axis=1, keepdims=True)
            acc = c if acc is None else acc + c
        per_row = acc + (plse - qlse)
        return jnp.sum(jnp.where(row_valid, per_row, 0.0))

    if not inversion:
        # Full masked Gram rows == column permutation of torch's
        # cat([sim, self_sim]); softmax/KL row sums are permutation invariant.
        col = lax.broadcasted_iota(jnp.int32, (tm, 2 * Bp), 1)
        base = pad_ref[...] if has_pad else jnp.float32(0.0)
        mask_a = jnp.where(col == row_i, -LARGE_NUM, base)          # zis.zis diag
        mask_b = jnp.where(col == (row_i + Bp), -LARGE_NUM, base)   # zjs.zjs diag
        la = kl_row_sum([(Gs[:tm] + mask_a, Gt[:tm] + mask_a)])
        lb = kl_row_sum([(Gs[tm:] + mask_b, Gt[tm:] + mask_b)])
    else:
        # inversion=True pairs rows from opposite halves; the two Bp-wide
        # halves share one joint LSE (no concat materialized).
        colh = lax.broadcasted_iota(jnp.int32, (tm, Bp), 1)
        base_h = pad_ref[...][:, :Bp] if has_pad else jnp.float32(0.0)
        m_diag = jnp.where(colh == row_i, -LARGE_NUM, base_h)
        s_aa, s_ab = Gs[:tm, :Bp], Gs[:tm, Bp:]       # zis rows x {zis, zjs} cols
        s_ba, s_bb = Gs[tm:, :Bp], Gs[tm:, Bp:]       # zjs rows x {zis, zjs} cols
        t_aa, t_ab = Gt[:tm, :Bp], Gt[:tm, Bp:]
        t_ba, t_bb = Gt[tm:, :Bp], Gt[tm:, Bp:]
        if has_pad:
            pair_ab = (s_ab + base_h, t_ab + base_h)
            pair_ba = (s_ba + base_h, t_ba + base_h)
        else:
            pair_ab = (s_ab, t_ab)
            pair_ba = (s_ba, t_ba)
        la = kl_row_sum([pair_ab, (s_bb + m_diag, t_bb + m_diag)])
        lb = kl_row_sum([pair_ba, (s_aa + m_diag, t_aa + m_diag)])

    lane = lax.broadcasted_iota(jnp.int32, (1, 128), 1)
    out_ref[0] = jnp.where(lane == 0, la, jnp.where(lane == 1, lb, 0.0))


def ial_loss_pallas(src_emb, tar_emb, train_links, *, tau=0.05, ab_weight=0.5,
                    zoom=0.1, inversion=False, reduction='mean', norm=True,
                    block_rows=None, use_bf16=True):
    """JAX/Pallas equivalent of ial_loss.forward (detach only affects grads)."""
    links = jnp.asarray(train_links, dtype=jnp.int32)
    B = int(links.shape[0])
    D = int(src_emb.shape[1])
    Bp = _round_up(max(B, 1), 128)    # lane-aligned halves; 2*Bp lane-dense
    Dp = _round_up(max(D, 1), 128)    # lane-dense features / MXU contraction
    has_pad = (B != Bp)
    op_dtype = jnp.bfloat16 if use_bf16 else jnp.float32
    itemsize = 2 if use_bf16 else 4

    # sqrt(1/tau) folded into BOTH operands so the Gram is exactly x.y / tau;
    # no per-step LHS scaling inside the kernel.
    scale = float(1.0 / tau) ** 0.5
    src_emb = src_emb.astype(jnp.float32)
    tar_emb = tar_emb.astype(jnp.float32)
    if norm:
        def prep(x):
            # F.normalize(dim=1, eps=1e-12) via rsqrt, fused with 1/sqrt(tau).
            ss = jnp.sum(x * x, axis=1, keepdims=True)
            return x * (lax.rsqrt(jnp.maximum(ss, 1e-24)) * scale)
    else:
        def prep(x):
            return x * scale
    src_emb = prep(src_emb)
    tar_emb = prep(tar_emb)

    idx_i = links[:, 0]
    idx_j = links[:, 1]

    def build(emb):
        # [zis rows (padded to Bp) ; zjs rows (padded to Bp)], feature dim
        # zero-padded; cast to the matmul dtype ONCE here (hoisted out of the
        # kernel). Zero rows/cols contribute nothing to the Gram.
        X = jnp.zeros((2 * Bp, Dp), jnp.float32)
        X = X.at[:B, :D].set(emb[idx_i])
        X = X.at[Bp:Bp + B, :D].set(emb[idx_j])
        return X.astype(op_dtype)

    Xs = build(src_emb)
    Xt = build(tar_emb)

    # Additive column-pad mask, precomputed once (constant index map).
    col = jnp.arange(2 * Bp, dtype=jnp.int32)[None, :]
    col_pad = ((col >= B) & (col < Bp)) | (col >= Bp + B)
    pad_mask = jnp.where(col_pad, jnp.float32(-LARGE_NUM), jnp.float32(0.0))

    # Generation-aware block-rows / VMEM plan (v5e/v6e: 128 MiB, v7x: 64 MiB).
    cap = _vmem_capacity_bytes()
    budget = int(cap * 0.85)            # headroom for Mosaic internal scratch
    resident = 2 * 2 * (2 * Bp) * Dp * itemsize + 2 * (2 * Bp) * 4
    overhead = 2 << 20

    def live_bytes(t):
        # Two merged (2*t, 2*Bp) f32 Gram slabs + masks / exp / softmax temps.
        return 24 * t * (2 * Bp) * 4

    row_align = 16 if use_bf16 else 8
    candidates = [c for c in (256, 128, 64, 32, 16)
                  if c <= Bp and Bp % c == 0 and c % row_align == 0]
    tm = None
    if block_rows is not None:
        br = int(block_rows)
        if br <= Bp and Bp % br == 0 and br % row_align == 0:
            tm = br
    if tm is None:
        for c in candidates:
            if resident + live_bytes(c) + overhead <= budget:
                tm = c
                break
        if tm is None:
            tm = candidates[-1] if candidates else Bp
    nblk = Bp // tm
    # TODO(synk): very large B*D on v7x (bf16 residents alone exceeding the
    # budget) would need a column-streaming inner pipeline with online-softmax;
    # not implemented here.

    kernel = functools.partial(_ial_kernel, B=B, Bp=Bp, tm=tm,
                               inversion=bool(inversion), has_pad=has_pad)
    out_shape = jax.ShapeDtypeStruct((nblk, 1, 128), jnp.float32)
    cparams = pltpu.CompilerParams(dimension_semantics=("parallel",),
                                   vmem_limit_bytes=budget)

    def make_in_specs(single_buffer):
        def const_spec(shape):
            kwargs = {}
            if single_buffer and hasattr(pl, "Buffered"):
                kwargs["pipeline_mode"] = pl.Buffered(1)
            try:
                return pl.BlockSpec(shape, lambda i: (0,) * len(shape), **kwargs)
            except TypeError:
                return pl.BlockSpec(shape, lambda i: (0,) * len(shape))
        return [const_spec((1, 2 * Bp)),
                const_spec((2 * Bp, Dp)),
                const_spec((2 * Bp, Dp))]

    def run(single_buffer):
        return pl.pallas_call(
            kernel,
            out_shape=out_shape,
            grid=(nblk,),
            in_specs=make_in_specs(single_buffer),
            out_specs=pl.BlockSpec((1, 1, 128), lambda i: (i, 0, 0)),
            compiler_params=cparams,
        )(pad_mask, Xs, Xt)

    try:
        # Constant index maps never use a second buffer; request single
        # buffering to halve resident-operand VMEM.
        out = run(single_buffer=True)
    except Exception:
        out = run(single_buffer=False)

    loss_a = jnp.sum(out[:, 0, 0])
    loss_b = jnp.sum(out[:, 0, 1])
    if reduction == 'mean':
        denom = jnp.float32(B * 2 * B)   # torch .mean() over the (B, 2B) matrix
        loss_a = loss_a / denom
        loss_b = loss_b / denom
    elif reduction == 'sum':
        pass
    else:
        # TODO(synk): reduction='none' returns the full (B, 2B) matrix; not
        # supported by this scalar-output kernel.
        raise NotImplementedError("reduction must be 'mean' or 'sum'")
    return zoom * (ab_weight * loss_a + (1.0 - ab_weight) * loss_b)


def _reference(src_emb, tar_emb, links, tau=0.05, alpha=0.5, zoom=0.1,
               inversion=False):
    """Pure-JAX mirror of the PyTorch forward (for correctness check)."""
    def l2n(x):
        return x / jnp.maximum(jnp.linalg.norm(x, axis=1, keepdims=True), 1e-12)

    s, t = l2n(src_emb), l2n(tar_emb)
    szi, szj = s[links[:, 0]], s[links[:, 1]]
    tzi, tzj = t[links[:, 0]], t[links[:, 1]]
    b = szi.shape[0]
    m = jnp.eye(b, dtype=jnp.float32) * LARGE_NUM
    p_ab = szi @ szj.T / tau
    p_ba = szj @ szi.T / tau
    q_ab = tzi @ tzj.T / tau
    q_ba = tzj @ tzi.T / tau
    p_aa = szi @ szi.T / tau - m
    p_bb = szj @ szj.T / tau - m
    q_aa = tzi @ tzi.T / tau - m
    q_bb = tzj @ tzj.T / tau - m
    if inversion:
        Pa = jnp.concatenate([p_ab, p_bb], 1); Pb = jnp.concatenate([p_ba, p_aa], 1)
        Qa = jnp.concatenate([q_ab, q_bb], 1); Qb = jnp.concatenate([q_ba, q_aa], 1)
    else:
        Pa = jnp.concatenate([p_ab, p_aa], 1); Pb = jnp.concatenate([p_ba, p_bb], 1)
        Qa = jnp.concatenate([q_ab, q_aa], 1); Qb = jnp.concatenate([q_ba, q_bb], 1)

    def kl(P, Q):
        logp = jax.nn.log_softmax(P, axis=1)
        logq = jax.nn.log_softmax(Q, axis=1)
        q = jnp.exp(logq)
        return jnp.mean(q * (logq - logp))

    return zoom * (alpha * kl(Pa, Qa) + (1 - alpha) * kl(Pb, Qb))


if __name__ == "__main__":
    key = jax.random.PRNGKey(0)
    k1, k2 = jax.random.split(key)
    N, D, B = 64, 32, 16  # entities, embedding dim, number of train links

    src_emb = jax.random.normal(k1, (N, D), dtype=jnp.float32)
    tar_emb = jax.random.normal(k2, (N, D), dtype=jnp.float32)

    # deterministic train_links (B, 2): index pairs into the N embeddings
    idx0 = jnp.arange(B, dtype=jnp.int32)
    idx1 = (jnp.arange(B, dtype=jnp.int32) * 3 + 5) % N
    train_links = jnp.stack([idx0, idx1], axis=1)

    ref = _reference(src_emb, tar_emb, train_links)
    ref_inv = _reference(src_emb, tar_emb, train_links, inversion=True)

    # f32-matmul path: tight tolerance vs the pure-JAX reference.
    # block_rows=32 -> 4 grid steps at this size (exercises the tiled path).
    loss_f32 = ial_loss_pallas(src_emb, tar_emb, train_links, block_rows=32,
                               use_bf16=False)
    jax.block_until_ready(loss_f32)
    assert bool(jnp.isfinite(loss_f32)), "non-finite loss (f32)"
    assert bool(jnp.allclose(loss_f32, ref, rtol=1e-3, atol=1e-5)), (loss_f32, ref)

    loss_f32_inv = ial_loss_pallas(src_emb, tar_emb, train_links, block_rows=32,
                                   use_bf16=False, inversion=True)
    jax.block_until_ready(loss_f32_inv)
    assert bool(jnp.isfinite(loss_f32_inv)), "non-finite loss (f32, inversion)"
    assert bool(jnp.allclose(loss_f32_inv, ref_inv, rtol=1e-3, atol=1e-5)), (
        loss_f32_inv, ref_inv)

    # bf16-matmul (default) path: looser tolerance (bf16 Gram logits).
    loss_bf16 = ial_loss_pallas(src_emb, tar_emb, train_links, block_rows=32)
    jax.block_until_ready(loss_bf16)
    assert bool(jnp.isfinite(loss_bf16)), "non-finite loss (bf16)"
    assert bool(jnp.allclose(loss_bf16, ref, rtol=1e-1, atol=1e-4)), (loss_bf16, ref)

    loss_bf16_inv = ial_loss_pallas(src_emb, tar_emb, train_links,
                                    inversion=True)
    jax.block_until_ready(loss_bf16_inv)
    assert bool(jnp.isfinite(loss_bf16_inv)), "non-finite loss (bf16, inversion)"
    assert bool(jnp.allclose(loss_bf16_inv, ref_inv, rtol=1e-1, atol=1e-4)), (
        loss_bf16_inv, ref_inv)

    print("KERNEL_OK")
</pallas_src>

<mosaic_0001>
module attributes {stable_mosaic.version = 11 : i64} {
  func.func @_ial_kernel(%arg0: i32, %arg1: memref<1x256xf32, #tpu.memory_space<vmem>>, %arg2: memref<256x128xf32, #tpu.memory_space<vmem>>, %arg3: memref<256x128xf32, #tpu.memory_space<vmem>>, %arg4: memref<1x1x128xf32, #tpu.memory_space<vmem>>) attributes {dimension_semantics = [#tpu.dimension_semantics<parallel>], iteration_bounds = array<i64: 4>, scalar_prefetch = 0 : i64, scratch_operands = 0 : i64, tpu.core_type = #tpu.core_type<tc>, window_params = [{pipeline_mode = #tpu.pipeline_mode<synchronous>, transform_indices = @transform_0, window_bounds = array<i64: 1, 256>}, {pipeline_mode = #tpu.pipeline_mode<synchronous>, transform_indices = @transform_1, window_bounds = array<i64: 256, 128>}, {pipeline_mode = #tpu.pipeline_mode<synchronous>, transform_indices = @transform_2, window_bounds = array<i64: 256, 128>}, {transform_indices = @transform_3, window_bounds = array<i64: 1, 1, 128>}]} {
    %c32_i32 = arith.constant 32 : i32
    %0 = arith.muli %arg0, %c32_i32 : i32
    %1 = tpu.assume_multiple %0, 32 : i32
    %c128_i32 = arith.constant 128 : i32
    %2 = arith.addi %1, %c128_i32 : i32
    %3 = tpu.assume_multiple %2, 32 : i32
    %4 = arith.index_cast %1 : i32 to index
    %c0 = arith.constant 0 : index
    %5 = vector.load %arg2[%4, %c0] : memref<256x128xf32, #tpu.memory_space<vmem>>, vector<32x128xf32>
    %6 = arith.index_cast %3 : i32 to index
    %c0_0 = arith.constant 0 : index
    %7 = vector.load %arg2[%6, %c0_0] : memref<256x128xf32, #tpu.memory_space<vmem>>, vector<32x128xf32>
    %8 = tpu.concatenate %5, %7 in 0 : vector<32x128xf32>, vector<32x128xf32> -> vector<64x128xf32>
    %c0_1 = arith.constant 0 : index
    %c0_2 = arith.constant 0 : index
    %9 = vector.load %arg2[%c0_1, %c0_2] : memref<256x128xf32, #tpu.memory_space<vmem>>, vector<256x128xf32>
    %cst = arith.constant dense<0.000000e+00> : vector<64x256xf32>
    %10 = tpu.matmul %8, %9, %cst {dimension_numbers = #tpu.dot_dimension_numbers<[1], [1], [0], [0], [0, 0, 1, 0], [], []>} : vector<64x128xf32>, vector<256x128xf32>, vector<64x256xf32> -> vector<64x256xf32>
    %11 = arith.index_cast %1 : i32 to index
    %c0_3 = arith.constant 0 : index
    %12 = vector.load %arg3[%11, %c0_3] : memref<256x128xf32, #tpu.memory_space<vmem>>, vector<32x128xf32>
    %13 = arith.index_cast %3 : i32 to index
    %c0_4 = arith.constant 0 : index
    %14 = vector.load %arg3[%13, %c0_4] : memref<256x128xf32, #tpu.memory_space<vmem>>, vector<32x128xf32>
    %15 = tpu.concatenate %12, %14 in 0 : vector<32x128xf32>, vector<32x128xf32> -> vector<64x128xf32>
    %c0_5 = arith.constant 0 : index
    %c0_6 = arith.constant 0 : index
    %16 = vector.load %arg3[%c0_5, %c0_6] : memref<256x128xf32, #tpu.memory_space<vmem>>, vector<256x128xf32>
    %cst_7 = arith.constant dense<0.000000e+00> : vector<64x256xf32>
    %17 = tpu.matmul %15, %16, %cst_7 {dimension_numbers = #tpu.dot_dimension_numbers<[1], [1], [0], [0], [0, 0, 1, 0], [], []>} : vector<64x128xf32>, vector<256x128xf32>, vector<64x256xf32> -> vector<64x256xf32>
    %18 = tpu.iota {dimensions = array<i32: 0>} : vector<32x1xi32>
    %19 = vector.broadcast %1 : i32 to vector<32x1xi32>
    %20 = arith.addi %19, %18 : vector<32x1xi32>
    %c16_i32 = arith.constant 16 : i32
    %21 = vector.broadcast %c16_i32 : i32 to vector<32x1xi32>
    %22 = arith.cmpi slt, %20, %21 : vector<32x1xi32>
    %23 = tpu.iota {dimensions = array<i32: 1>} : vector<32x256xi32>
    %c0_8 = arith.constant 0 : index
    %c0_9 = arith.constant 0 : index
    %24 = vector.load %arg1[%c0_8, %c0_9] : memref<1x256xf32, #tpu.memory_space<vmem>>, vector<1x256xf32>
    %25 = vector.broadcast %20 : vector<32x1xi32> to vector<32x256xi32>
    %26 = arith.cmpi eq, %23, %25 : vector<32x256xi32>
    %cst_10 = arith.constant -1.000000e+09 : f32
    %27 = vector.broadcast %cst_10 : f32 to vector<32x256xf32>
    %28 = vector.shape_cast %24 : vector<1x256xf32> to vector<1x256xf32>
    %29 = vector.broadcast %28 : vector<1x256xf32> to vector<32x256xf32>
    %30 = arith.select %26, %27, %29 : vector<32x256xi1>, vector<32x256xf32>
    %c128_i32_11 = arith.constant 128 : i32
    %31 = vector.broadcast %c128_i32_11 : i32 to vector<32x1xi32>
    %32 = arith.addi %20, %31 : vector<32x1xi32>
    %33 = vector.broadcast %32 : vector<32x1xi32> to vector<32x256xi32>
    %34 = arith.cmpi eq, %23, %33 : vector<32x256xi32>
    %cst_12 = arith.constant -1.000000e+09 : f32
    %35 = vector.broadcast %cst_12 : f32 to vector<32x256xf32>
    %36 = vector.shape_cast %24 : vector<1x256xf32> to vector<1x256xf32>
    %37 = vector.broadcast %36 : vector<1x256xf32> to vector<32x256xf32>
    %38 = arith.select %34, %35, %37 : vector<32x256xi1>, vector<32x256xf32>
    %39 = vector.extract_strided_slice %10 {offsets = [0, 0], sizes = [32, 256], strides = [1, 1]} : vector<64x256xf32> to vector<32x256xf32>
    %40 = arith.addf %39, %30 : vector<32x256xf32>
    %41 = vector.extract_strided_slice %17 {offsets = [0, 0], sizes = [32, 256], strides = [1, 1]} : vector<64x256xf32> to vector<32x256xf32>
    %42 = arith.addf %41, %30 : vector<32x256xf32>
    %cst_13 = arith.constant dense<0xFF800000> : vector<32xf32>
    %43 = vector.multi_reduction <maximumf>, %40, %cst_13 [1] : vector<32x256xf32> to vector<32xf32>
    %44 = vector.shape_cast %43 : vector<32xf32> to vector<32x1xf32>
    %cst_14 = arith.constant dense<0xFF800000> : vector<32xf32>
    %45 = vector.multi_reduction <maximumf>, %42, %cst_14 [1] : vector<32x256xf32> to vector<32xf32>
    %46 = vector.shape_cast %45 : vector<32xf32> to vector<32x1xf32>
    %47 = vector.broadcast %44 : vector<32x1xf32> to vector<32x256xf32>
    %48 = arith.subf %40, %47 : vector<32x256xf32>
    %49 = math.exp %48 : vector<32x256xf32>
    %cst_15 = arith.constant dense<0.000000e+00> : vector<32xf32>
    %50 = vector.multi_reduction <add>, %49, %cst_15 [1] : vector<32x256xf32> to vector<32xf32>
    %51 = vector.shape_cast %50 : vector<32xf32> to vector<32x1xf32>
    %52 = vector.broadcast %46 : vector<32x1xf32> to vector<32x256xf32>
    %53 = arith.subf %42, %52 : vector<32x256xf32>
    %54 = math.exp %53 : vector<32x256xf32>
    %cst_16 = arith.constant dense<0.000000e+00> : vector<32xf32>
    %55 = vector.multi_reduction <add>, %54, %cst_16 [1] : vector<32x256xf32> to vector<32xf32>
    %56 = vector.shape_cast %55 : vector<32xf32> to vector<32x1xf32>
    %57 = math.log %51 : vector<32x1xf32>
    %58 = arith.addf %44, %57 : vector<32x1xf32>
    %59 = math.log %56 : vector<32x1xf32>
    %60 = arith.addf %46, %59 : vector<32x1xf32>
    %61 = tpu.reciprocal %56 : vector<32x1xf32> -> vector<32x1xf32>
    %62 = vector.broadcast %61 : vector<32x1xf32> to vector<32x256xf32>
    %63 = arith.mulf %54, %62 : vector<32x256xf32>
    %64 = arith.subf %42, %40 : vector<32x256xf32>
    %65 = arith.mulf %63, %64 : vector<32x256xf32>
    %cst_17 = arith.constant dense<0.000000e+00> : vector<32xf32>
    %66 = vector.multi_reduction <add>, %65, %cst_17 [1] : vector<32x256xf32> to vector<32xf32>
    %67 = vector.shape_cast %66 : vector<32xf32> to vector<32x1xf32>
    %68 = arith.subf %58, %60 : vector<32x1xf32>
    %69 = arith.addf %67, %68 : vector<32x1xf32>
    %cst_18 = arith.constant 0.000000e+00 : f32
    %70 = vector.broadcast %cst_18 : f32 to vector<32x1xf32>
    %71 = arith.select %22, %69, %70 : vector<32x1xi1>, vector<32x1xf32>
    %72 = vector.shape_cast %71 : vector<32x1xf32> to vector<1x32x1xf32>
    %cst_19 = arith.constant dense<0.000000e+00> : vector<1xf32>
    %73 = vector.multi_reduction <add>, %72, %cst_19 [1, 2] : vector<1x32x1xf32> to vector<1xf32>
    %74 = vector.shape_cast %73 : vector<1xf32> to vector<1x1x1xf32>
    %75 = vector.extract %74[0, 0, 0] : f32 from vector<1x1x1xf32>
    %76 = vector.extract_strided_slice %10 {offsets = [32, 0], sizes = [32, 256], strides = [1, 1]} : vector<64x256xf32> to vector<32x256xf32>
    %77 = arith.addf %76, %38 : vector<32x256xf32>
    %78 = vector.extract_strided_slice %17 {offsets = [32, 0], sizes = [32, 256], strides = [1, 1]} : vector<64x256xf32> to vector<32x256xf32>
    %79 = arith.addf %78, %38 : vector<32x256xf32>
    %cst_20 = arith.constant dense<0xFF800000> : vector<32xf32>
    %80 = vector.multi_reduction <maximumf>, %77, %cst_20 [1] : vector<32x256xf32> to vector<32xf32>
    %81 = vector.shape_cast %80 : vector<32xf32> to vector<32x1xf32>
    %cst_21 = arith.constant dense<0xFF800000> : vector<32xf32>
    %82 = vector.multi_reduction <maximumf>, %79, %cst_21 [1] : vector<32x256xf32> to vector<32xf32>
    %83 = vector.shape_cast %82 : vector<32xf32> to vector<32x1xf32>
    %84 = vector.broadcast %81 : vector<32x1xf32> to vector<32x256xf32>
    %85 = arith.subf %77, %84 : vector<32x256xf32>
    %86 = math.exp %85 : vector<32x256xf32>
    %cst_22 = arith.constant dense<0.000000e+00> : vector<32xf32>
    %87 = vector.multi_reduction <add>, %86, %cst_22 [1] : vector<32x256xf32> to vector<32xf32>
    %88 = vector.shape_cast %87 : vector<32xf32> to vector<32x1xf32>
    %89 = vector.broadcast %83 : vector<32x1xf32> to vector<32x256xf32>
    %90 = arith.subf %79, %89 : vector<32x256xf32>
    %91 = math.exp %90 : vector<32x256xf32>
    %cst_23 = arith.constant dense<0.000000e+00> : vector<32xf32>
    %92 = vector.multi_reduction <add>, %91, %cst_23 [1] : vector<32x256xf32> to vector<32xf32>
    %93 = vector.shape_cast %92 : vector<32xf32> to vector<32x1xf32>
    %94 = math.log %88 : vector<32x1xf32>
    %95 = arith.addf %81, %94 : vector<32x1xf32>
    %96 = math.log %93 : vector<32x1xf32>
    %97 = arith.addf %83, %96 : vector<32x1xf32>
    %98 = tpu.reciprocal %93 : vector<32x1xf32> -> vector<32x1xf32>
    %99 = vector.broadcast %98 : vector<32x1xf32> to vector<32x256xf32>
    %100 = arith.mulf %91, %99 : vector<32x256xf32>
    %101 = arith.subf %79, %77 : vector<32x256xf32>
    %102 = arith.mulf %100, %101 : vector<32x256xf32>
    %cst_24 = arith.constant dense<0.000000e+00> : vector<32xf32>
    %103 = vector.multi_reduction <add>, %102, %cst_24 [1] : vector<32x256xf32> to vector<32xf32>
    %104 = vector.shape_cast %103 : vector<32xf32> to vector<32x1xf32>
    %105 = arith.subf %95, %97 : vector<32x1xf32>
    %106 = arith.addf %104, %105 : vector<32x1xf32>
    %cst_25 = arith.constant 0.000000e+00 : f32
    %107 = vector.broadcast %cst_25 : f32 to vector<32x1xf32>
    %108 = arith.select %22, %106, %107 : vector<32x1xi1>, vector<32x1xf32>
    %109 = vector.shape_cast %108 : vector<32x1xf32> to vector<1x32x1xf32>
    %cst_26 = arith.constant dense<0.000000e+00> : vector<1xf32>
    %110 = vector.multi_reduction <add>, %109, %cst_26 [1, 2] : vector<1x32x1xf32> to vector<1xf32>
    %111 = vector.shape_cast %110 : vector<1xf32> to vector<1x1x1xf32>
    %112 = vector.extract %111[0, 0, 0] : f32 from vector<1x1x1xf32>
    %113 = tpu.iota {dimensions = array<i32: 1>} : vector<1x128xi32>
    %c0_i32 = arith.constant 0 : i32
    %114 = vector.broadcast %c0_i32 : i32 to vector<1x128xi32>
    %115 = arith.cmpi eq, %113, %114 : vector<1x128xi32>
    %c1_i32 = arith.constant 1 : i32
    %116 = vector.broadcast %c1_i32 : i32 to vector<1x128xi32>
    %117 = arith.cmpi eq, %113, %116 : vector<1x128xi32>
    %cst_27 = arith.constant 0.000000e+00 : f32
    %118 = vector.broadcast %112 : f32 to vector<1x128xf32>
    %119 = vector.broadcast %cst_27 : f32 to vector<1x128xf32>
    %120 = arith.select %117, %118, %119 : vector<1x128xi1>, vector<1x128xf32>
    %121 = vector.broadcast %75 : f32 to vector<1x128xf32>
    %122 = arith.select %115, %121, %120 : vector<1x128xi1>, vector<1x128xf32>
    %c0_28 = arith.constant 0 : index
    %c0_29 = arith.constant 0 : index
    %c0_30 = arith.constant 0 : index
    %123 = vector.load %arg4[%c0_28, %c0_29, %c0_30] : memref<1x1x128xf32, #tpu.memory_space<vmem>>, vector<1x1x128xf32>
    %124 = vector.shape_cast %123 : vector<1x1x128xf32> to vector<1x128xf32>
    %125 = vector.shape_cast %122 : vector<1x128xf32> to vector<1x1x128xf32>
    tpu.vector_store %arg4[%c0_28, %c0_29, %c0_30], %125 {strides = array<i32>} : memref<1x1x128xf32, #tpu.memory_space<vmem>>, vector<1x1x128xf32>,
    return
  }
  func.func @transform_0(%arg0: i32) -> (i32, i32) {
    %c0_i32 = arith.constant 0 : i32
    %c0_i32_0 = arith.constant 0 : i32
    %c0_i32_1 = arith.constant 0 : i32
    return %c0_i32, %c0_i32_0 : i32, i32
  }
  func.func @transform_1(%arg0: i32) -> (i32, i32) {
    %c0_i32 = arith.constant 0 : i32
    %c0_i32_0 = arith.constant 0 : i32
    %c0_i32_1 = arith.constant 0 : i32
    return %c0_i32, %c0_i32_0 : i32, i32
  }
  func.func @transform_2(%arg0: i32) -> (i32, i32) {
    %c0_i32 = arith.constant 0 : i32
    %c0_i32_0 = arith.constant 0 : i32
    %c0_i32_1 = arith.constant 0 : i32
    return %c0_i32, %c0_i32_0 : i32, i32
  }
  func.func @transform_3(%arg0: i32) -> (i32, i32, i32) {
    %c0_i32 = arith.constant 0 : i32
    %c0_i32_0 = arith.constant 0 : i32
    %c0_i32_1 = arith.constant 0 : i32
    return %arg0, %c0_i32, %c0_i32_0 : i32, i32, i32
  }
}

module attributes {stable_mosaic.version = 11 : i64} {
  func.func @_ial_kernel(%arg0: i32, %arg1: memref<1x256xf32, #tpu.memory_space<vmem>>, %arg2: memref<256x128xf32, #tpu.memory_space<vmem>>, %arg3: memref<256x128xf32, #tpu.memory_space<vmem>>, %arg4: memref<1x1x128xf32, #tpu.memory_space<vmem>>) attributes {dimension_semantics = [#tpu.dimension_semantics<parallel>], iteration_bounds = array<i64: 4>, scalar_prefetch = 0 : i64, scratch_operands = 0 : i64, tpu.core_type = #tpu.core_type<tc>, window_params = [{pipeline_mode = #tpu.pipeline_mode<synchronous>, transform_indices = @transform_0, window_bounds = array<i64: 1, 256>}, {pipeline_mode = #tpu.pipeline_mode<synchronous>, transform_indices = @transform_1, window_bounds = array<i64: 256, 128>}, {pipeline_mode = #tpu.pipeline_mode<synchronous>, transform_indices = @transform_2, window_bounds = array<i64: 256, 128>}, {transform_indices = @transform_3, window_bounds = array<i64: 1, 1, 128>}]} {
    %c32_i32 = arith.constant 32 : i32
    %0 = arith.muli %arg0, %c32_i32 : i32
    %1 = tpu.assume_multiple %0, 32 : i32
    %c128_i32 = arith.constant 128 : i32
    %2 = arith.addi %1, %c128_i32 : i32
    %3 = tpu.assume_multiple %2, 32 : i32
    %4 = arith.index_cast %1 : i32 to index
    %c0 = arith.constant 0 : index
    %5 = vector.load %arg2[%4, %c0] : memref<256x128xf32, #tpu.memory_space<vmem>>, vector<32x128xf32>
    %6 = arith.index_cast %3 : i32 to index
    %c0_0 = arith.constant 0 : index
    %7 = vector.load %arg2[%6, %c0_0] : memref<256x128xf32, #tpu.memory_space<vmem>>, vector<32x128xf32>
    %8 = tpu.concatenate %5, %7 in 0 : vector<32x128xf32>, vector<32x128xf32> -> vector<64x128xf32>
    %c0_1 = arith.constant 0 : index
    %c0_2 = arith.constant 0 : index
    %9 = vector.load %arg2[%c0_1, %c0_2] : memref<256x128xf32, #tpu.memory_space<vmem>>, vector<256x128xf32>
    %cst = arith.constant dense<0.000000e+00> : vector<64x256xf32>
    %10 = tpu.matmul %8, %9, %cst {dimension_numbers = #tpu.dot_dimension_numbers<[1], [1], [0], [0], [0, 0, 1, 0], [], []>} : vector<64x128xf32>, vector<256x128xf32>, vector<64x256xf32> -> vector<64x256xf32>
    %11 = arith.index_cast %1 : i32 to index
    %c0_3 = arith.constant 0 : index
    %12 = vector.load %arg3[%11, %c0_3] : memref<256x128xf32, #tpu.memory_space<vmem>>, vector<32x128xf32>
    %13 = arith.index_cast %3 : i32 to index
    %c0_4 = arith.constant 0 : index
    %14 = vector.load %arg3[%13, %c0_4] : memref<256x128xf32, #tpu.memory_space<vmem>>, vector<32x128xf32>
    %15 = tpu.concatenate %12, %14 in 0 : vector<32x128xf32>, vector<32x128xf32> -> vector<64x128xf32>
    %c0_5 = arith.constant 0 : index
    %c0_6 = arith.constant 0 : index
    %16 = vector.load %arg3[%c0_5, %c0_6] : memref<256x128xf32, #tpu.memory_space<vmem>>, vector<256x128xf32>
    %cst_7 = arith.constant dense<0.000000e+00> : vector<64x256xf32>
    %17 = tpu.matmul %15, %16, %cst_7 {dimension_numbers = #tpu.dot_dimension_numbers<[1], [1], [0], [0], [0, 0, 1, 0], [], []>} : vector<64x128xf32>, vector<256x128xf32>, vector<64x256xf32> -> vector<64x256xf32>
    %18 = tpu.iota {dimensions = array<i32: 0>} : vector<32x1xi32>
    %19 = vector.broadcast %1 : i32 to vector<32x1xi32>
    %20 = arith.addi %19, %18 : vector<32x1xi32>
    %c16_i32 = arith.constant 16 : i32
    %21 = vector.broadcast %c16_i32 : i32 to vector<32x1xi32>
    %22 = arith.cmpi slt, %20, %21 : vector<32x1xi32>
    %23 = tpu.iota {dimensions = array<i32: 1>} : vector<32x256xi32>
    %c0_8 = arith.constant 0 : index
    %c0_9 = arith.constant 0 : index
    %24 = vector.load %arg1[%c0_8, %c0_9] : memref<1x256xf32, #tpu.memory_space<vmem>>, vector<1x256xf32>
    %25 = vector.broadcast %20 : vector<32x1xi32> to vector<32x256xi32>
    %26 = arith.cmpi eq, %23, %25 : vector<32x256xi32>
    %cst_10 = arith.constant -1.000000e+09 : f32
    %27 = vector.broadcast %cst_10 : f32 to vector<32x256xf32>
    %28 = vector.shape_cast %24 : vector<1x256xf32> to vector<1x256xf32>
    %29 = vector.broadcast %28 : vector<1x256xf32> to vector<32x256xf32>
    %30 = arith.select %26, %27, %29 : vector<32x256xi1>, vector<32x256xf32>
    %c128_i32_11 = arith.constant 128 : i32
    %31 = vector.broadcast %c128_i32_11 : i32 to vector<32x1xi32>
    %32 = arith.addi %20, %31 : vector<32x1xi32>
    %33 = vector.broadcast %32 : vector<32x1xi32> to vector<32x256xi32>
    %34 = arith.cmpi eq, %23, %33 : vector<32x256xi32>
    %cst_12 = arith.constant -1.000000e+09 : f32
    %35 = vector.broadcast %cst_12 : f32 to vector<32x256xf32>
    %36 = vector.shape_cast %24 : vector<1x256xf32> to vector<1x256xf32>
    %37 = vector.broadcast %36 : vector<1x256xf32> to vector<32x256xf32>
    %38 = arith.select %34, %35, %37 : vector<32x256xi1>, vector<32x256xf32>
    %39 = vector.extract_strided_slice %10 {offsets = [0, 0], sizes = [32, 256], strides = [1, 1]} : vector<64x256xf32> to vector<32x256xf32>
    %40 = arith.addf %39, %30 : vector<32x256xf32>
    %41 = vector.extract_strided_slice %17 {offsets = [0, 0], sizes = [32, 256], strides = [1, 1]} : vector<64x256xf32> to vector<32x256xf32>
    %42 = arith.addf %41, %30 : vector<32x256xf32>
    %cst_13 = arith.constant dense<0xFF800000> : vector<32xf32>
    %43 = vector.multi_reduction <maximumf>, %40, %cst_13 [1] : vector<32x256xf32> to vector<32xf32>
    %44 = vector.shape_cast %43 : vector<32xf32> to vector<32x1xf32>
    %cst_14 = arith.constant dense<0xFF800000> : vector<32xf32>
    %45 = vector.multi_reduction <maximumf>, %42, %cst_14 [1] : vector<32x256xf32> to vector<32xf32>
    %46 = vector.shape_cast %45 : vector<32xf32> to vector<32x1xf32>
    %47 = vector.broadcast %44 : vector<32x1xf32> to vector<32x256xf32>
    %48 = arith.subf %40, %47 : vector<32x256xf32>
    %49 = math.exp %48 : vector<32x256xf32>
    %cst_15 = arith.constant dense<0.000000e+00> : vector<32xf32>
    %50 = vector.multi_reduction <add>, %49, %cst_15 [1] : vector<32x256xf32> to vector<32xf32>
    %51 = vector.shape_cast %50 : vector<32xf32> to vector<32x1xf32>
    %52 = vector.broadcast %46 : vector<32x1xf32> to vector<32x256xf32>
    %53 = arith.subf %42, %52 : vector<32x256xf32>
    %54 = math.exp %53 : vector<32x256xf32>
    %cst_16 = arith.constant dense<0.000000e+00> : vector<32xf32>
    %55 = vector.multi_reduction <add>, %54, %cst_16 [1] : vector<32x256xf32> to vector<32xf32>
    %56 = vector.shape_cast %55 : vector<32xf32> to vector<32x1xf32>
    %57 = math.log %51 : vector<32x1xf32>
    %58 = arith.addf %44, %57 : vector<32x1xf32>
    %59 = math.log %56 : vector<32x1xf32>
    %60 = arith.addf %46, %59 : vector<32x1xf32>
    %61 = tpu.reciprocal %56 : vector<32x1xf32> -> vector<32x1xf32>
    %62 = vector.broadcast %61 : vector<32x1xf32> to vector<32x256xf32>
    %63 = arith.mulf %54, %62 : vector<32x256xf32>
    %64 = arith.subf %42, %40 : vector<32x256xf32>
    %65 = arith.mulf %63, %64 : vector<32x256xf32>
    %cst_17 = arith.constant dense<0.000000e+00> : vector<32xf32>
    %66 = vector.multi_reduction <add>, %65, %cst_17 [1] : vector<32x256xf32> to vector<32xf32>
    %67 = vector.shape_cast %66 : vector<32xf32> to vector<32x1xf32>
    %68 = arith.subf %58, %60 : vector<32x1xf32>
    %69 = arith.addf %67, %68 : vector<32x1xf32>
    %cst_18 = arith.constant 0.000000e+00 : f32
    %70 = vector.broadcast %cst_18 : f32 to vector<32x1xf32>
    %71 = arith.select %22, %69, %70 : vector<32x1xi1>, vector<32x1xf32>
    %72 = vector.shape_cast %71 : vector<32x1xf32> to vector<1x32x1xf32>
    %cst_19 = arith.constant dense<0.000000e+00> : vector<1xf32>
    %73 = vector.multi_reduction <add>, %72, %cst_19 [1, 2] : vector<1x32x1xf32> to vector<1xf32>
    %74 = vector.shape_cast %73 : vector<1xf32> to vector<1x1x1xf32>
    %75 = vector.extract %74[0, 0, 0] : f32 from vector<1x1x1xf32>
    %76 = vector.extract_strided_slice %10 {offsets = [32, 0], sizes = [32, 256], strides = [1, 1]} : vector<64x256xf32> to vector<32x256xf32>
    %77 = arith.addf %76, %38 : vector<32x256xf32>
    %78 = vector.extract_strided_slice %17 {offsets = [32, 0], sizes = [32, 256], strides = [1, 1]} : vector<64x256xf32> to vector<32x256xf32>
    %79 = arith.addf %78, %38 : vector<32x256xf32>
    %cst_20 = arith.constant dense<0xFF800000> : vector<32xf32>
    %80 = vector.multi_reduction <maximumf>, %77, %cst_20 [1] : vector<32x256xf32> to vector<32xf32>
    %81 = vector.shape_cast %80 : vector<32xf32> to vector<32x1xf32>
    %cst_21 = arith.constant dense<0xFF800000> : vector<32xf32>
    %82 = vector.multi_reduction <maximumf>, %79, %cst_21 [1] : vector<32x256xf32> to vector<32xf32>
    %83 = vector.shape_cast %82 : vector<32xf32> to vector<32x1xf32>
    %84 = vector.broadcast %81 : vector<32x1xf32> to vector<32x256xf32>
    %85 = arith.subf %77, %84 : vector<32x256xf32>
    %86 = math.exp %85 : vector<32x256xf32>
    %cst_22 = arith.constant dense<0.000000e+00> : vector<32xf32>
    %87 = vector.multi_reduction <add>, %86, %cst_22 [1] : vector<32x256xf32> to vector<32xf32>
    %88 = vector.shape_cast %87 : vector<32xf32> to vector<32x1xf32>
    %89 = vector.broadcast %83 : vector<32x1xf32> to vector<32x256xf32>
    %90 = arith.subf %79, %89 : vector<32x256xf32>
    %91 = math.exp %90 : vector<32x256xf32>
    %cst_23 = arith.constant dense<0.000000e+00> : vector<32xf32>
    %92 = vector.multi_reduction <add>, %91, %cst_23 [1] : vector<32x256xf32> to vector<32xf32>
    %93 = vector.shape_cast %92 : vector<32xf32> to vector<32x1xf32>
    %94 = math.log %88 : vector<32x1xf32>
    %95 = arith.addf %81, %94 : vector<32x1xf32>
    %96 = math.log %93 : vector<32x1xf32>
    %97 = arith.addf %83, %96 : vector<32x1xf32>
    %98 = tpu.reciprocal %93 : vector<32x1xf32> -> vector<32x1xf32>
    %99 = vector.broadcast %98 : vector<32x1xf32> to vector<32x256xf32>
    %100 = arith.mulf %91, %99 : vector<32x256xf32>
    %101 = arith.subf %79, %77 : vector<32x256xf32>
    %102 = arith.mulf %100, %101 : vector<32x256xf32>
    %cst_24 = arith.constant dense<0.000000e+00> : vector<32xf32>
    %103 = vector.multi_reduction <add>, %102, %cst_24 [1] : vector<32x256xf32> to vector<32xf32>
    %104 = vector.shape_cast %103 : vector<32xf32> to vector<32x1xf32>
    %105 = arith.subf %95, %97 : vector<32x1xf32>
    %106 = arith.addf %104, %105 : vector<32x1xf32>
    %cst_25 = arith.constant 0.000000e+00 : f32
    %107 = vector.broadcast %cst_25 : f32 to vector<32x1xf32>
    %108 = arith.select %22, %106, %107 : vector<32x1xi1>, vector<32x1xf32>
    %109 = vector.shape_cast %108 : vector<32x1xf32> to vector<1x32x1xf32>
    %cst_26 = arith.constant dense<0.000000e+00> : vector<1xf32>
    %110 = vector.multi_reduction <add>, %109, %cst_26 [1, 2] : vector<1x32x1xf32> to vector<1xf32>
    %111 = vector.shape_cast %110 : vector<1xf32> to vector<1x1x1xf32>
    %112 = vector.extract %111[0, 0, 0] : f32 from vector<1x1x1xf32>
    %113 = tpu.iota {dimensions = array<i32: 1>} : vector<1x128xi32>
    %c0_i32 = arith.constant 0 : i32
    %114 = vector.broadcast %c0_i32 : i32 to vector<1x128xi32>
    %115 = arith.cmpi eq, %113, %114 : vector<1x128xi32>
    %c1_i32 = arith.constant 1 : i32
    %116 = vector.broadcast %c1_i32 : i32 to vector<1x128xi32>
    %117 = arith.cmpi eq, %113, %116 : vector<1x128xi32>
    %cst_27 = arith.constant 0.000000e+00 : f32
    %118 = vector.broadcast %112 : f32 to vector<1x128xf32>
    %119 = vector.broadcast %cst_27 : f32 to vector<1x128xf32>
    %120 = arith.select %117, %118, %119 : vector<1x128xi1>, vector<1x128xf32>
    %121 = vector.broadcast %75 : f32 to vector<1x128xf32>
    %122 = arith.select %115, %121, %120 : vector<1x128xi1>, vector<1x128xf32>
    %c0_28 = arith.constant 0 : index
    %c0_29 = arith.constant 0 : index
    %c0_30 = arith.constant 0 : index
    %123 = vector.load %arg4[%c0_28, %c0_29, %c0_30] : memref<1x1x128xf32, #tpu.memory_space<vmem>>, vector<1x1x128xf32>
    %124 = vector.shape_cast %123 : vector<1x1x128xf32> to vector<1x128xf32>
    %125 = vector.shape_cast %122 : vector<1x128xf32> to vector<1x1x128xf32>
    tpu.vector_store %arg4[%c0_28, %c0_29, %c0_30], %125 {strides = array<i32>} : memref<1x1x128xf32, #tpu.memory_space<vmem>>, vector<1x1x128xf32>,
    return
  }
  func.func @transform_0(%arg0: i32) -> (i32, i32) {
    %c0_i32 = arith.constant 0 : i32
    %c0_i32_0 = arith.constant 0 : i32
    %c0_i32_1 = arith.constant 0 : i32
    return %c0_i32, %c0_i32_0 : i32, i32
  }
  func.func @transform_1(%arg0: i32) -> (i32, i32) {
    %c0_i32 = arith.constant 0 : i32
    %c0_i32_0 = arith.constant 0 : i32
    %c0_i32_1 = arith.constant 0 : i32
    return %c0_i32, %c0_i32_0 : i32, i32
  }
  func.func @transform_2(%arg0: i32) -> (i32, i32) {
    %c0_i32 = arith.constant 0 : i32
    %c0_i32_0 = arith.constant 0 : i32
    %c0_i32_1 = arith.constant 0 : i32
    return %c0_i32, %c0_i32_0 : i32, i32
  }
  func.func @transform_3(%arg0: i32) -> (i32, i32, i32) {
    %c0_i32 = arith.constant 0 : i32
    %c0_i32_0 = arith.constant 0 : i32
    %c0_i32_1 = arith.constant 0 : i32
    return %arg0, %c0_i32, %c0_i32_0 : i32, i32, i32
  }
}

</mosaic_0001>

<bundles_post_ra>
// kernel: tpu_custom_call.1
= control target key start
LH: loop header
LB: loop body
LE: loop exit
PB: predicated region body
PF: predicated region fallthrough
CT: control target
= control target key end

     0   :  { %8 = vsyncpa [#allocation3], 0  ;;  %s2324_s0 = inlined_call_operand.hbm [shape: f32[1,256], index: 0, kind: input, shape index: {}]   ;;  %s2325_s1 = inlined_call_operand.hbm [shape: f32[256,128], index: 1, kind: input, shape index: {}]   ;;  %s2326_s2 = inlined_call_operand.hbm [shape: f32[256,128], index: 2, kind: input, shape index: {}]   ;;  %s2327_s3 = inlined_call_operand.hbm [shape: f32[4,1,128], index: 3, kind: output, shape index: {}]  }
   0x1   :  { %9 = vsyncpa [#allocation6], 0 }
   0x2   :  { %10 = vsyncpa [#allocation4], 0 }
   0x3   :  { %12 = vsyncpa [#allocation4 + $0x1], 0  ;;  %s1633_s12 = smov 0   ;;  %s1635_s13 = smov 0  }
   0x4   :  { %s1637_s14 = smov 0   ;;  %s1639_s15 = smov 0  }
   0x5 LB: > { %s1654_s16 = sadd.s32 4294967295, %s1605_s15   ;;  %s1080_s17 = sadd.s32 4294967294, %s1605_s15   ;;  %s1605_s15 = sphi %s1639_s15, %s2426_s15   ;;  %s1601_s14 = sphi %s1637_s14, %s2425_s14   ;;  %s1597_s13 = sphi %s1635_s13, %s2424_s13   ;;  %s1593_s12 = sphi %s1633_s12, %s2423_s12  }
   0x6   : > { %s1658_s18 = sadd.s32 1, %s1605_s15   ;;  %s88_s19 = sadd.s32 1, %s1601_s14 }
   0x7   : > { %s85_s20 = ssub.s32 %s1605_s15, %s1658_s18  ;;  %p98_p0 = scmp.ne.s32.totalorder %s1601_s14, %s1597_s13 }
   0x8   : > { %p86_p1 = scmp.eq.s32.totalorder %s85_s20, 0  ;;  %p99_p2 = scmp.eq.s32.totalorder %s1654_s16, 3 }
   0x9   : > { %p104_p3 = scmp.ne.s32.totalorder %s1597_s13, %s1593_s12  ;;  %p105_p4 = scmp.eq.s32.totalorder %s1080_s17, 3 }
   0xa   : > { %s1669_s21 = scalar_select %p86_p1, %s1601_s14, %s88_s19  }
   0xb   : > { %p1671_p5 = por %p99_p2, %p98_p0  ;;  %p1675_p6 = por %p105_p4, %p104_p3 }
   0xc   : > { %p1081_p7 = scmp.ge.s32.totalorder %s1605_s15, 1  ;;  %p112_p8 = scmp.lt.s32.totalorder %s1605_s15, 5 }
   0xd   : > { %s2361_s22 = scalar_select %p1671_p5, 1, 0 }
   0xe   : > { %s2362_s23 = scalar_select %p1675_p6, 1, 0 }
   0xf   : > { %p2328_p9 = scmp.eq.s32.totalorder %s1654_s16, 0  ;;  %p1682_p10 = pnand %p1081_p7, %p112_p8 }
  0x10   : > { %s1607_s25 = smov [#allocation5]   ;;  %s1608_s28 = smov [#allocation2]  }
  0x11   : > { %s2363_s24 = scalar_select %p1682_p10, 1, 0 }
  0x12   : > { %s135_s26 = sshll.u32 %s1607_s25, 4  ;;  %p1281_p11 = pneg %p1682_p10  ;;  %s1688_s26 = int_to_ptr.vmem [resolvable:$true] %s135_s26 }
  0x13   : > { %s125_s29 = sshll.u32 %s1608_s28, 4  ;;  %s1609_s30 = smov [#allocation7]   ;;  %s1696_s29 = int_to_ptr.vmem [resolvable:$true] %s125_s29 }
  0x14   : > { %p1692_p12 = pnand %p2328_p9, %p1281_p11  ;;  %s1698_s4 = sshll.u32 %s1609_s30, 4  ;;  %s149_s4 = int_to_ptr.vmem [resolvable:$true] %s1698_s4 }
  0x15   : > { %s1451_s7 = scalar_lea.hbm %s2325_s1, 4096 }
  0x16   : > { %p1452_p13 = scmp.ne.s32.totalorder %s2325_s1, %s1451_s7  ;;  %p1708_p0 = pneg %p1692_p12 }
  0x17   : > { %p1458_p3 = scmp.lt.u32.totalorder %s1451_s7, %s2325_s1 }
  0x18   : > { %p1454_p1 = pnand %p1708_p0, %p1452_p13 }
  0x1a   : > { %p1455_p2 = pneg %p1454_p1 }
  0x1c   : > { %p1460_p4 = pnand %p1458_p3, %p1455_p2 }
  0x1e   : > { %1463 = shalt.err (!%p1460_p4)
}
  0x1f   : > { %s1464_s19 = scalar_lea.vmem %s1688_s26, 4096  ;;  %p1472_p9 = scmp.lt.s32.totalorder %s1688_s26, %s1688_s26 }
  0x20   : > { %p1465_p7 = scmp.ne.s32.totalorder %s1688_s26, %s1464_s19  ;;  %p1473_p6 = scmp.lt.s32.totalorder %s1464_s19, %s1464_s19 }
  0x22   : > { %p1467_p8 = pnand %p1465_p7, %p1708_p0  ;;  %p1474_p13 = por %p1473_p6, %p1472_p9 }
  0x24   : > { %p1468_p11 = pneg %p1467_p8 }
  0x26   : > { %p1475_p1 = pnand %p1474_p13, %p1468_p11 }
  0x28   : > { %1478 = shalt.err (!%p1475_p1)
}
  0x29   : > { %s1610_s20 = smov 128   ;;  %s1611_s25 = smov 8  }
  0x2a   : > { %1287 = dma.hbm_to_vmem [thread:$0]  (!%p1692_p12), %s2325_s1, 4096, %s1688_s26, [#allocation6], %s1610_s20, %s1610_s20, %s1611_s25  }
  0x2b   : > { %s1479_s7 = scalar_lea.hbm %s2324_s0, 32 }
  0x2c   : > { %p1480_p6 = scmp.ne.s32.totalorder %s2324_s0, %s1479_s7  ;;  %p1486_p3 = scmp.lt.u32.totalorder %s1479_s7, %s2324_s0 }
  0x2e   : > { %p1482_p9 = pnand %p1480_p6, %p1708_p0 }
  0x30   : > { %p1483_p2 = pneg %p1482_p9 }
  0x32   : > { %p1488_p4 = pnand %p1486_p3, %p1483_p2 }
  0x34   : > { %1491 = shalt.err (!%p1488_p4)
}
  0x35   : > { %s1492_s26 = scalar_lea.vmem %s1696_s29, 32  ;;  %p1500_p13 = scmp.lt.s32.totalorder %s1696_s29, %s1696_s29 }
  0x36   : > { %p1493_p7 = scmp.ne.s32.totalorder %s1696_s29, %s1492_s26  ;;  %p1501_p1 = scmp.lt.s32.totalorder %s1492_s26, %s1492_s26 }
  0x38   : > { %p1495_p8 = pnand %p1493_p7, %p1708_p0  ;;  %p1502_p6 = por %p1501_p1, %p1500_p13 }
  0x3a   : > { %p1496_p11 = pneg %p1495_p8 }
  0x3c   : > { %p1503_p9 = pnand %p1502_p6, %p1496_p11 }
  0x3e   : > { %1506 = shalt.err (!%p1503_p9)
}
  0x3f   : > { %1284 = dma.hbm_to_vmem [thread:$0]  (!%p1692_p12), %s2324_s0, 32, %s1696_s29, [#allocation3]  }
  0x40   : > { %s1507_s6 = scalar_lea.hbm %s2326_s2, 4096 }
  0x41   : > { %p1508_p2 = scmp.ne.s32.totalorder %s2326_s2, %s1507_s6  ;;  %p1514_p7 = scmp.lt.u32.totalorder %s1507_s6, %s2326_s2 }
  0x43   : > { %p1510_p3 = pnand %p1508_p2, %p1708_p0 }
  0x45   : > { %p1511_p4 = pneg %p1510_p3 }
  0x47   : > { %p1516_p8 = pnand %p1514_p7, %p1511_p4 }
  0x49   : > { %1519 = shalt.err (!%p1516_p8)
}
  0x4a   : > { %s1520_s17 = scalar_lea.vmem %s149_s4, 4096  ;;  %p1528_p6 = scmp.lt.s32.totalorder %s149_s4, %s149_s4 }
  0x4b   : > { %p1521_p11 = scmp.ne.s32.totalorder %s149_s4, %s1520_s17  ;;  %p1529_p9 = scmp.lt.s32.totalorder %s1520_s17, %s1520_s17 }
  0x4d   : > { %p1523_p13 = pnand %p1521_p11, %p1708_p0  ;;  %p1530_p5 = por %p1529_p9, %p1528_p6 }
  0x4f   : > { %p1524_p1 = pneg %p1523_p13 }
  0x51   : > { %p1531_p10 = pnand %p1530_p5, %p1524_p1 }
  0x53   : > { %1534 = shalt.err (!%p1531_p10)
}
  0x54   : > { %1290 = dma.hbm_to_vmem [thread:$0]  (!%p1692_p12), %s2326_s2, 4096, %s149_s4, [#allocation6], %s1610_s20, %s1610_s20, %s1611_s25  }
  0x55   : > { %p2366_p2 = scmp.ne.s32.totalorder %s2363_s24, 0 }
  0x57   : > { %164 = sbr.rel (%p2366_p2) target bundleno = 1103 (0x44f), region = 32 }
  0x5e   : > { %p2367_p0 = scmp.eq.s32.totalorder %s1654_s16, 0 }
  0x60   : > { %1580 = dma.done.wait (%p2367_p0), [#allocation3], 32   ;;  %p2368_p3 = pmov %p2367_p0 }
  0x61   : > { %p2369_p5 = pmov %p2367_p0 }
  0x62   : > { %1582 = vsyncadd (%p2368_p3), [#allocation3], 4294967264 }
  0x63   : > { %1584 = dma.done.wait (%p2369_p5), [#allocation6], 8192   ;;  %p2370_p10 = pmov %p2367_p0 }
  0x64   : > { %v218_v0 = vld [vmem:[#allocation5 + $0x80] sm:$0xff]  ;;  %v219_v1 = vld [vmem:[#allocation5 + $0x88] sm:$0xff]  ;;  %v220_v11 = vld [vmem:[#allocation5 + $0x90] sm:$0xff]  ;;  %s1788_s24 = sshll.u32 %s1654_s16, 5  ;;  %s188_s10 = sand.u32 1, %s1597_s13  }
  0x65   : > { %1586 = vsyncadd (%p2370_p10), [#allocation6], 4294959104  ;;  %v373_v2 = vld [vmem:[#allocation7 + $0x80] sm:$0xff]  ;;  %v1199_v3 = vpack.c.bf16 %v219_v1, %v218_v0  ;;  %v374_v4 = vld [vmem:[#allocation7 + $0x88] sm:$0xff]  ;;  %s1791_s27 = scalar_lea.vmem [#allocation5], %s1788_s24  ;;  %s1797_s4 = scalar_lea.vmem [#allocation7], %s1788_s24 }
  0x66   : > { %v202_v5 = vld [vmem:[#allocation5] sm:$0xff]  ;;  %v203_v6 = vld [vmem:[#allocation5 + $0x8] sm:$0xff]  ;;  %v1231_v7 = vpack.c.bf16 %v374_v4, %v373_v2  ;;  %v221_v13 = vld [vmem:[#allocation5 + $0x98] sm:$0xff]  ;;  %s1100_s20 = sshll.u32 %s1654_s16, 4  ;;  %s189_s19 = scalar_lea.vmem [#allocation8], %s188_s10 }
  0x67   : > { %v1201_v8 = vpack.c.bf16 %v203_v6, %v202_v5  ;;  %v357_v9 = vld [vmem:[#allocation7] sm:$0xff]  ;;  %v358_v10 = vld [vmem:[#allocation7 + $0x8] sm:$0xff]  ;;  %1200 = vmatprep.subr.bf16.mxu0 %v1199_v3  ;;  %v375_v14 = vld [vmem:[#allocation7 + $0x90] sm:$0xff]  ;;  %v1203_v16 = vpack.c.bf16 %v221_v13, %v220_v11  ;;  %s996_s28 = sshll.u32 %s189_s19, 4  ;;  %s2282_s7 = scalar_lea.hbm %s2327_s3, %s1100_s20  ;;  %s2284_s28 = int_to_ptr.vmem [resolvable:$true] %s996_s28 }
  0x68   : > { %v1233_v12 = vpack.c.bf16 %v358_v10, %v357_v9  ;;  %v376_v15 = vld [vmem:[#allocation7 + $0x98] sm:$0xff]  ;;  %1232 = vmatprep.subr.bf16.mxu1 %v1231_v7  ;;  %v204_v18 = vld [vmem:[#allocation5 + $0x10] sm:$0xff]  ;;  %v222_v22 = vld [vmem:[#allocation5 + $0xa0] sm:$0xff]  ;;  %s984_s16 = scalar_lea.sflag [#allocation4], %s188_s10  ;;  %s1535_s8 = scalar_lea.vmem %s2284_s28, 16 }
  0x69   : > { %1202 = vmatpush3.bf16.xpose.msra.mxu0 %v1201_v8  ;;  %v1235_v17 = vpack.c.bf16 %v376_v15, %v375_v14  ;;  %v205_v19 = vld [vmem:[#allocation5 + $0x18] sm:$0xff]  ;;  %v359_v20 = vld [vmem:[#allocation7 + $0x10] sm:$0xff]  ;;  %v223_v23 = vld [vmem:[#allocation5 + $0xa8] sm:$0xff]  ;;  %p1536_p12 = scmp.ne.s32.totalorder %s2284_s28, %s1535_s8  ;;  %p2421_p4 = scmp.ne.s32.totalorder %s2361_s22, 0 }
  0x6a   : > { %1234 = vmatpush3.bf16.xpose.msra.mxu1 %v1233_v12  ;;  %1204 = vmatprep.subr.bf16.mxu0 %v1203_v16  ;;  %v360_v21 = vld [vmem:[#allocation7 + $0x18] sm:$0xff]  ;;  %v377_v24 = vld [vmem:[#allocation7 + $0xa0] sm:$0xff]  ;;  %v378_v25 = vld [vmem:[#allocation7 + $0xa8] sm:$0xff]  ;;  %v1205_v26 = vpack.c.bf16 %v205_v19, %v204_v18  ;;  %v1207_v28 = vpack.c.bf16 %v223_v23, %v222_v22  ;;  %s1612_s9 = smov [#allocation8]  }
  0x6b   : > { %1236 = vmatprep.subr.bf16.mxu1 %v1235_v17  ;;  %v1237_v27 = vpack.c.bf16 %v360_v21, %v359_v20  ;;  %v1239_v29 = vpack.c.bf16 %v378_v25, %v377_v24  ;;  %v206_v30 = vld [vmem:[#allocation5 + $0x20] sm:$0xff]  ;;  %v207_v31 = vld [vmem:[#allocation5 + $0x28] sm:$0xff]  ;;  %v224_v34 = vld [vmem:[#allocation5 + $0xb0] sm:$0xff]  ;;  %p1537_p7 = pnand %p1536_p12, %p2421_p4  ;;  %s1539_s11 = sshll.u32 %s1612_s9, 4  ;;  %s1540_s11 = int_to_ptr.vmem [resolvable:$false] %s1539_s11 }
  0x6c   : > { %v361_v32 = vld [vmem:[#allocation7 + $0x20] sm:$0xff]  ;;  %v362_v33 = vld [vmem:[#allocation7 + $0x28] sm:$0xff]  ;;  %v225_v35 = vld [vmem:[#allocation5 + $0xb8] sm:$0xff]  ;;  %v1209_v38 = vpack.c.bf16 %v207_v31, %v206_v30  ;;  %s1541_s17 = scalar_lea.vmem %s1540_s11, 32  ;;  %p1542_p11 = scmp.lt.s32.totalorder %s2284_s28, %s1540_s11 }
  0x6d   : > { %v379_v36 = vld [vmem:[#allocation7 + $0xb0] sm:$0xff]  ;;  %v380_v37 = vld [vmem:[#allocation7 + $0xb8] sm:$0xff]  ;;  %v1241_v39 = vpack.c.bf16 %v362_v33, %v361_v32  ;;  %v1211_v40 = vpack.c.bf16 %v225_v35, %v224_v34  ;;  %v226_v48 = vld [vmem:[#allocation5 + $0xc0] sm:$0xff]  ;;  %p1538_p8 = pneg %p1537_p7  ;;  %p1543_p13 = scmp.lt.s32.totalorder %s1541_s17, %s1535_s8 }
  0x6e   : > { %v1243_v41 = vpack.c.bf16 %v380_v37, %v379_v36  ;;  %v208_v42 = vld [vmem:[#allocation5 + $0x30] sm:$0xff]  ;;  %v209_v43 = vld [vmem:[#allocation5 + $0x38] sm:$0xff]  ;;  %v227_v49 = vld [vmem:[#allocation5 + $0xc8] sm:$0xff] }
  0x6f   : > { %v363_v44 = vld [vmem:[#allocation7 + $0x30] sm:$0xff]  ;;  %v1794_v45 = vld [vmem:[%s1791_s27] sm:$0xff]  ;;  %v382_v51 = vld [vmem:[#allocation7 + $0xc8] sm:$0xff]  ;;  %v1213_v52 = vpack.c.bf16 %v209_v43, %v208_v42  ;;  %v1215_v54 = vpack.c.bf16 %v227_v49, %v226_v48  ;;  %v502_v48 = vlaneseq  ;;  %p1544_p1 = por %p1543_p13, %p1542_p11 }
  0x70   : > { %v1800_v46 = vld [vmem:[%s1797_s4] sm:$0xff]  ;;  %1135 = vmatprep.mubr.f32.mxu0 %v1794_v45  ;;  %v211_v57 = vld [vmem:[#allocation5 + $0x48] sm:$0xff]  ;;  %v228_v60 = vld [vmem:[#allocation5 + $0xd0] sm:$0xff] }
  0x71   : > { %1206 = vmatpush3.bf16.xpose.msra.mxu0 %v1205_v26  ;;  %v364_v47 = vld [vmem:[#allocation7 + $0x38] sm:$0xff]  ;;  %v381_v50 = vld [vmem:[#allocation7 + $0xc0] sm:$0xff]  ;;  %1183 = vmatprep.mubr.f32.mxu1 %v1800_v46  ;;  %v366_v59 = vld [vmem:[#allocation7 + $0x48] sm:$0xff]  ;;  %v503_v49 = vshrl.u32 %v502_v48, 7  ;;  %p1545_p6 = pnand %p1544_p1, %p1538_p8 }
  0x72   : > { %1238 = vmatpush3.bf16.xpose.msra.mxu1 %v1237_v27  ;;  %1208 = vmatprep.subr.bf16.mxu0 %v1207_v28  ;;  %v1245_v53 = vpack.c.bf16 %v364_v47, %v363_v44  ;;  %v1247_v55 = vpack.c.bf16 %v382_v51, %v381_v50  ;;  %v210_v56 = vld [vmem:[#allocation5 + $0x40] sm:$0xff]  ;;  %v229_v61 = vld [vmem:[#allocation5 + $0xd8] sm:$0xff]  ;;  %v383_v62 = vld [vmem:[#allocation7 + $0xd0] sm:$0xff]  ;;  %v507_v50 = vstv %s1788_s24  ;;  %v1821_v51 = vand.u32 127, %v502_v48 }
  0x73   : > { %1240 = vmatprep.subr.bf16.mxu1 %v1239_v29  ;;  %v365_v58 = vld [vmem:[#allocation7 + $0x40] sm:$0xff]  ;;  %v384_v63 = vld [vmem:[#allocation7 + $0xd8] sm:$0xff]  ;;  %v1217_v0 = vpack.c.bf16 %v211_v57, %v210_v56  ;;  %v1219_v2 = vpack.c.bf16 %v229_v61, %v228_v60  ;;  %v212_v4 = vld [vmem:[#allocation5 + $0x50] sm:$0xff]  ;;  %v504_v56 = vadd.s32 8, %v503_v49  ;;  %v505_v61 = vadd.s32 16, %v503_v49 }
  0x74   : > { %v1249_v1 = vpack.c.bf16 %v366_v59, %v365_v58  ;;  %v1251_v3 = vpack.c.bf16 %v384_v63, %v383_v62  ;;  %v213_v5 = vld [vmem:[#allocation5 + $0x58] sm:$0xff]  ;;  %v367_v6 = vld [vmem:[#allocation7 + $0x50] sm:$0xff]  ;;  %v230_v8 = vld [vmem:[#allocation5 + $0xe0] sm:$0xff]  ;;  %2371 = vst [vmem:[#allocation12_spill] sm:$0xff] %v1821_v51  ;;  %v1826_v57 = vadd.s32 128, %v1821_v51 }
  0x75   : > { %v368_v7 = vld [vmem:[#allocation7 + $0x58] sm:$0xff]  ;;  %v231_v9 = vld [vmem:[#allocation5 + $0xe8] sm:$0xff]  ;;  %v385_v10 = vld [vmem:[#allocation7 + $0xe0] sm:$0xff]  ;;  %v1221_v12 = vpack.c.bf16 %v213_v5, %v212_v4  ;;  %v1834_v60 = vadd.s32 %v507_v50, %v504_v56 }
  0x76   : > { %v386_v11 = vld [vmem:[#allocation7 + $0xe8] sm:$0xff]  ;;  %v1253_v13 = vpack.c.bf16 %v368_v7, %v367_v6  ;;  %v1223_v14 = vpack.c.bf16 %v231_v9, %v230_v8  ;;  %v214_v16 = vld [vmem:[#allocation5 + $0x60] sm:$0xff]  ;;  %v232_v20 = vld [vmem:[#allocation5 + $0xf0] sm:$0xff] }
  0x77   : > { %v1255_v15 = vpack.c.bf16 %v386_v11, %v385_v10  ;;  %v215_v17 = vld [vmem:[#allocation5 + $0x68] sm:$0xff]  ;;  %v369_v18 = vld [vmem:[#allocation7 + $0x60] sm:$0xff]  ;;  %v233_v21 = vld [vmem:[#allocation5 + $0xf8] sm:$0xff]  ;;  %2373 = vst [vmem:[#allocation14_spill] sm:$0xff] %v1834_v60  ;;  %vm522_vm2 = vcmp.eq.s32.totalorder %v1821_v51, %v1834_v60  ;;  %vm523_vm3 = vcmp.eq.s32.totalorder %v1826_v57, %v1834_v60 }
  0x78   : > { %v370_v19 = vld [vmem:[#allocation7 + $0x68] sm:$0xff]  ;;  %v387_v22 = vld [vmem:[#allocation7 + $0xf0] sm:$0xff]  ;;  %v388_v23 = vld [vmem:[#allocation7 + $0xf8] sm:$0xff]  ;;  %v1225_v24 = vpack.c.bf16 %v215_v17, %v214_v16  ;;  %v1227_v26 = vpack.c.bf16 %v233_v21, %v232_v20 }
  0x79   : > { %1210 = vmatpush3.bf16.xpose.msra.mxu0 %v1209_v38  ;;  %v1257_v25 = vpack.c.bf16 %v370_v19, %v369_v18  ;;  %v1259_v27 = vpack.c.bf16 %v388_v23, %v387_v22  ;;  %v216_v28 = vld [vmem:[#allocation5 + $0x70] sm:$0xff]  ;;  %v217_v29 = vld [vmem:[#allocation5 + $0x78] sm:$0xff]  ;;  %v194_v34 = vld [vmem:[%s1791_s27 + $0x8] sm:$0xff] }
  0x7a   : > { %1242 = vmatpush3.bf16.xpose.msra.mxu1 %v1241_v39  ;;  %1212 = vmatprep.subr.bf16.mxu0 %v1211_v40  ;;  %v371_v30 = vld [vmem:[#allocation7 + $0x70] sm:$0xff]  ;;  %v372_v31 = vld [vmem:[#allocation7 + $0x78] sm:$0xff]  ;;  %v1229_v32 = vpack.c.bf16 %v217_v29, %v216_v28  ;;  %v349_v35 = vld [vmem:[%s1797_s4 + $0x8] sm:$0xff] }
  0x7b   : > { %1244 = vmatprep.subr.bf16.mxu1 %v1243_v41  ;;  %v1261_v33 = vpack.c.bf16 %v372_v31, %v371_v30  ;;  %v195_v36 = vld [vmem:[%s1791_s27 + $0x10] sm:$0xff]  ;;  %v196_v38 = vld [vmem:[%s1791_s27 + $0x18] sm:$0xff]  ;;  %v1091_v40 = vld [vmem:[%s1791_s27 + $0x80] sm:$0xff]  ;;  %v548_v31 = vadd.s32 128, %v1834_v60 }
  0x7c   : > { %v350_v37 = vld [vmem:[%s1797_s4 + $0x10] sm:$0xff]  ;;  %v351_v39 = vld [vmem:[%s1797_s4 + $0x18] sm:$0xff]  ;;  %v1096_v41 = vld [vmem:[%s1797_s4 + $0x80] sm:$0xff] }
  0x7d   : > { %v1092_v42 = vld [vmem:[%s1791_s27 + $0x88] sm:$0xff]  ;;  %v1093_v44 = vld [vmem:[%s1791_s27 + $0x90] sm:$0xff]  ;;  %v1099_v47 = vld [vmem:[%s1797_s4 + $0x98] sm:$0xff]  ;;  %vm553_vm10 = vcmp.eq.s32.totalorder %v1821_v51, %v548_v31  ;;  %vm554_vm11 = vcmp.eq.s32.totalorder %v1826_v57, %v548_v31 }
  0x7e   : > { %v1097_v43 = vld [vmem:[%s1797_s4 + $0x88] sm:$0xff] }
  0x81   : > { %1214 = vmatpush3.bf16.xpose.msra.mxu0 %v1213_v52  ;;  %v531_v52 = vsub.s32 0, %v503_v49 }
  0x82   : > { %1246 = vmatpush3.bf16.xpose.msra.mxu1 %v1245_v53  ;;  %1216 = vmatprep.subr.bf16.mxu0 %v1215_v54  ;;  %v1823_v53 = vadd.s32 %v507_v50, %v503_v49  ;;  %v519_v54 = vld [vmem:[#allocation2] sm:$0x3] }
  0x83   : > { %1248 = vmatprep.subr.bf16.mxu1 %v1247_v55  ;;  %v535_v55 = vsub.s32 1, %v503_v49  ;;  %v1828_v58 = vrot.slane %v519_v54, %v531_v52 }
  0x84   : > { %2372 = vst [vmem:[#allocation13_spill] sm:$0xff] %v1823_v53  ;;  %vm520_vm0 = vcmp.eq.s32.totalorder %v1821_v51, %v1823_v53  ;;  %vm521_vm1 = vcmp.eq.s32.totalorder %v1826_v57, %v1823_v53  ;;  %v547_v21 = vadd.s32 128, %v1823_v53 }
  0x85   : > { %v1832_v59 = vrot.slane %v519_v54, %v535_v55  ;;  %v539_v62 = vsel %vm520_vm0, -1e+09, %v1828_v58  ;;  %v1851_v8 = vsel %vm522_vm2, -1e+09, %v1828_v58 }
  0x86   : > { %vm551_vm8 = vcmp.eq.s32.totalorder %v1821_v51, %v547_v21  ;;  %vm552_vm9 = vcmp.eq.s32.totalorder %v1826_v57, %v547_v21 }
  0x87   : > { %v1856_v10 = vsel %vm523_vm3, -1e+09, %v1832_v59  ;;  %v562_v55 = vsel %vm554_vm11, -1e+09, %v1832_v59 }
  0x89   : > { %1218 = vmatpush3.bf16.xpose.msra.mxu0 %v1217_v0  ;;  %v540_v0 = vsel %vm521_vm1, -1e+09, %v1832_v59  ;;  %vm755_vm1 = vcmask 7168  }
  0x8a   : > { %1250 = vmatpush3.bf16.xpose.msra.mxu1 %v1249_v1  ;;  %1220 = vmatprep.subr.bf16.mxu0 %v1219_v2  ;;  %v1842_v1 = vadd.s32 %v507_v50, %v505_v61  ;;  %v506_v2 = vadd.s32 24, %v503_v49 }
  0x8b   : > { %1252 = vmatprep.subr.bf16.mxu1 %v1251_v3 }
  0x8c   : > { %2374 = vst [vmem:[#allocation15_spill] sm:$0xff] %v1842_v1  ;;  %vm524_vm4 = vcmp.eq.s32.totalorder %v1821_v51, %v1842_v1  ;;  %v1860_v11 = vadd.s32 %v507_v50, %v506_v2  ;;  %vm525_vm5 = vcmp.eq.s32.totalorder %v1826_v57, %v1842_v1  ;;  %v561_v50 = vsel %vm553_vm10, -1e+09, %v1828_v58 }
  0x8d   : > { %v1875_v18 = vsel %vm524_vm4, -1e+09, %v1828_v58  ;;  %v544_v20 = vsel %vm525_vm5, -1e+09, %v1832_v59 }
  0x8e   : > { %2375 = vst [vmem:[#allocation16_spill] sm:$0xff] %v1860_v11  ;;  %vm526_vm6 = vcmp.eq.s32.totalorder %v1821_v51, %v1860_v11  ;;  %vm527_vm7 = vcmp.eq.s32.totalorder %v1826_v57, %v1860_v11  ;;  %v550_v56 = vadd.s32 128, %v1860_v11 }
  0x8f   : > { %v1891_v28 = vsel %vm526_vm6, -1e+09, %v1828_v58  ;;  %v1896_v30 = vsel %vm527_vm7, -1e+09, %v1832_v59 }
  0x90   : > { %vm557_vm14 = vcmp.eq.s32.totalorder %v1821_v51, %v550_v56  ;;  %vm558_vm15 = vcmp.eq.s32.totalorder %v1826_v57, %v550_v56 }
  0x91   : > { %1222 = vmatpush3.bf16.xpose.msra.mxu0 %v1221_v12 }
  0x92   : > { %1254 = vmatpush3.bf16.xpose.msra.mxu1 %v1253_v13  ;;  %1224 = vmatprep.subr.bf16.mxu0 %v1223_v14 }
  0x93   : > { %1256 = vmatprep.subr.bf16.mxu1 %v1255_v15 }
  0x99   : > { %1226 = vmatpush3.bf16.xpose.msra.mxu0 %v1225_v24 }
  0x9a   : > { %1258 = vmatpush3.bf16.xpose.msra.mxu1 %v1257_v25  ;;  %1228 = vmatprep.subr.bf16.mxu0 %v1227_v26 }
  0x9b   : > { %1260 = vmatprep.subr.bf16.mxu1 %v1259_v27 }
  0xa1   : > { %1230 = vmatpush3.bf16.xpose.msra.mxu0 %v1229_v32 }
  0xa2   : > { %1262 = vmatpush3.bf16.xpose.msra.mxu1 %v1261_v33 }
  0xa8   : > { %1136 = vmatmul.mubr.f32.vlgmr.msra.gmra.mrb[0].mxu0 %v1794_v45  ;;  %v1098_v45 = vld [vmem:[%s1797_s4 + $0x90] sm:$0xff] }
  0xa9   : > { %1184 = vmatmul.mubr.f32.vlgmr.msra.gmra.mrb[0].mxu1 %v1800_v46  ;;  %1137 = vmatprep.mubr.f32.mxu0 %v194_v34  ;;  %v1094_v46 = vld [vmem:[%s1791_s27 + $0x98] sm:$0xff] }
  0xaa   : > { %1185 = vmatprep.mubr.f32.mxu1 %v349_v35 }
  0xac   : > { %1138 = vmatmul.mubr.f32.gmra.mrb[2].mxu0 %v194_v34 }
  0xad   : > { %1186 = vmatmul.mubr.f32.gmra.mrb[2].mxu1 %v349_v35  ;;  %1139 = vmatprep.mubr.f32.mxu0 %v195_v36 }
  0xae   : > { %1187 = vmatprep.mubr.f32.mxu1 %v350_v37 }
  0xb0   : > { %1140 = vmatmul.mubr.f32.gmra.mrb[4].mxu0 %v195_v36 }
  0xb1   : > { %1188 = vmatmul.mubr.f32.gmra.mrb[4].mxu1 %v350_v37  ;;  %1141 = vmatprep.mubr.f32.mxu0 %v196_v38 }
  0xb2   : > { %1189 = vmatprep.mubr.f32.mxu1 %v351_v39 }
  0xb4   : > { %1142 = vmatmul.mubr.f32.gmra.mrb[6].mxu0 %v196_v38  ;;  %v559_v38 = vsel %vm551_vm8, -1e+09, %v1828_v58 }
  0xb5   : > { %1190 = vmatmul.mubr.f32.gmra.mrb[6].mxu1 %v351_v39  ;;  %1143 = vmatprep.mubr.f32.mxu0 %v1091_v40 }
  0xb6   : > { %1191 = vmatprep.mubr.f32.mxu1 %v1096_v41 }
  0xb8   : > { %1144 = vmatmul.mubr.f32.gmra.mrb[8].mxu0 %v1091_v40  ;;  %v560_v40 = vsel %vm552_vm9, -1e+09, %v1832_v59 }
  0xb9   : > { %1192 = vmatmul.mubr.f32.gmra.mrb[8].mxu1 %v1096_v41  ;;  %1145 = vmatprep.mubr.f32.mxu0 %v1092_v42  ;;  %v549_v41 = vadd.s32 128, %v1842_v1 }
  0xba   : > { %1193 = vmatprep.mubr.f32.mxu1 %v1097_v43 }
  0xbb   : > { %vm555_vm12 = vcmp.eq.s32.totalorder %v1821_v51, %v549_v41  ;;  %vm556_vm13 = vcmp.eq.s32.totalorder %v1826_v57, %v549_v41 }
  0xbc   : > { %1146 = vmatmul.mubr.f32.gmra.mrb[10].mxu0 %v1092_v42  ;;  %v564_v21 = vsel %vm556_vm13, -1e+09, %v1832_v59 }
  0xbd   : > { %1194 = vmatmul.mubr.f32.gmra.mrb[10].mxu1 %v1097_v43  ;;  %1147 = vmatprep.mubr.f32.mxu0 %v1093_v44 }
  0xbe   : > { %1195 = vmatprep.mubr.f32.mxu1 %v1098_v45 }
  0xc0   : > { %1148 = vmatmul.mubr.f32.gmra.mrb[12].mxu0 %v1093_v44 }
  0xc1   : > { %1196 = vmatmul.mubr.f32.gmra.mrb[12].mxu1 %v1098_v45  ;;  %1149 = vmatprep.mubr.f32.mxu0 %v1094_v46 }
  0xc2   : > { %1197 = vmatprep.mubr.f32.mxu1 %v1099_v47 }
  0xc4   : > { %1150 = vmatmul.mubr.f32.gmra.mrb[14].mxu0 %v1094_v46 }
  0xc5   : > { %1198 = vmatmul.mubr.f32.gmra.mrb[14].mxu1 %v1099_v47 }
 0x17b   : > { %v300_v63 = vpop.f32.mrb[0].mxu0 }
 0x17c   : > { %v455_v3 = vpop.f32.mrb[0].mxu1  ;;  %v302_v4 = vpop.f32.mrb[1].mxu0  ;;  %v1913_v42 = vadd.f32 %v539_v62, %v300_v63 }
 0x17d   : > { %v1846_v5 = vadd.f32 %v539_v62, %v455_v3  ;;  %v457_v6 = vpop.f32.mrb[1].mxu1  ;;  %v1915_v43 = vadd.f32 %v540_v0, %v302_v4 }
 0x17e   : > { %v1848_v7 = vadd.f32 %v540_v0, %v457_v6 }
 0x17f   : > { %v1853_v9 = vpop.f32.mrb[2].mxu0  ;;  %v583_v52 = vmax.f32 %v1913_v42, %v1915_v43 }
 0x180   : > { %v461_v12 = vpop.f32.mrb[2].mxu1  ;;  %v1862_v13 = vpop.f32.mrb[3].mxu0  ;;  %v595_v14 = vmax.f32 %v1846_v5, %v1848_v7 }
 0x181   : > { %v1869_v15 = vadd.f32 %v1851_v8, %v461_v12  ;;  %v463_v16 = vpop.f32.mrb[3].mxu1  ;;  %v563_v12 = vsel %vm555_vm12, -1e+09, %v1828_v58 }
 0x182   : > { %v1872_v17 = vadd.f32 %v1856_v10, %v463_v16  ;;  %596 = vmax.xlane.f32.xlu0 %v595_v14 }
 0x183   : > { %v312_v19 = vpop.f32.mrb[4].mxu0 }
 0x184   : > { %v467_v22 = vpop.f32.mrb[4].mxu1  ;;  %v314_v23 = vpop.f32.mrb[5].mxu0  ;;  %v598_v24 = vmax.f32 %v1869_v15, %v1872_v17 }
 0x185   : > { %v1886_v25 = vadd.f32 %v1875_v18, %v467_v22  ;;  %v469_v26 = vpop.f32.mrb[5].mxu1  ;;  %v1947_v22 = vadd.f32 %v1875_v18, %v312_v19 }
 0x186   : > { %v1888_v27 = vadd.f32 %v544_v20, %v469_v26  ;;  %599 = vmax.xlane.f32.xlu0 %v598_v24  ;;  %v1949_v24 = vadd.f32 %v544_v20, %v314_v23  ;;  %v566_v20 = vsel %vm558_vm15, -1e+09, %v1832_v59 }
 0x187   : > { %v1893_v29 = vpop.f32.mrb[6].mxu0 }
 0x188   : > { %v473_v32 = vpop.f32.mrb[6].mxu1  ;;  %v320_v33 = vpop.f32.mrb[7].mxu0  ;;  %v601_v34 = vmax.f32 %v1886_v25, %v1888_v27  ;;  %v589_v18 = vmax.f32 %v1947_v22, %v1949_v24  ;;  %v1964_v23 = vadd.f32 %v1891_v28, %v1893_v29  ;;  %v1983_v29 = vadd.f32 %v1856_v10, %v1862_v13 }
 0x189   : > { %v1904_v35 = vadd.f32 %v1891_v28, %v473_v32  ;;  %v475_v36 = vpop.f32.mrb[7].mxu1  ;;  %v1967_v57 = vadd.f32 %v1896_v30, %v320_v33  ;;  %v1979_v28 = vadd.f32 %v1851_v8, %v1853_v9 }
 0x18a   : > { %v1907_v37 = vadd.f32 %v1896_v30, %v475_v36  ;;  %602 = vmax.xlane.f32.xlu0 %v601_v34 }
 0x18b   : > { %v324_v39 = vpop.f32.mrb[8].mxu0  ;;  %v592_v59 = vmax.f32 %v1964_v23, %v1967_v57  ;;  %v586_v33 = vmax.f32 %v1979_v28, %v1983_v29 }
 0x18c   : > { %v479_v44 = vpop.f32.mrb[8].mxu1  ;;  %v326_v45 = vpop.f32.mrb[9].mxu0  ;;  %v604_v46 = vmax.f32 %v1904_v35, %v1907_v37  ;;  %v1930_v61 = vadd.f32 %v559_v38, %v324_v39  ;;  %v565_v39 = vsel %vm557_vm14, -1e+09, %v1828_v58 }
 0x18d   : > { %v1920_v47 = vadd.f32 %v559_v38, %v479_v44  ;;  %v481_v48 = vpop.f32.mrb[9].mxu1  ;;  %v1932_v62 = vadd.f32 %v560_v40, %v326_v45 }
 0x18e   : > { %v1922_v49 = vadd.f32 %v560_v40, %v481_v48  ;;  %605 = vmax.xlane.f32.xlu0 %v604_v46 }
 0x18f   : > { %v330_v54 = vpop.f32.mrb[10].mxu0  ;;  %v788_v14 = vmax.f32 %v1930_v61, %v1932_v62 }
 0x190   : > { %v485_v63 = vpop.f32.mrb[10].mxu1  ;;  %v332_v0 = vpop.f32.mrb[11].mxu0  ;;  %v800_v2 = vmax.f32 %v1920_v47, %v1922_v49  ;;  %v1989_v48 = vadd.f32 %v561_v50, %v330_v54 }
 0x191   : > { %v1937_v3 = vadd.f32 %v561_v50, %v485_v63  ;;  %v487_v4 = vpop.f32.mrb[11].mxu1 }
 0x192   : > { %v1939_v6 = vadd.f32 %v562_v55, %v487_v4  ;;  %801 = vmax.xlane.f32.xlu1 %v800_v2  ;;  %584 = vmax.xlane.f32.xlu0 %v583_v52  ;;  %v1991_v52 = vadd.f32 %v562_v55, %v332_v0 }
 0x193   : > { %v336_v16 = vpop.f32.mrb[12].mxu0 }
 0x194   : > { %v491_v26 = vpop.f32.mrb[12].mxu1  ;;  %v338_v31 = vpop.f32.mrb[13].mxu0  ;;  %v803_v32 = vmax.f32 %v1937_v3, %v1939_v6  ;;  %v791_v8 = vmax.f32 %v1989_v48, %v1991_v52  ;;  %v1995_v9 = vadd.f32 %v563_v12, %v336_v16 }
 0x195   : > { %v1954_v34 = vadd.f32 %v563_v12, %v491_v26  ;;  %v493_v36 = vpop.f32.mrb[13].mxu1  ;;  %v1997_v10 = vadd.f32 %v564_v21, %v338_v31 }
 0x196   : > { %v1956_v38 = vadd.f32 %v564_v21, %v493_v36  ;;  %804 = vmax.xlane.f32.xlu1 %v803_v32  ;;  %789 = vmax.xlane.f32.xlu0 %v788_v14 }
 0x197   : > { %v342_v19 = vpop.f32.mrb[14].mxu0  ;;  %v794_v13 = vmax.f32 %v1995_v9, %v1997_v10 }
 0x198   : > { %v497_v40 = vpop.f32.mrb[14].mxu1  ;;  %v344_v41 = vpop.f32.mrb[15].mxu0  ;;  %v806_v44 = vmax.f32 %v1954_v34, %v1956_v38  ;;  %v2001_v56 = vadd.f32 %v565_v39, %v342_v19 }
 0x199   : > { %v1971_v45 = vadd.f32 %v565_v39, %v497_v40  ;;  %v499_v58 = vpop.f32.mrb[15].mxu1  ;;  %v2003_v63 = vadd.f32 %v566_v20, %v344_v41 }
 0x19a   : > { %v1973_v46 = vadd.f32 %v566_v20, %v499_v58  ;;  %807 = vmax.xlane.f32.xlu1 %v806_v44  ;;  %590 = vmax.xlane.f32.xlu0 %v589_v18 }
 0x19b   : > { %2377 = vst [vmem:[#allocation18_spill] sm:$0xff] %v2003_v63  ;;  %v797_v50 = vmax.f32 %v2001_v56, %v2003_v63 }
 0x19c   : > { %2376 = vst [vmem:[#allocation17_spill] sm:$0xff] %v1973_v46  ;;  %v809_v30 = vmax.f32 %v1971_v45, %v1973_v46 }
 0x19e   : > { %810 = vmax.xlane.f32.xlu1 %v809_v30  ;;  %593 = vmax.xlane.f32.xlu0 %v592_v59 }
 0x1a2   : > { %587 = vmax.xlane.f32.xlu1 %v586_v33 }
 0x1a6   : > { %792 = vmax.xlane.f32.xlu1 %v791_v8 }
 0x1aa   : > { %795 = vmax.xlane.f32.xlu1 %v794_v13 }
 0x1ae   : > { %798 = vmax.xlane.f32.xlu1 %v797_v50 }
 0x20f   : > { %v2007_v54 = vpop.xlane.xlu0 %596 }
 0x210   : > { %2378 = vst [vmem:[#allocation19_spill] sm:$0xff] %v2007_v54  ;;  %v643_v55 = vsub.f32 %v1846_v5, %v2007_v54  ;;  %v644_v0 = vsub.f32 %v1848_v7, %v2007_v54 }
 0x212   : > { %v651_v2 = vmul.f32 1.442695, %v643_v55  ;;  %v653_v4 = vmul.f32 1.442695, %v644_v0 }
 0x213   : > { %v2013_v12 = vpop.xlane.xlu0 %599 }
 0x214   : > { %2379 = vst [vmem:[#allocation20_spill] sm:$0xff] %v2013_v12  ;;  %1339 = vpow2.f32 %v651_v2  ;;  %v645_v14 = vsub.f32 %v1869_v15, %v2013_v12  ;;  %v646_v16 = vsub.f32 %v1872_v17, %v2013_v12 }
 0x215   : > { %1341 = vpow2.f32 %v653_v4 }
 0x216   : > { %v655_v21 = vmul.f32 1.442695, %v645_v14  ;;  %v657_v26 = vmul.f32 1.442695, %v646_v16 }
 0x217   : > { %v2019_v31 = vpop.xlane.xlu0 %602 }
 0x218   : > { %2380 = vst [vmem:[#allocation21_spill] sm:$0xff] %v2019_v31  ;;  %1343 = vpow2.f32 %v655_v21  ;;  %v647_v32 = vsub.f32 %v1886_v25, %v2019_v31  ;;  %v648_v36 = vsub.f32 %v1888_v27, %v2019_v31 }
 0x219   : > { %1345 = vpow2.f32 %v657_v26 }
 0x21a   : > { %v659_v39 = vmul.f32 1.442695, %v647_v32  ;;  %v661_v18 = vmul.f32 1.442695, %v648_v36 }
 0x21b   : > { %v2025_v19 = vpop.xlane.xlu0 %605 }
 0x21c   : > { %2381 = vst [vmem:[#allocation22_spill] sm:$0xff] %v2025_v19  ;;  %1347 = vpow2.f32 %v659_v39  ;;  %v649_v20 = vsub.f32 %v1904_v35, %v2025_v19  ;;  %v650_v40 = vsub.f32 %v1907_v37, %v2025_v19 }
 0x21d   : > { %1349 = vpow2.f32 %v661_v18 }
 0x21e   : > { %v2031_v41 = vpop.eup %1339  ;;  %v663_v44 = vmul.f32 1.442695, %v649_v20  ;;  %v665_v59 = vmul.f32 1.442695, %v650_v40 }
 0x21f   : > { %v2033_v58 = vpop.eup %1341  ;;  %v2035_v30 = vpop.xlane.xlu1 %801 }
 0x220   : > { %2382 = vst [vmem:[#allocation23_spill] sm:$0xff] %v2035_v30  ;;  %v2037_v33 = vpop.xlane.xlu0 %584  ;;  %v848_v8 = vsub.f32 %v1920_v47, %v2035_v30  ;;  %v849_v13 = vsub.f32 %v1922_v49, %v2035_v30  ;;  %v667_v55 = vadd.f32 %v2033_v58, %v2031_v41  ;;  %1351 = vpow2.f32 %v663_v44 }
 0x221   : > { %2383 = vst [vmem:[#allocation24_spill] sm:$0xff] %v2037_v33  ;;  %v607_v50 = vsub.f32 %v1913_v42, %v2037_v33  ;;  %v608_v14 = vsub.f32 %v1915_v43, %v2037_v33  ;;  %1353 = vpow2.f32 %v665_v59 }
 0x222   : > { %v2047_v0 = vpop.eup %1343  ;;  %v856_v2 = vmul.f32 1.442695, %v848_v8  ;;  %v858_v4 = vmul.f32 1.442695, %v849_v13  ;;  %668 = vadd.xlane.f32.xlu0 %v667_v55 }
 0x223   : > { %v2051_v16 = vpop.eup %1345  ;;  %v615_v21 = vmul.f32 1.442695, %v607_v50  ;;  %v2053_v26 = vpop.xlane.xlu1 %804  ;;  %v617_v44 = vmul.f32 1.442695, %v608_v14 }
 0x224   : > { %2384 = vst [vmem:[#allocation25_spill] sm:$0xff] %v2053_v26  ;;  %v2055_v32 = vpop.xlane.xlu0 %789  ;;  %1355 = vpow2.f32 %v856_v2  ;;  %v850_v36 = vsub.f32 %v1937_v3, %v2053_v26  ;;  %v851_v39 = vsub.f32 %v1939_v6, %v2053_v26  ;;  %v670_v20 = vadd.f32 %v2051_v16, %v2047_v0 }
 0x225   : > { %2385 = vst [vmem:[#allocation26_spill] sm:$0xff] %v2055_v32  ;;  %v812_v18 = vsub.f32 %v1930_v61, %v2055_v32  ;;  %1357 = vpow2.f32 %v858_v4  ;;  %v813_v13 = vsub.f32 %v1932_v62, %v2055_v32 }
 0x226   : > { %v2065_v40 = vpop.eup %1347  ;;  %v860_v59 = vmul.f32 1.442695, %v850_v36  ;;  %v862_v8 = vmul.f32 1.442695, %v851_v39  ;;  %1359 = vpow2.f32 %v615_v21  ;;  %671 = vadd.xlane.f32.xlu1 %v670_v20 }
 0x227   : > { %v2069_v50 = vpop.eup %1349  ;;  %v820_v55 = vmul.f32 1.442695, %v812_v18  ;;  %v2071_v2 = vpop.xlane.xlu1 %807  ;;  %v822_v39 = vmul.f32 1.442695, %v813_v13 }
 0x228   : > { %2386 = vst [vmem:[#allocation27_spill] sm:$0xff] %v2071_v2  ;;  %v2073_v51 = vpop.xlane.xlu0 %590  ;;  %1361 = vpow2.f32 %v860_v59  ;;  %v852_v4 = vsub.f32 %v1954_v34, %v2071_v2  ;;  %v853_v14 = vsub.f32 %v1956_v38, %v2071_v2  ;;  %v673_v21 = vadd.f32 %v2069_v50, %v2065_v40 }
 0x229   : > { %2387 = vst [vmem:[#allocation28_spill] sm:$0xff] %v2073_v51  ;;  %1363 = vpow2.f32 %v862_v8  ;;  %v611_v36 = vsub.f32 %v1947_v22, %v2073_v51  ;;  %v612_v59 = vsub.f32 %v1949_v24, %v2073_v51 }
 0x22a   : > { %1365 = vpow2.f32 %v617_v44  ;;  %v864_v18 = vmul.f32 1.442695, %v852_v4  ;;  %v866_v20 = vmul.f32 1.442695, %v853_v14  ;;  %674 = vadd.xlane.f32.xlu0 %v673_v21  ;;  %v2089_v8 = vpop.eup %1351 }
 0x22b   : > { %1367 = vpow2.f32 %v820_v55  ;;  %v2085_v26 = vpop.xlane.xlu1 %810  ;;  %v2095_v13 = vpop.eup %1353  ;;  %v623_v55 = vmul.f32 1.442695, %v611_v36 }
 0x22c   : > { %2388 = vst [vmem:[#allocation29_spill] sm:$0xff] %v2085_v26  ;;  %v2087_v11 = vpop.xlane.xlu0 %593  ;;  %1369 = vpow2.f32 %v864_v18  ;;  %v854_v2 = vsub.f32 %v1971_v45, %v2085_v26  ;;  %v855_v44 = vsub.f32 %v1973_v46, %v2085_v26  ;;  %v625_v18 = vmul.f32 1.442695, %v612_v59 }
 0x22d   : > { %2389 = vst [vmem:[#allocation30_spill] sm:$0xff] %v2087_v11  ;;  %1371 = vpow2.f32 %v866_v20  ;;  %v613_v19 = vsub.f32 %v1964_v23, %v2087_v11  ;;  %v614_v32 = vsub.f32 %v1967_v57, %v2087_v11  ;;  %v676_v51 = vadd.f32 %v2095_v13, %v2089_v8 }
 0x22e   : > { %v2097_v4 = vpop.eup %1355  ;;  %1373 = vpow2.f32 %v822_v39  ;;  %v868_v14 = vmul.f32 1.442695, %v854_v2  ;;  %v870_v21 = vmul.f32 1.442695, %v855_v44 }
 0x22f   : > { %v2101_v30 = vpop.eup %1357  ;;  %v2105_v1 = vpop.xlane.xlu1 %587  ;;  %v627_v59 = vmul.f32 1.442695, %v613_v19 }
 0x230   : > { %2390 = vst [vmem:[#allocation31_spill] sm:$0xff] %v2105_v1  ;;  %1375 = vpow2.f32 %v868_v14  ;;  %v609_v36 = vsub.f32 %v1979_v28, %v2105_v1  ;;  %v610_v39 = vsub.f32 %v1983_v29, %v2105_v1  ;;  %v872_v2 = vadd.f32 %v2101_v30, %v2097_v4  ;;  %v1360_v20 = vpop.eup %1359 }
 0x231   : > { %1377 = vpow2.f32 %v870_v21  ;;  %v629_v14 = vmul.f32 1.442695, %v614_v32 }
 0x232   : > { %v2113_v44 = vpop.eup %1361  ;;  %1379 = vpow2.f32 %v623_v55  ;;  %v619_v26 = vmul.f32 1.442695, %v609_v36  ;;  %v621_v11 = vmul.f32 1.442695, %v610_v39  ;;  %873 = vadd.xlane.f32.xlu0 %v872_v2 }
 0x233   : > { %v2115_v31 = vpop.eup %1363  ;;  %1381 = vpow2.f32 %v625_v18  ;;  %v2117_v60 = vpop.xlane.xlu1 %792 }
 0x234   : > { %2391 = vst [vmem:[#allocation32_spill] sm:$0xff] %v2117_v60  ;;  %v1366_v53 = vpop.eup %1365  ;;  %1383 = vpow2.f32 %v619_v26  ;;  %v814_v21 = vsub.f32 %v1989_v48, %v2117_v60  ;;  %v815_v19 = vsub.f32 %v1991_v52, %v2117_v60  ;;  %v875_v55 = vadd.f32 %v2115_v31, %v2113_v44 }
 0x235   : > { %v1368_v36 = vpop.eup %1367  ;;  %1385 = vpow2.f32 %v621_v11  ;;  %v631_v12 = vadd.f32 %v1366_v53, %v1360_v20 }
 0x236   : > { %v2127_v18 = vpop.eup %1369  ;;  %1387 = vpow2.f32 %v627_v59  ;;  %v824_v32 = vmul.f32 1.442695, %v814_v21  ;;  %v826_v39 = vmul.f32 1.442695, %v815_v19  ;;  %677 = vadd.xlane.f32.xlu0 %v676_v51  ;;  %876 = vadd.xlane.f32.xlu1 %v875_v55 }
 0x237   : > { %v2129_v2 = vpop.eup %1371  ;;  %1389 = vpow2.f32 %v629_v14  ;;  %v2131_v26 = vpop.xlane.xlu1 %795 }
 0x238   : > { %2392 = vst [vmem:[#allocation33_spill] sm:$0xff] %v2131_v26  ;;  %v1374_v1 = vpop.eup %1373  ;;  %1391 = vpow2.f32 %v824_v32  ;;  %v816_v60 = vsub.f32 %v1995_v9, %v2131_v26  ;;  %v817_v11 = vsub.f32 %v1997_v10, %v2131_v26  ;;  %v878_v59 = vadd.f32 %v2129_v2, %v2127_v18 }
 0x239   : > { %1393 = vpow2.f32 %v826_v39  ;;  %v836_v20 = vadd.f32 %v1374_v1, %v1368_v36 }
 0x23a   : > { %v2139_v51 = vpop.eup %1375  ;;  %v828_v21 = vmul.f32 1.442695, %v816_v60  ;;  %v830_v19 = vmul.f32 1.442695, %v817_v11  ;;  %632 = vadd.xlane.f32.xlu0 %v631_v12  ;;  %879 = vadd.xlane.f32.xlu1 %v878_v59 }
 0x23b   : > { %2393 = vst [vmem:[#allocation34_spill] sm:$0xff] %v2139_v51  ;;  %v2141_v14 = vpop.eup %1377  ;;  %v2143_v53 = vpop.xlane.xlu1 %798 }
 0x23c   : > { %2394 = vst [vmem:[#allocation35_spill] sm:$0xff] %v2141_v14  ;;  %2395 = vst [vmem:[#allocation36_spill] sm:$0xff] %v2143_v53  ;;  %v1380_v55 = vpop.eup %1379  ;;  %1395 = vpow2.f32 %v828_v21  ;;  %v818_v32 = vsub.f32 %v2001_v56, %v2143_v53  ;;  %v819_v26 = vsub.f32 %v2003_v63, %v2143_v53  ;;  %v881_v39 = vadd.f32 %v2141_v14, %v2139_v51 }
 0x23d   : > { %v1382_v60 = vpop.eup %1381  ;;  %1397 = vpow2.f32 %v830_v19 }
 0x23e   : > { %v1384_v12 = vpop.eup %1383  ;;  %v832_v11 = vmul.f32 1.442695, %v818_v32  ;;  %v834_v59 = vmul.f32 1.442695, %v819_v26  ;;  %837 = vadd.xlane.f32.xlu0 %v836_v20  ;;  %882 = vadd.xlane.f32.xlu1 %v881_v39  ;;  %v637_v36 = vadd.f32 %v1382_v60, %v1380_v55 }
 0x23f   : > { %v1386_v54 = vpop.eup %1385 }
 0x240   : > { %v1388_v1 = vpop.eup %1387  ;;  %1399 = vpow2.f32 %v832_v11  ;;  %v634_v21 = vadd.f32 %v1386_v54, %v1384_v12 }
 0x241   : > { %v1390_v33 = vpop.eup %1389  ;;  %1401 = vpow2.f32 %v834_v59 }
 0x242   : > { %v1392_v46 = vpop.eup %1391  ;;  %638 = vadd.xlane.f32.xlu0 %v637_v36  ;;  %635 = vadd.xlane.f32.xlu1 %v634_v21  ;;  %v640_v63 = vadd.f32 %v1390_v33, %v1388_v1  ;;  %v717_v1 = vsub.f32 %v1869_v15, %v1979_v28  ;;  %v718_v36 = vsub.f32 %v1872_v17, %v1983_v29 }
 0x243   : > { %v1394_v53 = vpop.eup %1393  ;;  %v719_v15 = vsub.f32 %v1886_v25, %v1947_v22  ;;  %v720_v17 = vsub.f32 %v1888_v27, %v1949_v24  ;;  %v920_v22 = vsub.f32 %v1920_v47, %v1930_v61  ;;  %v921_v24 = vsub.f32 %v1922_v49, %v1932_v62 }
 0x244   : > { %v839_v14 = vadd.f32 %v1394_v53, %v1392_v46  ;;  %v922_v62 = vsub.f32 %v1937_v3, %v1989_v48 }
 0x246   : > { %v1396_v51 = vpop.eup %1395  ;;  %641 = vadd.xlane.f32.xlu0 %v640_v63  ;;  %840 = vadd.xlane.f32.xlu1 %v839_v14  ;;  %v715_v63 = vsub.f32 %v1846_v5, %v1913_v42 }
 0x247   : > { %v1398_v19 = vpop.eup %1397 }
 0x248   : > { %v842_v26 = vadd.f32 %v1398_v19, %v1396_v51  ;;  %v716_v51 = vsub.f32 %v1848_v7, %v1915_v43 }
 0x24a   : > { %v1400_v20 = vpop.eup %1399  ;;  %843 = vadd.xlane.f32.xlu1 %v842_v26 }
 0x24b   : > { %v1402_v32 = vpop.eup %1401 }
 0x24c   : > { %v845_v39 = vadd.f32 %v1402_v32, %v1400_v20 }
 0x24e   : > { %846 = vadd.xlane.f32.xlu1 %v845_v39 }
 0x2af   : > { %v2151_v55 = vpop.xlane.xlu0 %668 }
 0x2b0   : > { %1403 = vrcp.f32 %v2151_v55 }
 0x2b3   : > { %v2154_v54 = vpop.xlane.xlu1 %671 }
 0x2b4   : > { %1405 = vrcp.f32 %v2154_v54 }
 0x2b7   : > { %v2157_v33 = vpop.xlane.xlu0 %674 }
 0x2b8   : > { %1407 = vrcp.f32 %v2157_v33 }
 0x2ba   : > { %v1404_v46 = vpop.eup %1403 }
 0x2bb   : > { %v707_v14 = vmul.f32 %v1404_v46, %v2031_v41  ;;  %v708_v53 = vmul.f32 %v1404_v46, %v2033_v58 }
 0x2bd   : > { %v723_v12 = vmul.f32 %v715_v63, %v707_v14  ;;  %v724_v11 = vmul.f32 %v716_v51, %v708_v53  ;;  %v721_v51 = vsub.f32 %v1904_v35, %v1964_v23  ;;  %v722_v14 = vsub.f32 %v1907_v37, %v1967_v57 }
 0x2be   : > { %v1406_v59 = vpop.eup %1405  ;;  %v923_v35 = vsub.f32 %v1939_v6, %v1991_v52  ;;  %v924_v23 = vsub.f32 %v1954_v34, %v1995_v9  ;;  %v926_v6 = vsub.f32 %v1971_v45, %v2001_v56  ;;  %v2396_v52 = vld [vmem:[#allocation18_spill] sm:$0xff]  ;;  %v2397_v34 = vld [vmem:[#allocation17_spill] sm:$0xff] }
 0x2bf   : > { %v2166_v60 = vpop.xlane.xlu0 %873  ;;  %v731_v5 = vadd.f32 %v724_v11, %v723_v12  ;;  %v709_v7 = vmul.f32 %v1406_v59, %v2047_v0  ;;  %v710_v42 = vmul.f32 %v1406_v59, %v2051_v16  ;;  %v927_v9 = vsub.f32 %v2397_v34, %v2396_v52 }
 0x2c0   : > { %1409 = vrcp.f32 %v2166_v60 }
 0x2c1   : > { %732 = vadd.xlane.f32.xlu0 %v731_v5  ;;  %v725_v58 = vmul.f32 %v717_v1, %v709_v7  ;;  %v726_v21 = vmul.f32 %v718_v36, %v710_v42  ;;  %v2398_v7 = vld [vmem:[#allocation34_spill] sm:$0xff] }
 0x2c2   : > { %v1408_v19 = vpop.eup %1407 }
 0x2c3   : > { %v2175_v43 = vpop.xlane.xlu0 %677  ;;  %v2177_v41 = vpop.xlane.xlu1 %876  ;;  %v734_v28 = vadd.f32 %v726_v21, %v725_v58  ;;  %v711_v29 = vmul.f32 %v1408_v19, %v2065_v40  ;;  %v712_v0 = vmul.f32 %v1408_v19, %v2069_v50 }
 0x2c4   : > { %1411 = vrcp.f32 %v2175_v43 }
 0x2c5   : > { %1413 = vrcp.f32 %v2177_v41  ;;  %735 = vadd.xlane.f32.xlu1 %v734_v28  ;;  %v727_v26 = vmul.f32 %v719_v15, %v711_v29  ;;  %v728_v20 = vmul.f32 %v720_v17, %v712_v0 }
 0x2c7   : > { %v2187_v16 = vpop.xlane.xlu1 %879  ;;  %v737_v32 = vadd.f32 %v728_v20, %v727_v26  ;;  %v633_v21 = vpop.xlane.xlu0 %632 }
 0x2c8   : > { %1415 = vrcp.f32 %v2187_v16 }
 0x2c9   : > { %738 = vadd.xlane.f32.xlu0 %v737_v32 }
 0x2ca   : > { %v1410_v25 = vpop.eup %1409 }
 0x2cb   : > { %v2190_v27 = vpop.xlane.xlu1 %882  ;;  %v912_v40 = vmul.f32 %v1410_v25, %v2097_v4  ;;  %v913_v50 = vmul.f32 %v1410_v25, %v2101_v30  ;;  %v838_v19 = vpop.xlane.xlu0 %837 }
 0x2cc   : > { %1417 = vrcp.f32 %v2190_v27 }
 0x2cd   : > { %v928_v39 = vmul.f32 %v920_v22, %v912_v40  ;;  %v929_v46 = vmul.f32 %v921_v24, %v913_v50  ;;  %1419 = vlog2.f32 %v633_v21  ;;  %v2400_v24 = vld [vmem:[#allocation24_spill] sm:$0xff] }
 0x2ce   : > { %v1412_v63 = vpop.eup %1411  ;;  %1421 = vlog2.f32 %v2151_v55 }
 0x2cf   : > { %v936_v53 = vadd.f32 %v929_v46, %v928_v39  ;;  %v713_v47 = vmul.f32 %v1412_v63, %v2089_v8  ;;  %v714_v49 = vmul.f32 %v1412_v63, %v2095_v13  ;;  %v1414_v61 = vpop.eup %1413  ;;  %v925_v13 = vsub.f32 %v1956_v38, %v1997_v10  ;;  %v2399_v10 = vld [vmem:[#allocation35_spill] sm:$0xff]  ;;  %v636_v15 = vpop.xlane.xlu1 %635 }
 0x2d0   : > { %v914_v12 = vmul.f32 %v1414_v61, %v2113_v44  ;;  %v915_v11 = vmul.f32 %v1414_v61, %v2115_v31  ;;  %1423 = vlog2.f32 %v636_v15  ;;  %v639_v45 = vpop.xlane.xlu0 %638 }
 0x2d1   : > { %937 = vadd.xlane.f32.xlu0 %v936_v53  ;;  %v729_v30 = vmul.f32 %v721_v51, %v713_v47  ;;  %v730_v4 = vmul.f32 %v722_v14, %v714_v49  ;;  %1425 = vlog2.f32 %v2154_v54  ;;  %v2401_v54 = vld [vmem:[#allocation19_spill] sm:$0xff] }
 0x2d2   : > { %v1416_v37 = vpop.eup %1415  ;;  %v930_v8 = vmul.f32 %v922_v62, %v914_v12  ;;  %v931_v3 = vmul.f32 %v923_v35, %v915_v11  ;;  %1427 = vlog2.f32 %v639_v45  ;;  %v2402_v51 = vld [vmem:[#allocation31_spill] sm:$0xff]  ;;  %v2403_v62 = vld [vmem:[#allocation20_spill] sm:$0xff]  ;;  %v2410_v45 = vld [vmem:[#allocation30_spill] sm:$0xff] }
 0x2d3   : > { %v740_v57 = vadd.f32 %v730_v4, %v729_v30  ;;  %v916_v48 = vmul.f32 %v1416_v37, %v2127_v18  ;;  %v917_v59 = vmul.f32 %v1416_v37, %v2129_v2  ;;  %1429 = vlog2.f32 %v2157_v33  ;;  %v841_v17 = vpop.xlane.xlu1 %840  ;;  %v2404_v4 = vld [vmem:[#allocation13_spill] sm:$0xff]  ;;  %v2405_v11 = vld [vmem:[#allocation28_spill] sm:$0xff] }
 0x2d4   : > { %v939_v44 = vadd.f32 %v931_v3, %v930_v8  ;;  %v642_v32 = vpop.xlane.xlu0 %641  ;;  %1431 = vlog2.f32 %v838_v19  ;;  %vm512_vm0 = vcmp.lt.s32.totalorder %v2404_v4, 16  ;;  %v2419_v4 = vld [vmem:[#allocation29_spill] sm:$0xff] }
 0x2d5   : > { %741 = vadd.xlane.f32.xlu0 %v740_v57  ;;  %v932_v31 = vmul.f32 %v924_v23, %v916_v48  ;;  %v933_v1 = vmul.f32 %v925_v13, %v917_v59  ;;  %1433 = vlog2.f32 %v642_v32  ;;  %v2407_v57 = vld [vmem:[#allocation21_spill] sm:$0xff] }
 0x2d6   : > { %v1418_v36 = vpop.eup %1417  ;;  %940 = vadd.xlane.f32.xlu1 %v939_v44  ;;  %1435 = vlog2.f32 %v2166_v60 }
 0x2d7   : > { %v942_v5 = vadd.f32 %v933_v1, %v932_v31  ;;  %v918_v38 = vmul.f32 %v1418_v36, %v2398_v7  ;;  %v919_v42 = vmul.f32 %v1418_v36, %v2399_v10  ;;  %v1420_v56 = vpop.eup %1419  ;;  %v844_v25 = vpop.xlane.xlu1 %843  ;;  %1437 = vlog2.f32 %v2175_v43  ;;  %v2406_v43 = vld [vmem:[#allocation14_spill] sm:$0xff]  ;;  %v2408_v1 = vld [vmem:[#allocation15_spill] sm:$0xff] }
 0x2d8   : > { %v1422_v28 = vpop.eup %1421  ;;  %v680_v29 = vmul.f32 0.6931472, %v1420_v56  ;;  %1439 = vlog2.f32 %v841_v17  ;;  %vm513_vm2 = vcmp.lt.s32.totalorder %v2406_v43, 16  ;;  %vm514_vm3 = vcmp.lt.s32.totalorder %v2408_v1, 16 }
 0x2d9   : > { %v934_v18 = vmul.f32 %v926_v6, %v918_v38  ;;  %v935_v58 = vmul.f32 %v927_v9, %v919_v42  ;;  %v692_v26 = vmul.f32 0.6931472, %v1422_v28  ;;  %1441 = vlog2.f32 %v2177_v41 }
 0x2da   : > { %943 = vadd.xlane.f32.xlu1 %v942_v5  ;;  %v1424_v0 = vpop.eup %1423  ;;  %v687_v40 = vadd.f32 %v680_v29, %v2400_v24  ;;  %1443 = vlog2.f32 %v844_v25  ;;  %v2411_v29 = vld [vmem:[#allocation23_spill] sm:$0xff] }
 0x2db   : > { %v945_v2 = vadd.f32 %v935_v58, %v934_v18  ;;  %v1426_v20 = vpop.eup %1425  ;;  %v682_v22 = vmul.f32 0.6931472, %v1424_v0  ;;  %v699_v39 = vadd.f32 %v692_v26, %v2401_v54  ;;  %v847_v53 = vpop.xlane.xlu1 %846  ;;  %1445 = vlog2.f32 %v2187_v16  ;;  %v2412_v26 = vld [vmem:[#allocation22_spill] sm:$0xff] }
 0x2dc   : > { %v1428_v55 = vpop.eup %1427  ;;  %v694_v50 = vmul.f32 0.6931472, %v1426_v20  ;;  %1447 = vlog2.f32 %v847_v53 }
 0x2dd   : > { %v1430_v46 = vpop.eup %1429  ;;  %v684_v33 = vmul.f32 0.6931472, %v1428_v55  ;;  %v743_v63 = vsub.f32 %v687_v40, %v699_v39  ;;  %v688_v14 = vadd.f32 %v682_v22, %v2402_v51  ;;  %1449 = vlog2.f32 %v2190_v27  ;;  %v2413_v22 = vld [vmem:[#allocation32_spill] sm:$0xff] }
 0x2de   : > { %946 = vadd.xlane.f32.xlu1 %v945_v2  ;;  %v696_v49 = vmul.f32 0.6931472, %v1430_v46  ;;  %v700_v30 = vadd.f32 %v694_v50, %v2403_v62  ;;  %v1432_v13 = vpop.eup %1431  ;;  %v2409_v2 = vld [vmem:[#allocation26_spill] sm:$0xff]  ;;  %v2414_v39 = vld [vmem:[#allocation16_spill] sm:$0xff] }
 0x2df   : > { %v689_v60 = vadd.f32 %v684_v33, %v2405_v11  ;;  %v1434_v41 = vpop.eup %1433  ;;  %v885_v6 = vmul.f32 0.6931472, %v1432_v13  ;;  %vm515_vm4 = vcmp.lt.s32.totalorder %v2414_v39, 16  ;;  %v2415_v33 = vld [vmem:[#allocation25_spill] sm:$0xff] }
 0x2e0   : > { %v744_v12 = vsub.f32 %v688_v14, %v700_v30  ;;  %v701_v8 = vadd.f32 %v696_v49, %v2407_v57  ;;  %v1436_v59 = vpop.eup %1435  ;;  %v686_v5 = vmul.f32 0.6931472, %v1434_v41  ;;  %v2416_v49 = vld [vmem:[#allocation33_spill] sm:$0xff]  ;;  %v2418_v41 = vld [vmem:[#allocation36_spill] sm:$0xff] }
 0x2e1   : > { %v1438_v36 = vpop.eup %1437  ;;  %v897_v7 = vmul.f32 0.6931472, %v1436_v59  ;;  %v892_v21 = vadd.f32 %v885_v6, %v2409_v2 }
 0x2e2   : > { %v745_v48 = vsub.f32 %v689_v60, %v701_v8  ;;  %v1440_v9 = vpop.eup %1439  ;;  %v698_v42 = vmul.f32 0.6931472, %v1438_v36  ;;  %v690_v56 = vadd.f32 %v686_v5, %v2410_v45 }
 0x2e3   : > { %v1442_v10 = vpop.eup %1441  ;;  %v887_v58 = vmul.f32 0.6931472, %v1440_v9  ;;  %v904_v27 = vadd.f32 %v897_v7, %v2411_v29 }
 0x2e4   : > { %v1444_v15 = vpop.eup %1443  ;;  %v899_v28 = vmul.f32 0.6931472, %v1442_v10  ;;  %v702_v20 = vadd.f32 %v698_v42, %v2412_v26 }
 0x2e5   : > { %v1446_v17 = vpop.eup %1445  ;;  %v889_v32 = vmul.f32 0.6931472, %v1444_v15  ;;  %v948_v25 = vsub.f32 %v892_v21, %v904_v27  ;;  %v893_v24 = vadd.f32 %v887_v58, %v2413_v22 }
 0x2e6   : > { %v1448_v40 = vpop.eup %1447  ;;  %v901_v55 = vmul.f32 0.6931472, %v1446_v17  ;;  %v746_v50 = vsub.f32 %v690_v56, %v702_v20 }
 0x2e7   : > { %v1450_v51 = vpop.eup %1449  ;;  %v891_v53 = vmul.f32 0.6931472, %v1448_v40 }
 0x2e8   : > { %v903_v60 = vmul.f32 0.6931472, %v1450_v51 }
 0x2ea   : > { %v907_v36 = vadd.f32 %v903_v60, %v2419_v4 }
 0x34e   : > { %v733_v47 = vpop.xlane.xlu0 %732 }
 0x34f   : > { %v747_v61 = vadd.f32 %v743_v63, %v733_v47  ;;  %v905_v63 = vadd.f32 %v899_v28, %v2415_v33 }
 0x351   : > { %v751_v37 = vsel %vm512_vm0, %v747_v61, 0.0  ;;  %v949_v47 = vsub.f32 %v893_v24, %v905_v63  ;;  %v894_v61 = vadd.f32 %v889_v32, %v2416_v49 }
 0x352   : > { %v736_v35 = vpop.xlane.xlu1 %735  ;;  %v756_v44 = vsel %vm755_vm1, %v751_v37, 0.0 }
 0x353   : > { %v748_v23 = vadd.f32 %v744_v12, %v736_v35  ;;  %v2417_v12 = vld [vmem:[#allocation27_spill] sm:$0xff] }
 0x354   : > { %v906_v11 = vadd.f32 %v901_v55, %v2417_v12 }
 0x355   : > { %v752_v3 = vsel %vm513_vm2, %v748_v23, 0.0 }
 0x356   : > { %v757_v31 = vsel %vm755_vm1, %v752_v3, 0.0  ;;  %v739_v16 = vpop.xlane.xlu0 %738  ;;  %v950_v13 = vsub.f32 %v894_v61, %v906_v11  ;;  %v895_v3 = vadd.f32 %v891_v53, %v2418_v41 }
 0x357   : > { %v758_v52 = vadd.f32 %v757_v31, %v756_v44  ;;  %v749_v34 = vadd.f32 %v745_v48, %v739_v16 }
 0x359   : > { %v753_v38 = vsel %vm514_vm3, %v749_v34, 0.0 }
 0x35a   : > { %v759_v18 = vsel %vm755_vm1, %v753_v38, 0.0 }
 0x35b   : > { %v760_v19 = vadd.f32 %v759_v18, %v758_v52  ;;  %v951_v52 = vsub.f32 %v895_v3, %v907_v36 }
 0x35e   : > { %v938_v0 = vpop.xlane.xlu0 %937 }
 0x35f   : > { %v952_v54 = vadd.f32 %v948_v25, %v938_v0  ;;  %v2420_v0 = vld [vmem:[#allocation12_spill] sm:$0xff] }
 0x360   : > { %vm977_vm5 = vcmp.eq.s32.totalorder %v2420_v0, 1  ;;  %vm976_vm6 = vcmp.eq.s32.totalorder %v2420_v0, 0 }
 0x361   : > { %v956_v35 = vsel %vm512_vm0, %v952_v54, 0.0 }
 0x362   : > { %v742_v46 = vpop.xlane.xlu0 %741  ;;  %v960_v48 = vsel %vm755_vm1, %v956_v35, 0.0 }
 0x363   : > { %v750_v14 = vadd.f32 %v746_v50, %v742_v46  ;;  %v941_v30 = vpop.xlane.xlu1 %940 }
 0x364   : > { %v953_v37 = vadd.f32 %v949_v47, %v941_v30 }
 0x365   : > { %v754_v62 = vsel %vm515_vm4, %v750_v14, 0.0 }
 0x366   : > { %v761_v23 = vsel %vm755_vm1, %v754_v62, 0.0  ;;  %v957_v8 = vsel %vm513_vm2, %v953_v37, 0.0 }
 0x367   : > { %v762_v57 = vadd.f32 %v761_v23, %v760_v19  ;;  %v961_v59 = vsel %vm755_vm1, %v957_v8, 0.0  ;;  %v944_v44 = vpop.xlane.xlu1 %943 }
 0x368   : > { %v962_v31 = vadd.f32 %v961_v59, %v960_v48  ;;  %v954_v16 = vadd.f32 %v950_v13, %v944_v44 }
 0x369   : > { %763 = vadd.xlane.f32.xlu0 %v762_v57 }
 0x36a   : > { %v958_v6 = vsel %vm514_vm3, %v954_v16, 0.0 }
 0x36b   : > { %v963_v43 = vsel %vm755_vm1, %v958_v6, 0.0  ;;  %v947_v34 = vpop.xlane.xlu1 %946 }
 0x36c   : > { %v955_v9 = vadd.f32 %v951_v52, %v947_v34  ;;  %v964_v5 = vadd.f32 %v963_v43, %v962_v31 }
 0x36e   : > { %v959_v7 = vsel %vm515_vm4, %v955_v9, 0.0 }
 0x36f   : > { %v965_v38 = vsel %vm755_vm1, %v959_v7, 0.0 }
 0x370   : > { %v966_v10 = vadd.f32 %v965_v38, %v964_v5 }
 0x372   : > { %967 = vadd.xlane.f32.xlu1 %v966_v10 }
 0x3f6   : > { %v764_v42 = vpop.xlane.xlu0 %763 }
 0x3f7   : > { %v765_v18 = vrot.slane %v764_v42, 4 }
 0x3f9   : > { %v766_v58 = vadd.f32 %v765_v18, %v764_v42 }
 0x3fb   : > { %v767_v1 = vrot.slane %v766_v58, 2 }
 0x3fd   : > { %v768_v2 = vadd.f32 %v767_v1, %v766_v58 }
 0x3ff   : > { %v769_v21 = vrot.slane %v768_v2, 1  ;;  %v968_v19 = vpop.xlane.xlu1 %967 }
 0x400   : > { %v969_v45 = vrot.slane %v968_v19, 4 }
 0x401   : > { %v770_v15 = vadd.f32 %v769_v21, %v768_v2 }
 0x402   : > { %v970_v56 = vadd.f32 %v969_v45, %v968_v19 }
 0x403   : > { %1263 = vpush %v770_v15 }
 0x404   : > { %v971_v17 = vrot.slane %v970_v56, 2 }
 0x406   : > { %v972_v28 = vadd.f32 %v971_v17, %v970_v56 }
 0x408   : > { %v973_v29 = vrot.slane %v972_v28, 1 }
 0x40a   : > { %v974_v27 = vadd.f32 %v973_v29, %v972_v28 }
 0x40c   : > { %1265 = vpush %v974_v27 }
 0x434   : > { %s1264_s25 = spop %1263 }
 0x435   : > { %v980_v20 = vstv %s1264_s25 }
 0x43d   : > { %s1266_s30 = spop %1265 }
 0x43e   : > { %v978_v26 = vstv %s1266_s30 }
 0x43f   : > { %v979_v32 = vsel %vm977_vm5, %v978_v26, 0.0 }
 0x440   : > { %v981_v25 = vsel %vm976_vm6, %v980_v20, %v979_v32 }
 0x441   : > { %982 = vst [vmem:[%s189_s19] sm:$0x1] %v981_v25 }
 0x442   : > { %1548 = shalt.err (!%p1545_p6)
}
 0x443   : > { %s1549_s29 = scalar_lea.hbm %s2282_s7, 16  ;;  %s1553_s27 = scalar_lea.hbm %s2327_s3, 64 }
 0x444   : > { %p1550_p9 = scmp.ne.s32.totalorder %s2282_s7, %s1549_s29  ;;  %p1554_p3 = scmp.lt.u32.totalorder %s2282_s7, %s2327_s3 }
 0x445   : > { %p1555_p5 = scmp.lt.u32.totalorder %s1553_s27, %s1549_s29  ;;  %p1557_p12 = scmp.lt.u32.totalorder %s1549_s29, %s2282_s7 }
 0x446   : > { %p1551_p2 = pnand %p1550_p9, %p2421_p4 }
 0x447   : > { %p1556_p10 = por %p1555_p5, %p1554_p3 }
 0x448   : > { %p1552_p0 = pneg %p1551_p2 }
 0x449   : > { %p1558_p7 = por %p1557_p12, %p1556_p10 }
 0x44b   : > { %p1559_p8 = pnand %p1558_p7, %p1552_p0 }
 0x44d   : > { %1562 = shalt.err (!%p1559_p8)
}
 0x44e   : > { %1279 = dma.vmem_to_hbm [thread:$0]  (%p2421_p4), %s2284_s28, 16, %s2282_s7, %s984_s16  }
 0x44f PF: > { %p1301_p11 = scmp.ge.s32.totalorder %s1605_s15, 2  ;;  %s1008_s20 = sand.u32 1, %s1593_s12  }
 0x450   : > { %p2422_p13 = scmp.ne.s32.totalorder %s2362_s23, 0  ;;  %s1009_s25 = scalar_lea.sflag [#allocation4], %s1008_s20 }
 0x452   : > { %p1292_p1 = pnand %p1301_p11, %p2422_p13 }
 0x454   : > { %1588 = dma.done.wait (!%p1292_p1), %s1009_s25, 16  }
 0x455   : > { %1590 = vsyncadd (!%p1292_p1), %s1009_s25, 4294967280  ;;  %p15_p6 = scmp.ge.s32.totalorder %s1658_s18, 6   ;;  %s2423_s12 = smov %s1597_s13 }
 0x456   : > { %s2424_s13 = smov %s1601_s14  ;;  %s2425_s14 = smov %s1669_s21 }
 0x457   : > { %s2426_s15 = smov %s1658_s18  ;;  %17 = sbr.rel (!%p15_p6) target bundleno = 5 (0x5), region = 81 }
 0x45e   :  { %1013 = vsyncpa [#allocation3], 1 }
 0x45f   :  { %1015 = vsyncpa [#allocation3 + $0x1], 1 }
 0x460   :  { %1016 = vsyncpa [#allocation6], 1 }
 0x461   :  { %1017 = vsyncpa [#allocation4], 1 }
 0x462   :  { %1019 = vsyncpa [#allocation4 + $0x1], 1 }

// kernel: tpu_custom_call.1
= control target key start
LH: loop header
LB: loop body
LE: loop exit
PB: predicated region body
PF: predicated region fallthrough
CT: control target
= control target key end

     0   :  { %8 = vsyncpa [#allocation3], 0  ;;  %s2324_s0 = inlined_call_operand.hbm [shape: f32[1,256], index: 0, kind: input, shape index: {}]   ;;  %s2325_s1 = inlined_call_operand.hbm [shape: f32[256,128], index: 1, kind: input, shape index: {}]   ;;  %s2326_s2 = inlined_call_operand.hbm [shape: f32[256,128], index: 2, kind: input, shape index: {}]   ;;  %s2327_s3 = inlined_call_operand.hbm [shape: f32[4,1,128], index: 3, kind: output, shape index: {}]  }
   0x1   :  { %9 = vsyncpa [#allocation6], 0 }
   0x2   :  { %10 = vsyncpa [#allocation4], 0 }
   0x3   :  { %12 = vsyncpa [#allocation4 + $0x1], 0  ;;  %s1633_s12 = smov 0   ;;  %s1635_s13 = smov 0  }
   0x4   :  { %s1637_s14 = smov 0   ;;  %s1639_s15 = smov 0  }
   0x5 LB: > { %s1654_s16 = sadd.s32 4294967295, %s1605_s15   ;;  %s1080_s17 = sadd.s32 4294967294, %s1605_s15   ;;  %s1605_s15 = sphi %s1639_s15, %s2426_s15   ;;  %s1601_s14 = sphi %s1637_s14, %s2425_s14   ;;  %s1597_s13 = sphi %s1635_s13, %s2424_s13   ;;  %s1593_s12 = sphi %s1633_s12, %s2423_s12  }
   0x6   : > { %s1658_s18 = sadd.s32 1, %s1605_s15   ;;  %s88_s19 = sadd.s32 1, %s1601_s14 }
   0x7   : > { %s85_s20 = ssub.s32 %s1605_s15, %s1658_s18  ;;  %p98_p0 = scmp.ne.s32.totalorder %s1601_s14, %s1597_s13 }
   0x8   : > { %p86_p1 = scmp.eq.s32.totalorder %s85_s20, 0  ;;  %p99_p2 = scmp.eq.s32.totalorder %s1654_s16, 3 }
   0x9   : > { %p104_p3 = scmp.ne.s32.totalorder %s1597_s13, %s1593_s12  ;;  %p105_p4 = scmp.eq.s32.totalorder %s1080_s17, 3 }
   0xa   : > { %s1669_s21 = scalar_select %p86_p1, %s1601_s14, %s88_s19  }
   0xb   : > { %p1671_p5 = por %p99_p2, %p98_p0  ;;  %p1675_p6 = por %p105_p4, %p104_p3 }
   0xc   : > { %p1081_p7 = scmp.ge.s32.totalorder %s1605_s15, 1  ;;  %p112_p8 = scmp.lt.s32.totalorder %s1605_s15, 5 }
   0xd   : > { %s2361_s22 = scalar_select %p1671_p5, 1, 0 }
   0xe   : > { %s2362_s23 = scalar_select %p1675_p6, 1, 0 }
   0xf   : > { %p2328_p9 = scmp.eq.s32.totalorder %s1654_s16, 0  ;;  %p1682_p10 = pnand %p1081_p7, %p112_p8 }
  0x10   : > { %s1607_s25 = smov [#allocation5]   ;;  %s1608_s28 = smov [#allocation2]  }
  0x11   : > { %s2363_s24 = scalar_select %p1682_p10, 1, 0 }
  0x12   : > { %s135_s26 = sshll.u32 %s1607_s25, 4  ;;  %p1281_p11 = pneg %p1682_p10  ;;  %s1688_s26 = int_to_ptr.vmem [resolvable:$true] %s135_s26 }
  0x13   : > { %s125_s29 = sshll.u32 %s1608_s28, 4  ;;  %s1609_s30 = smov [#allocation7]   ;;  %s1696_s29 = int_to_ptr.vmem [resolvable:$true] %s125_s29 }
  0x14   : > { %p1692_p12 = pnand %p2328_p9, %p1281_p11  ;;  %s1698_s4 = sshll.u32 %s1609_s30, 4  ;;  %s149_s4 = int_to_ptr.vmem [resolvable:$true] %s1698_s4 }
  0x15   : > { %s1451_s7 = scalar_lea.hbm %s2325_s1, 4096 }
  0x16   : > { %p1452_p13 = scmp.ne.s32.totalorder %s2325_s1, %s1451_s7  ;;  %p1708_p0 = pneg %p1692_p12 }
  0x17   : > { %p1458_p3 = scmp.lt.u32.totalorder %s1451_s7, %s2325_s1 }
  0x18   : > { %p1454_p1 = pnand %p1708_p0, %p1452_p13 }
  0x1a   : > { %p1455_p2 = pneg %p1454_p1 }
  0x1c   : > { %p1460_p4 = pnand %p1458_p3, %p1455_p2 }
  0x1e   : > { %1463 = shalt.err (!%p1460_p4)
}
  0x1f   : > { %s1464_s19 = scalar_lea.vmem %s1688_s26, 4096  ;;  %p1472_p9 = scmp.lt.s32.totalorder %s1688_s26, %s1688_s26 }
  0x20   : > { %p1465_p7 = scmp.ne.s32.totalorder %s1688_s26, %s1464_s19  ;;  %p1473_p6 = scmp.lt.s32.totalorder %s1464_s19, %s1464_s19 }
  0x22   : > { %p1467_p8 = pnand %p1465_p7, %p1708_p0  ;;  %p1474_p13 = por %p1473_p6, %p1472_p9 }
  0x24   : > { %p1468_p11 = pneg %p1467_p8 }
  0x26   : > { %p1475_p1 = pnand %p1474_p13, %p1468_p11 }
  0x28   : > { %1478 = shalt.err (!%p1475_p1)
}
  0x29   : > { %s1610_s20 = smov 128   ;;  %s1611_s25 = smov 8  }
  0x2a   : > { %1287 = dma.hbm_to_vmem [thread:$0]  (!%p1692_p12), %s2325_s1, 4096, %s1688_s26, [#allocation6], %s1610_s20, %s1610_s20, %s1611_s25  }
  0x2b   : > { %s1479_s7 = scalar_lea.hbm %s2324_s0, 32 }
  0x2c   : > { %p1480_p6 = scmp.ne.s32.totalorder %s2324_s0, %s1479_s7  ;;  %p1486_p3 = scmp.lt.u32.totalorder %s1479_s7, %s2324_s0 }
  0x2e   : > { %p1482_p9 = pnand %p1480_p6, %p1708_p0 }
  0x30   : > { %p1483_p2 = pneg %p1482_p9 }
  0x32   : > { %p1488_p4 = pnand %p1486_p3, %p1483_p2 }
  0x34   : > { %1491 = shalt.err (!%p1488_p4)
}
  0x35   : > { %s1492_s26 = scalar_lea.vmem %s1696_s29, 32  ;;  %p1500_p13 = scmp.lt.s32.totalorder %s1696_s29, %s1696_s29 }
  0x36   : > { %p1493_p7 = scmp.ne.s32.totalorder %s1696_s29, %s1492_s26  ;;  %p1501_p1 = scmp.lt.s32.totalorder %s1492_s26, %s1492_s26 }
  0x38   : > { %p1495_p8 = pnand %p1493_p7, %p1708_p0  ;;  %p1502_p6 = por %p1501_p1, %p1500_p13 }
  0x3a   : > { %p1496_p11 = pneg %p1495_p8 }
  0x3c   : > { %p1503_p9 = pnand %p1502_p6, %p1496_p11 }
  0x3e   : > { %1506 = shalt.err (!%p1503_p9)
}
  0x3f   : > { %1284 = dma.hbm_to_vmem [thread:$0]  (!%p1692_p12), %s2324_s0, 32, %s1696_s29, [#allocation3]  }
  0x40   : > { %s1507_s6 = scalar_lea.hbm %s2326_s2, 4096 }
  0x41   : > { %p1508_p2 = scmp.ne.s32.totalorder %s2326_s2, %s1507_s6  ;;  %p1514_p7 = scmp.lt.u32.totalorder %s1507_s6, %s2326_s2 }
  0x43   : > { %p1510_p3 = pnand %p1508_p2, %p1708_p0 }
  0x45   : > { %p1511_p4 = pneg %p1510_p3 }
  0x47   : > { %p1516_p8 = pnand %p1514_p7, %p1511_p4 }
  0x49   : > { %1519 = shalt.err (!%p1516_p8)
}
  0x4a   : > { %s1520_s17 = scalar_lea.vmem %s149_s4, 4096  ;;  %p1528_p6 = scmp.lt.s32.totalorder %s149_s4, %s149_s4 }
  0x4b   : > { %p1521_p11 = scmp.ne.s32.totalorder %s149_s4, %s1520_s17  ;;  %p1529_p9 = scmp.lt.s32.totalorder %s1520_s17, %s1520_s17 }
  0x4d   : > { %p1523_p13 = pnand %p1521_p11, %p1708_p0  ;;  %p1530_p5 = por %p1529_p9, %p1528_p6 }
  0x4f   : > { %p1524_p1 = pneg %p1523_p13 }
  0x51   : > { %p1531_p10 = pnand %p1530_p5, %p1524_p1 }
  0x53   : > { %1534 = shalt.err (!%p1531_p10)
}
  0x54   : > { %1290 = dma.hbm_to_vmem [thread:$0]  (!%p1692_p12), %s2326_s2, 4096, %s149_s4, [#allocation6], %s1610_s20, %s1610_s20, %s1611_s25  }
  0x55   : > { %p2366_p2 = scmp.ne.s32.totalorder %s2363_s24, 0 }
  0x57   : > { %164 = sbr.rel (%p2366_p2) target bundleno = 1103 (0x44f), region = 32 }
  0x5e   : > { %p2367_p0 = scmp.eq.s32.totalorder %s1654_s16, 0 }
  0x60   : > { %1580 = dma.done.wait (%p2367_p0), [#allocation3], 32   ;;  %p2368_p3 = pmov %p2367_p0 }
  0x61   : > { %p2369_p5 = pmov %p2367_p0 }
  0x62   : > { %1582 = vsyncadd (%p2368_p3), [#allocation3], 4294967264 }
  0x63   : > { %1584 = dma.done.wait (%p2369_p5), [#allocation6], 8192   ;;  %p2370_p10 = pmov %p2367_p0 }
  0x64   : > { %v218_v0 = vld [vmem:[#allocation5 + $0x80] sm:$0xff]  ;;  %v219_v1 = vld [vmem:[#allocation5 + $0x88] sm:$0xff]  ;;  %v220_v11 = vld [vmem:[#allocation5 + $0x90] sm:$0xff]  ;;  %s1788_s24 = sshll.u32 %s1654_s16, 5  ;;  %s188_s10 = sand.u32 1, %s1597_s13  }
  0x65   : > { %1586 = vsyncadd (%p2370_p10), [#allocation6], 4294959104  ;;  %v373_v2 = vld [vmem:[#allocation7 + $0x80] sm:$0xff]  ;;  %v1199_v3 = vpack.c.bf16 %v219_v1, %v218_v0  ;;  %v374_v4 = vld [vmem:[#allocation7 + $0x88] sm:$0xff]  ;;  %s1791_s27 = scalar_lea.vmem [#allocation5], %s1788_s24  ;;  %s1797_s4 = scalar_lea.vmem [#allocation7], %s1788_s24 }
  0x66   : > { %v202_v5 = vld [vmem:[#allocation5] sm:$0xff]  ;;  %v203_v6 = vld [vmem:[#allocation5 + $0x8] sm:$0xff]  ;;  %v1231_v7 = vpack.c.bf16 %v374_v4, %v373_v2  ;;  %v221_v13 = vld [vmem:[#allocation5 + $0x98] sm:$0xff]  ;;  %s1100_s20 = sshll.u32 %s1654_s16, 4  ;;  %s189_s19 = scalar_lea.vmem [#allocation8], %s188_s10 }
  0x67   : > { %v1201_v8 = vpack.c.bf16 %v203_v6, %v202_v5  ;;  %v357_v9 = vld [vmem:[#allocation7] sm:$0xff]  ;;  %v358_v10 = vld [vmem:[#allocation7 + $0x8] sm:$0xff]  ;;  %1200 = vmatprep.subr.bf16.mxu0 %v1199_v3  ;;  %v375_v14 = vld [vmem:[#allocation7 + $0x90] sm:$0xff]  ;;  %v1203_v16 = vpack.c.bf16 %v221_v13, %v220_v11  ;;  %s996_s28 = sshll.u32 %s189_s19, 4  ;;  %s2282_s7 = scalar_lea.hbm %s2327_s3, %s1100_s20  ;;  %s2284_s28 = int_to_ptr.vmem [resolvable:$true] %s996_s28 }
  0x68   : > { %v1233_v12 = vpack.c.bf16 %v358_v10, %v357_v9  ;;  %v376_v15 = vld [vmem:[#allocation7 + $0x98] sm:$0xff]  ;;  %1232 = vmatprep.subr.bf16.mxu1 %v1231_v7  ;;  %v204_v18 = vld [vmem:[#allocation5 + $0x10] sm:$0xff]  ;;  %v222_v22 = vld [vmem:[#allocation5 + $0xa0] sm:$0xff]  ;;  %s984_s16 = scalar_lea.sflag [#allocation4], %s188_s10  ;;  %s1535_s8 = scalar_lea.vmem %s2284_s28, 16 }
  0x69   : > { %1202 = vmatpush3.bf16.xpose.msra.mxu0 %v1201_v8  ;;  %v1235_v17 = vpack.c.bf16 %v376_v15, %v375_v14  ;;  %v205_v19 = vld [vmem:[#allocation5 + $0x18] sm:$0xff]  ;;  %v359_v20 = vld [vmem:[#allocation7 + $0x10] sm:$0xff]  ;;  %v223_v23 = vld [vmem:[#allocation5 + $0xa8] sm:$0xff]  ;;  %p1536_p12 = scmp.ne.s32.totalorder %s2284_s28, %s1535_s8  ;;  %p2421_p4 = scmp.ne.s32.totalorder %s2361_s22, 0 }
  0x6a   : > { %1234 = vmatpush3.bf16.xpose.msra.mxu1 %v1233_v12  ;;  %1204 = vmatprep.subr.bf16.mxu0 %v1203_v16  ;;  %v360_v21 = vld [vmem:[#allocation7 + $0x18] sm:$0xff]  ;;  %v377_v24 = vld [vmem:[#allocation7 + $0xa0] sm:$0xff]  ;;  %v378_v25 = vld [vmem:[#allocation7 + $0xa8] sm:$0xff]  ;;  %v1205_v26 = vpack.c.bf16 %v205_v19, %v204_v18  ;;  %v1207_v28 = vpack.c.bf16 %v223_v23, %v222_v22  ;;  %s1612_s9 = smov [#allocation8]  }
  0x6b   : > { %1236 = vmatprep.subr.bf16.mxu1 %v1235_v17  ;;  %v1237_v27 = vpack.c.bf16 %v360_v21, %v359_v20  ;;  %v1239_v29 = vpack.c.bf16 %v378_v25, %v377_v24  ;;  %v206_v30 = vld [vmem:[#allocation5 + $0x20] sm:$0xff]  ;;  %v207_v31 = vld [vmem:[#allocation5 + $0x28] sm:$0xff]  ;;  %v224_v34 = vld [vmem:[#allocation5 + $0xb0] sm:$0xff]  ;;  %p1537_p7 = pnand %p1536_p12, %p2421_p4  ;;  %s1539_s11 = sshll.u32 %s1612_s9, 4  ;;  %s1540_s11 = int_to_ptr.vmem [resolvable:$false] %s1539_s11 }
  0x6c   : > { %v361_v32 = vld [vmem:[#allocation7 + $0x20] sm:$0xff]  ;;  %v362_v33 = vld [vmem:[#allocation7 + $0x28] sm:$0xff]  ;;  %v225_v35 = vld [vmem:[#allocation5 + $0xb8] sm:$0xff]  ;;  %v1209_v38 = vpack.c.bf16 %v207_v31, %v206_v30  ;;  %s1541_s17 = scalar_lea.vmem %s1540_s11, 32  ;;  %p1542_p11 = scmp.lt.s32.totalorder %s2284_s28, %s1540_s11 }
  0x6d   : > { %v379_v36 = vld [vmem:[#allocation7 + $0xb0] sm:$0xff]  ;;  %v380_v37 = vld [vmem:[#allocation7 + $0xb8] sm:$0xff]  ;;  %v1241_v39 = vpack.c.bf16 %v362_v33, %v361_v32  ;;  %v1211_v40 = vpack.c.bf16 %v225_v35, %v224_v34  ;;  %v226_v48 = vld [vmem:[#allocation5 + $0xc0] sm:$0xff]  ;;  %p1538_p8 = pneg %p1537_p7  ;;  %p1543_p13 = scmp.lt.s32.totalorder %s1541_s17, %s1535_s8 }
  0x6e   : > { %v1243_v41 = vpack.c.bf16 %v380_v37, %v379_v36  ;;  %v208_v42 = vld [vmem:[#allocation5 + $0x30] sm:$0xff]  ;;  %v209_v43 = vld [vmem:[#allocation5 + $0x38] sm:$0xff]  ;;  %v227_v49 = vld [vmem:[#allocation5 + $0xc8] sm:$0xff] }
  0x6f   : > { %v363_v44 = vld [vmem:[#allocation7 + $0x30] sm:$0xff]  ;;  %v1794_v45 = vld [vmem:[%s1791_s27] sm:$0xff]  ;;  %v382_v51 = vld [vmem:[#allocation7 + $0xc8] sm:$0xff]  ;;  %v1213_v52 = vpack.c.bf16 %v209_v43, %v208_v42  ;;  %v1215_v54 = vpack.c.bf16 %v227_v49, %v226_v48  ;;  %v502_v48 = vlaneseq  ;;  %p1544_p1 = por %p1543_p13, %p1542_p11 }
  0x70   : > { %v1800_v46 = vld [vmem:[%s1797_s4] sm:$0xff]  ;;  %1135 = vmatprep.mubr.f32.mxu0 %v1794_v45  ;;  %v211_v57 = vld [vmem:[#allocation5 + $0x48] sm:$0xff]  ;;  %v228_v60 = vld [vmem:[#allocation5 + $0xd0] sm:$0xff] }
  0x71   : > { %1206 = vmatpush3.bf16.xpose.msra.mxu0 %v1205_v26  ;;  %v364_v47 = vld [vmem:[#allocation7 + $0x38] sm:$0xff]  ;;  %v381_v50 = vld [vmem:[#allocation7 + $0xc0] sm:$0xff]  ;;  %1183 = vmatprep.mubr.f32.mxu1 %v1800_v46  ;;  %v366_v59 = vld [vmem:[#allocation7 + $0x48] sm:$0xff]  ;;  %v503_v49 = vshrl.u32 %v502_v48, 7  ;;  %p1545_p6 = pnand %p1544_p1, %p1538_p8 }
  0x72   : > { %1238 = vmatpush3.bf16.xpose.msra.mxu1 %v1237_v27  ;;  %1208 = vmatprep.subr.bf16.mxu0 %v1207_v28  ;;  %v1245_v53 = vpack.c.bf16 %v364_v47, %v363_v44  ;;  %v1247_v55 = vpack.c.bf16 %v382_v51, %v381_v50  ;;  %v210_v56 = vld [vmem:[#allocation5 + $0x40] sm:$0xff]  ;;  %v229_v61 = vld [vmem:[#allocation5 + $0xd8] sm:$0xff]  ;;  %v383_v62 = vld [vmem:[#allocation7 + $0xd0] sm:$0xff]  ;;  %v507_v50 = vstv %s1788_s24  ;;  %v1821_v51 = vand.u32 127, %v502_v48 }
  0x73   : > { %1240 = vmatprep.subr.bf16.mxu1 %v1239_v29  ;;  %v365_v58 = vld [vmem:[#allocation7 + $0x40] sm:$0xff]  ;;  %v384_v63 = vld [vmem:[#allocation7 + $0xd8] sm:$0xff]  ;;  %v1217_v0 = vpack.c.bf16 %v211_v57, %v210_v56  ;;  %v1219_v2 = vpack.c.bf16 %v229_v61, %v228_v60  ;;  %v212_v4 = vld [vmem:[#allocation5 + $0x50] sm:$0xff]  ;;  %v504_v56 = vadd.s32 8, %v503_v49  ;;  %v505_v61 = vadd.s32 16, %v503_v49 }
  0x74   : > { %v1249_v1 = vpack.c.bf16 %v366_v59, %v365_v58  ;;  %v1251_v3 = vpack.c.bf16 %v384_v63, %v383_v62  ;;  %v213_v5 = vld [vmem:[#allocation5 + $0x58] sm:$0xff]  ;;  %v367_v6 = vld [vmem:[#allocation7 + $0x50] sm:$0xff]  ;;  %v230_v8 = vld [vmem:[#allocation5 + $0xe0] sm:$0xff]  ;;  %2371 = vst [vmem:[#allocation12_spill] sm:$0xff] %v1821_v51  ;;  %v1826_v57 = vadd.s32 128, %v1821_v51 }
  0x75   : > { %v368_v7 = vld [vmem:[#allocation7 + $0x58] sm:$0xff]  ;;  %v231_v9 = vld [vmem:[#allocation5 + $0xe8] sm:$0xff]  ;;  %v385_v10 = vld [vmem:[#allocation7 + $0xe0] sm:$0xff]  ;;  %v1221_v12 = vpack.c.bf16 %v213_v5, %v212_v4  ;;  %v1834_v60 = vadd.s32 %v507_v50, %v504_v56 }
  0x76   : > { %v386_v11 = vld [vmem:[#allocation7 + $0xe8] sm:$0xff]  ;;  %v1253_v13 = vpack.c.bf16 %v368_v7, %v367_v6  ;;  %v1223_v14 = vpack.c.bf16 %v231_v9, %v230_v8  ;;  %v214_v16 = vld [vmem:[#allocation5 + $0x60] sm:$0xff]  ;;  %v232_v20 = vld [vmem:[#allocation5 + $0xf0] sm:$0xff] }
  0x77   : > { %v1255_v15 = vpack.c.bf16 %v386_v11, %v385_v10  ;;  %v215_v17 = vld [vmem:[#allocation5 + $0x68] sm:$0xff]  ;;  %v369_v18 = vld [vmem:[#allocation7 + $0x60] sm:$0xff]  ;;  %v233_v21 = vld [vmem:[#allocation5 + $0xf8] sm:$0xff]  ;;  %2373 = vst [vmem:[#allocation14_spill] sm:$0xff] %v1834_v60  ;;  %vm522_vm2 = vcmp.eq.s32.totalorder %v1821_v51, %v1834_v60  ;;  %vm523_vm3 = vcmp.eq.s32.totalorder %v1826_v57, %v1834_v60 }
  0x78   : > { %v370_v19 = vld [vmem:[#allocation7 + $0x68] sm:$0xff]  ;;  %v387_v22 = vld [vmem:[#allocation7 + $0xf0] sm:$0xff]  ;;  %v388_v23 = vld [vmem:[#allocation7 + $0xf8] sm:$0xff]  ;;  %v1225_v24 = vpack.c.bf16 %v215_v17, %v214_v16  ;;  %v1227_v26 = vpack.c.bf16 %v233_v21, %v232_v20 }
  0x79   : > { %1210 = vmatpush3.bf16.xpose.msra.mxu0 %v1209_v38  ;;  %v1257_v25 = vpack.c.bf16 %v370_v19, %v369_v18  ;;  %v1259_v27 = vpack.c.bf16 %v388_v23, %v387_v22  ;;  %v216_v28 = vld [vmem:[#allocation5 + $0x70] sm:$0xff]  ;;  %v217_v29 = vld [vmem:[#allocation5 + $0x78] sm:$0xff]  ;;  %v194_v34 = vld [vmem:[%s1791_s27 + $0x8] sm:$0xff] }
  0x7a   : > { %1242 = vmatpush3.bf16.xpose.msra.mxu1 %v1241_v39  ;;  %1212 = vmatprep.subr.bf16.mxu0 %v1211_v40  ;;  %v371_v30 = vld [vmem:[#allocation7 + $0x70] sm:$0xff]  ;;  %v372_v31 = vld [vmem:[#allocation7 + $0x78] sm:$0xff]  ;;  %v1229_v32 = vpack.c.bf16 %v217_v29, %v216_v28  ;;  %v349_v35 = vld [vmem:[%s1797_s4 + $0x8] sm:$0xff] }
  0x7b   : > { %1244 = vmatprep.subr.bf16.mxu1 %v1243_v41  ;;  %v1261_v33 = vpack.c.bf16 %v372_v31, %v371_v30  ;;  %v195_v36 = vld [vmem:[%s1791_s27 + $0x10] sm:$0xff]  ;;  %v196_v38 = vld [vmem:[%s1791_s27 + $0x18] sm:$0xff]  ;;  %v1091_v40 = vld [vmem:[%s1791_s27 + $0x80] sm:$0xff]  ;;  %v548_v31 = vadd.s32 128, %v1834_v60 }
  0x7c   : > { %v350_v37 = vld [vmem:[%s1797_s4 + $0x10] sm:$0xff]  ;;  %v351_v39 = vld [vmem:[%s1797_s4 + $0x18] sm:$0xff]  ;;  %v1096_v41 = vld [vmem:[%s1797_s4 + $0x80] sm:$0xff] }
  0x7d   : > { %v1092_v42 = vld [vmem:[%s1791_s27 + $0x88] sm:$0xff]  ;;  %v1093_v44 = vld [vmem:[%s1791_s27 + $0x90] sm:$0xff]  ;;  %v1099_v47 = vld [vmem:[%s1797_s4 + $0x98] sm:$0xff]  ;;  %vm553_vm10 = vcmp.eq.s32.totalorder %v1821_v51, %v548_v31  ;;  %vm554_vm11 = vcmp.eq.s32.totalorder %v1826_v57, %v548_v31 }
  0x7e   : > { %v1097_v43 = vld [vmem:[%s1797_s4 + $0x88] sm:$0xff] }
  0x81   : > { %1214 = vmatpush3.bf16.xpose.msra.mxu0 %v1213_v52  ;;  %v531_v52 = vsub.s32 0, %v503_v49 }
  0x82   : > { %1246 = vmatpush3.bf16.xpose.msra.mxu1 %v1245_v53  ;;  %1216 = vmatprep.subr.bf16.mxu0 %v1215_v54  ;;  %v1823_v53 = vadd.s32 %v507_v50, %v503_v49  ;;  %v519_v54 = vld [vmem:[#allocation2] sm:$0x3] }
  0x83   : > { %1248 = vmatprep.subr.bf16.mxu1 %v1247_v55  ;;  %v535_v55 = vsub.s32 1, %v503_v49  ;;  %v1828_v58 = vrot.slane %v519_v54, %v531_v52 }
  0x84   : > { %2372 = vst [vmem:[#allocation13_spill] sm:$0xff] %v1823_v53  ;;  %vm520_vm0 = vcmp.eq.s32.totalorder %v1821_v51, %v1823_v53  ;;  %vm521_vm1 = vcmp.eq.s32.totalorder %v1826_v57, %v1823_v53  ;;  %v547_v21 = vadd.s32 128, %v1823_v53 }
  0x85   : > { %v1832_v59 = vrot.slane %v519_v54, %v535_v55  ;;  %v539_v62 = vsel %vm520_vm0, -1e+09, %v1828_v58  ;;  %v1851_v8 = vsel %vm522_vm2, -1e+09, %v1828_v58 }
  0x86   : > { %vm551_vm8 = vcmp.eq.s32.totalorder %v1821_v51, %v547_v21  ;;  %vm552_vm9 = vcmp.eq.s32.totalorder %v1826_v57, %v547_v21 }
  0x87   : > { %v1856_v10 = vsel %vm523_vm3, -1e+09, %v1832_v59  ;;  %v562_v55 = vsel %vm554_vm11, -1e+09, %v1832_v59 }
  0x89   : > { %1218 = vmatpush3.bf16.xpose.msra.mxu0 %v1217_v0  ;;  %v540_v0 = vsel %vm521_vm1, -1e+09, %v1832_v59  ;;  %vm755_vm1 = vcmask 7168  }
  0x8a   : > { %1250 = vmatpush3.bf16.xpose.msra.mxu1 %v1249_v1  ;;  %1220 = vmatprep.subr.bf16.mxu0 %v1219_v2  ;;  %v1842_v1 = vadd.s32 %v507_v50, %v505_v61  ;;  %v506_v2 = vadd.s32 24, %v503_v49 }
  0x8b   : > { %1252 = vmatprep.subr.bf16.mxu1 %v1251_v3 }
  0x8c   : > { %2374 = vst [vmem:[#allocation15_spill] sm:$0xff] %v1842_v1  ;;  %vm524_vm4 = vcmp.eq.s32.totalorder %v1821_v51, %v1842_v1  ;;  %v1860_v11 = vadd.s32 %v507_v50, %v506_v2  ;;  %vm525_vm5 = vcmp.eq.s32.totalorder %v1826_v57, %v1842_v1  ;;  %v561_v50 = vsel %vm553_vm10, -1e+09, %v1828_v58 }
  0x8d   : > { %v1875_v18 = vsel %vm524_vm4, -1e+09, %v1828_v58  ;;  %v544_v20 = vsel %vm525_vm5, -1e+09, %v1832_v59 }
  0x8e   : > { %2375 = vst [vmem:[#allocation16_spill] sm:$0xff] %v1860_v11  ;;  %vm526_vm6 = vcmp.eq.s32.totalorder %v1821_v51, %v1860_v11  ;;  %vm527_vm7 = vcmp.eq.s32.totalorder %v1826_v57, %v1860_v11  ;;  %v550_v56 = vadd.s32 128, %v1860_v11 }
  0x8f   : > { %v1891_v28 = vsel %vm526_vm6, -1e+09, %v1828_v58  ;;  %v1896_v30 = vsel %vm527_vm7, -1e+09, %v1832_v59 }
  0x90   : > { %vm557_vm14 = vcmp.eq.s32.totalorder %v1821_v51, %v550_v56  ;;  %vm558_vm15 = vcmp.eq.s32.totalorder %v1826_v57, %v550_v56 }
  0x91   : > { %1222 = vmatpush3.bf16.xpose.msra.mxu0 %v1221_v12 }
  0x92   : > { %1254 = vmatpush3.bf16.xpose.msra.mxu1 %v1253_v13  ;;  %1224 = vmatprep.subr.bf16.mxu0 %v1223_v14 }
  0x93   : > { %1256 = vmatprep.subr.bf16.mxu1 %v1255_v15 }
  0x99   : > { %1226 = vmatpush3.bf16.xpose.msra.mxu0 %v1225_v24 }
  0x9a   : > { %1258 = vmatpush3.bf16.xpose.msra.mxu1 %v1257_v25  ;;  %1228 = vmatprep.subr.bf16.mxu0 %v1227_v26 }
  0x9b   : > { %1260 = vmatprep.subr.bf16.mxu1 %v1259_v27 }
  0xa1   : > { %1230 = vmatpush3.bf16.xpose.msra.mxu0 %v1229_v32 }
  0xa2   : > { %1262 = vmatpush3.bf16.xpose.msra.mxu1 %v1261_v33 }
  0xa8   : > { %1136 = vmatmul.mubr.f32.vlgmr.msra.gmra.mrb[0].mxu0 %v1794_v45  ;;  %v1098_v45 = vld [vmem:[%s1797_s4 + $0x90] sm:$0xff] }
  0xa9   : > { %1184 = vmatmul.mubr.f32.vlgmr.msra.gmra.mrb[0].mxu1 %v1800_v46  ;;  %1137 = vmatprep.mubr.f32.mxu0 %v194_v34  ;;  %v1094_v46 = vld [vmem:[%s1791_s27 + $0x98] sm:$0xff] }
  0xaa   : > { %1185 = vmatprep.mubr.f32.mxu1 %v349_v35 }
  0xac   : > { %1138 = vmatmul.mubr.f32.gmra.mrb[2].mxu0 %v194_v34 }
  0xad   : > { %1186 = vmatmul.mubr.f32.gmra.mrb[2].mxu1 %v349_v35  ;;  %1139 = vmatprep.mubr.f32.mxu0 %v195_v36 }
  0xae   : > { %1187 = vmatprep.mubr.f32.mxu1 %v350_v37 }
  0xb0   : > { %1140 = vmatmul.mubr.f32.gmra.mrb[4].mxu0 %v195_v36 }
  0xb1   : > { %1188 = vmatmul.mubr.f32.gmra.mrb[4].mxu1 %v350_v37  ;;  %1141 = vmatprep.mubr.f32.mxu0 %v196_v38 }
  0xb2   : > { %1189 = vmatprep.mubr.f32.mxu1 %v351_v39 }
  0xb4   : > { %1142 = vmatmul.mubr.f32.gmra.mrb[6].mxu0 %v196_v38  ;;  %v559_v38 = vsel %vm551_vm8, -1e+09, %v1828_v58 }
  0xb5   : > { %1190 = vmatmul.mubr.f32.gmra.mrb[6].mxu1 %v351_v39  ;;  %1143 = vmatprep.mubr.f32.mxu0 %v1091_v40 }
  0xb6   : > { %1191 = vmatprep.mubr.f32.mxu1 %v1096_v41 }
  0xb8   : > { %1144 = vmatmul.mubr.f32.gmra.mrb[8].mxu0 %v1091_v40  ;;  %v560_v40 = vsel %vm552_vm9, -1e+09, %v1832_v59 }
  0xb9   : > { %1192 = vmatmul.mubr.f32.gmra.mrb[8].mxu1 %v1096_v41  ;;  %1145 = vmatprep.mubr.f32.mxu0 %v1092_v42  ;;  %v549_v41 = vadd.s32 128, %v1842_v1 }
  0xba   : > { %1193 = vmatprep.mubr.f32.mxu1 %v1097_v43 }
  0xbb   : > { %vm555_vm12 = vcmp.eq.s32.totalorder %v1821_v51, %v549_v41  ;;  %vm556_vm13 = vcmp.eq.s32.totalorder %v1826_v57, %v549_v41 }
  0xbc   : > { %1146 = vmatmul.mubr.f32.gmra.mrb[10].mxu0 %v1092_v42  ;;  %v564_v21 = vsel %vm556_vm13, -1e+09, %v1832_v59 }
  0xbd   : > { %1194 = vmatmul.mubr.f32.gmra.mrb[10].mxu1 %v1097_v43  ;;  %1147 = vmatprep.mubr.f32.mxu0 %v1093_v44 }
  0xbe   : > { %1195 = vmatprep.mubr.f32.mxu1 %v1098_v45 }
  0xc0   : > { %1148 = vmatmul.mubr.f32.gmra.mrb[12].mxu0 %v1093_v44 }
  0xc1   : > { %1196 = vmatmul.mubr.f32.gmra.mrb[12].mxu1 %v1098_v45  ;;  %1149 = vmatprep.mubr.f32.mxu0 %v1094_v46 }
  0xc2   : > { %1197 = vmatprep.mubr.f32.mxu1 %v1099_v47 }
  0xc4   : > { %1150 = vmatmul.mubr.f32.gmra.mrb[14].mxu0 %v1094_v46 }
  0xc5   : > { %1198 = vmatmul.mubr.f32.gmra.mrb[14].mxu1 %v1099_v47 }
 0x17b   : > { %v300_v63 = vpop.f32.mrb[0].mxu0 }
 0x17c   : > { %v455_v3 = vpop.f32.mrb[0].mxu1  ;;  %v302_v4 = vpop.f32.mrb[1].mxu0  ;;  %v1913_v42 = vadd.f32 %v539_v62, %v300_v63 }
 0x17d   : > { %v1846_v5 = vadd.f32 %v539_v62, %v455_v3  ;;  %v457_v6 = vpop.f32.mrb[1].mxu1  ;;  %v1915_v43 = vadd.f32 %v540_v0, %v302_v4 }
 0x17e   : > { %v1848_v7 = vadd.f32 %v540_v0, %v457_v6 }
 0x17f   : > { %v1853_v9 = vpop.f32.mrb[2].mxu0  ;;  %v583_v52 = vmax.f32 %v1913_v42, %v1915_v43 }
 0x180   : > { %v461_v12 = vpop.f32.mrb[2].mxu1  ;;  %v1862_v13 = vpop.f32.mrb[3].mxu0  ;;  %v595_v14 = vmax.f32 %v1846_v5, %v1848_v7 }
 0x181   : > { %v1869_v15 = vadd.f32 %v1851_v8, %v461_v12  ;;  %v463_v16 = vpop.f32.mrb[3].mxu1  ;;  %v563_v12 = vsel %vm555_vm12, -1e+09, %v1828_v58 }
 0x182   : > { %v1872_v17 = vadd.f32 %v1856_v10, %v463_v16  ;;  %596 = vmax.xlane.f32.xlu0 %v595_v14 }
 0x183   : > { %v312_v19 = vpop.f32.mrb[4].mxu0 }
 0x184   : > { %v467_v22 = vpop.f32.mrb[4].mxu1  ;;  %v314_v23 = vpop.f32.mrb[5].mxu0  ;;  %v598_v24 = vmax.f32 %v1869_v15, %v1872_v17 }
 0x185   : > { %v1886_v25 = vadd.f32 %v1875_v18, %v467_v22  ;;  %v469_v26 = vpop.f32.mrb[5].mxu1  ;;  %v1947_v22 = vadd.f32 %v1875_v18, %v312_v19 }
 0x186   : > { %v1888_v27 = vadd.f32 %v544_v20, %v469_v26  ;;  %599 = vmax.xlane.f32.xlu0 %v598_v24  ;;  %v1949_v24 = vadd.f32 %v544_v20, %v314_v23  ;;  %v566_v20 = vsel %vm558_vm15, -1e+09, %v1832_v59 }
 0x187   : > { %v1893_v29 = vpop.f32.mrb[6].mxu0 }
 0x188   : > { %v473_v32 = vpop.f32.mrb[6].mxu1  ;;  %v320_v33 = vpop.f32.mrb[7].mxu0  ;;  %v601_v34 = vmax.f32 %v1886_v25, %v1888_v27  ;;  %v589_v18 = vmax.f32 %v1947_v22, %v1949_v24  ;;  %v1964_v23 = vadd.f32 %v1891_v28, %v1893_v29  ;;  %v1983_v29 = vadd.f32 %v1856_v10, %v1862_v13 }
 0x189   : > { %v1904_v35 = vadd.f32 %v1891_v28, %v473_v32  ;;  %v475_v36 = vpop.f32.mrb[7].mxu1  ;;  %v1967_v57 = vadd.f32 %v1896_v30, %v320_v33  ;;  %v1979_v28 = vadd.f32 %v1851_v8, %v1853_v9 }
 0x18a   : > { %v1907_v37 = vadd.f32 %v1896_v30, %v475_v36  ;;  %602 = vmax.xlane.f32.xlu0 %v601_v34 }
 0x18b   : > { %v324_v39 = vpop.f32.mrb[8].mxu0  ;;  %v592_v59 = vmax.f32 %v1964_v23, %v1967_v57  ;;  %v586_v33 = vmax.f32 %v1979_v28, %v1983_v29 }
 0x18c   : > { %v479_v44 = vpop.f32.mrb[8].mxu1  ;;  %v326_v45 = vpop.f32.mrb[9].mxu0  ;;  %v604_v46 = vmax.f32 %v1904_v35, %v1907_v37  ;;  %v1930_v61 = vadd.f32 %v559_v38, %v324_v39  ;;  %v565_v39 = vsel %vm557_vm14, -1e+09, %v1828_v58 }
 0x18d   : > { %v1920_v47 = vadd.f32 %v559_v38, %v479_v44  ;;  %v481_v48 = vpop.f32.mrb[9].mxu1  ;;  %v1932_v62 = vadd.f32 %v560_v40, %v326_v45 }
 0x18e   : > { %v1922_v49 = vadd.f32 %v560_v40, %v481_v48  ;;  %605 = vmax.xlane.f32.xlu0 %v604_v46 }
 0x18f   : > { %v330_v54 = vpop.f32.mrb[10].mxu0  ;;  %v788_v14 = vmax.f32 %v1930_v61, %v1932_v62 }
 0x190   : > { %v485_v63 = vpop.f32.mrb[10].mxu1  ;;  %v332_v0 = vpop.f32.mrb[11].mxu0  ;;  %v800_v2 = vmax.f32 %v1920_v47, %v1922_v49  ;;  %v1989_v48 = vadd.f32 %v561_v50, %v330_v54 }
 0x191   : > { %v1937_v3 = vadd.f32 %v561_v50, %v485_v63  ;;  %v487_v4 = vpop.f32.mrb[11].mxu1 }
 0x192   : > { %v1939_v6 = vadd.f32 %v562_v55, %v487_v4  ;;  %801 = vmax.xlane.f32.xlu1 %v800_v2  ;;  %584 = vmax.xlane.f32.xlu0 %v583_v52  ;;  %v1991_v52 = vadd.f32 %v562_v55, %v332_v0 }
 0x193   : > { %v336_v16 = vpop.f32.mrb[12].mxu0 }
 0x194   : > { %v491_v26 = vpop.f32.mrb[12].mxu1  ;;  %v338_v31 = vpop.f32.mrb[13].mxu0  ;;  %v803_v32 = vmax.f32 %v1937_v3, %v1939_v6  ;;  %v791_v8 = vmax.f32 %v1989_v48, %v1991_v52  ;;  %v1995_v9 = vadd.f32 %v563_v12, %v336_v16 }
 0x195   : > { %v1954_v34 = vadd.f32 %v563_v12, %v491_v26  ;;  %v493_v36 = vpop.f32.mrb[13].mxu1  ;;  %v1997_v10 = vadd.f32 %v564_v21, %v338_v31 }
 0x196   : > { %v1956_v38 = vadd.f32 %v564_v21, %v493_v36  ;;  %804 = vmax.xlane.f32.xlu1 %v803_v32  ;;  %789 = vmax.xlane.f32.xlu0 %v788_v14 }
 0x197   : > { %v342_v19 = vpop.f32.mrb[14].mxu0  ;;  %v794_v13 = vmax.f32 %v1995_v9, %v1997_v10 }
 0x198   : > { %v497_v40 = vpop.f32.mrb[14].mxu1  ;;  %v344_v41 = vpop.f32.mrb[15].mxu0  ;;  %v806_v44 = vmax.f32 %v1954_v34, %v1956_v38  ;;  %v2001_v56 = vadd.f32 %v565_v39, %v342_v19 }
 0x199   : > { %v1971_v45 = vadd.f32 %v565_v39, %v497_v40  ;;  %v499_v58 = vpop.f32.mrb[15].mxu1  ;;  %v2003_v63 = vadd.f32 %v566_v20, %v344_v41 }
 0x19a   : > { %v1973_v46 = vadd.f32 %v566_v20, %v499_v58  ;;  %807 = vmax.xlane.f32.xlu1 %v806_v44  ;;  %590 = vmax.xlane.f32.xlu0 %v589_v18 }
 0x19b   : > { %2377 = vst [vmem:[#allocation18_spill] sm:$0xff] %v2003_v63  ;;  %v797_v50 = vmax.f32 %v2001_v56, %v2003_v63 }
 0x19c   : > { %2376 = vst [vmem:[#allocation17_spill] sm:$0xff] %v1973_v46  ;;  %v809_v30 = vmax.f32 %v1971_v45, %v1973_v46 }
 0x19e   : > { %810 = vmax.xlane.f32.xlu1 %v809_v30  ;;  %593 = vmax.xlane.f32.xlu0 %v592_v59 }
 0x1a2   : > { %587 = vmax.xlane.f32.xlu1 %v586_v33 }
 0x1a6   : > { %792 = vmax.xlane.f32.xlu1 %v791_v8 }
 0x1aa   : > { %795 = vmax.xlane.f32.xlu1 %v794_v13 }
 0x1ae   : > { %798 = vmax.xlane.f32.xlu1 %v797_v50 }
 0x20f   : > { %v2007_v54 = vpop.xlane.xlu0 %596 }
 0x210   : > { %2378 = vst [vmem:[#allocation19_spill] sm:$0xff] %v2007_v54  ;;  %v643_v55 = vsub.f32 %v1846_v5, %v2007_v54  ;;  %v644_v0 = vsub.f32 %v1848_v7, %v2007_v54 }
 0x212   : > { %v651_v2 = vmul.f32 1.442695, %v643_v55  ;;  %v653_v4 = vmul.f32 1.442695, %v644_v0 }
 0x213   : > { %v2013_v12 = vpop.xlane.xlu0 %599 }
 0x214   : > { %2379 = vst [vmem:[#allocation20_spill] sm:$0xff] %v2013_v12  ;;  %1339 = vpow2.f32 %v651_v2  ;;  %v645_v14 = vsub.f32 %v1869_v15, %v2013_v12  ;;  %v646_v16 = vsub.f32 %v1872_v17, %v2013_v12 }
 0x215   : > { %1341 = vpow2.f32 %v653_v4 }
 0x216   : > { %v655_v21 = vmul.f32 1.442695, %v645_v14  ;;  %v657_v26 = vmul.f32 1.442695, %v646_v16 }
 0x217   : > { %v2019_v31 = vpop.xlane.xlu0 %602 }
 0x218   : > { %2380 = vst [vmem:[#allocation21_spill] sm:$0xff] %v2019_v31  ;;  %1343 = vpow2.f32 %v655_v21  ;;  %v647_v32 = vsub.f32 %v1886_v25, %v2019_v31  ;;  %v648_v36 = vsub.f32 %v1888_v27, %v2019_v31 }
 0x219   : > { %1345 = vpow2.f32 %v657_v26 }
 0x21a   : > { %v659_v39 = vmul.f32 1.442695, %v647_v32  ;;  %v661_v18 = vmul.f32 1.442695, %v648_v36 }
 0x21b   : > { %v2025_v19 = vpop.xlane.xlu0 %605 }
 0x21c   : > { %2381 = vst [vmem:[#allocation22_spill] sm:$0xff] %v2025_v19  ;;  %1347 = vpow2.f32 %v659_v39  ;;  %v649_v20 = vsub.f32 %v1904_v35, %v2025_v19  ;;  %v650_v40 = vsub.f32 %v1907_v37, %v2025_v19 }
 0x21d   : > { %1349 = vpow2.f32 %v661_v18 }
 0x21e   : > { %v2031_v41 = vpop.eup %1339  ;;  %v663_v44 = vmul.f32 1.442695, %v649_v20  ;;  %v665_v59 = vmul.f32 1.442695, %v650_v40 }
 0x21f   : > { %v2033_v58 = vpop.eup %1341  ;;  %v2035_v30 = vpop.xlane.xlu1 %801 }
 0x220   : > { %2382 = vst [vmem:[#allocation23_spill] sm:$0xff] %v2035_v30  ;;  %v2037_v33 = vpop.xlane.xlu0 %584  ;;  %v848_v8 = vsub.f32 %v1920_v47, %v2035_v30  ;;  %v849_v13 = vsub.f32 %v1922_v49, %v2035_v30  ;;  %v667_v55 = vadd.f32 %v2033_v58, %v2031_v41  ;;  %1351 = vpow2.f32 %v663_v44 }
 0x221   : > { %2383 = vst [vmem:[#allocation24_spill] sm:$0xff] %v2037_v33  ;;  %v607_v50 = vsub.f32 %v1913_v42, %v2037_v33  ;;  %v608_v14 = vsub.f32 %v1915_v43, %v2037_v33  ;;  %1353 = vpow2.f32 %v665_v59 }
 0x222   : > { %v2047_v0 = vpop.eup %1343  ;;  %v856_v2 = vmul.f32 1.442695, %v848_v8  ;;  %v858_v4 = vmul.f32 1.442695, %v849_v13  ;;  %668 = vadd.xlane.f32.xlu0 %v667_v55 }
 0x223   : > { %v2051_v16 = vpop.eup %1345  ;;  %v615_v21 = vmul.f32 1.442695, %v607_v50  ;;  %v2053_v26 = vpop.xlane.xlu1 %804  ;;  %v617_v44 = vmul.f32 1.442695, %v608_v14 }
 0x224   : > { %2384 = vst [vmem:[#allocation25_spill] sm:$0xff] %v2053_v26  ;;  %v2055_v32 = vpop.xlane.xlu0 %789  ;;  %1355 = vpow2.f32 %v856_v2  ;;  %v850_v36 = vsub.f32 %v1937_v3, %v2053_v26  ;;  %v851_v39 = vsub.f32 %v1939_v6, %v2053_v26  ;;  %v670_v20 = vadd.f32 %v2051_v16, %v2047_v0 }
 0x225   : > { %2385 = vst [vmem:[#allocation26_spill] sm:$0xff] %v2055_v32  ;;  %v812_v18 = vsub.f32 %v1930_v61, %v2055_v32  ;;  %1357 = vpow2.f32 %v858_v4  ;;  %v813_v13 = vsub.f32 %v1932_v62, %v2055_v32 }
 0x226   : > { %v2065_v40 = vpop.eup %1347  ;;  %v860_v59 = vmul.f32 1.442695, %v850_v36  ;;  %v862_v8 = vmul.f32 1.442695, %v851_v39  ;;  %1359 = vpow2.f32 %v615_v21  ;;  %671 = vadd.xlane.f32.xlu1 %v670_v20 }
 0x227   : > { %v2069_v50 = vpop.eup %1349  ;;  %v820_v55 = vmul.f32 1.442695, %v812_v18  ;;  %v2071_v2 = vpop.xlane.xlu1 %807  ;;  %v822_v39 = vmul.f32 1.442695, %v813_v13 }
 0x228   : > { %2386 = vst [vmem:[#allocation27_spill] sm:$0xff] %v2071_v2  ;;  %v2073_v51 = vpop.xlane.xlu0 %590  ;;  %1361 = vpow2.f32 %v860_v59  ;;  %v852_v4 = vsub.f32 %v1954_v34, %v2071_v2  ;;  %v853_v14 = vsub.f32 %v1956_v38, %v2071_v2  ;;  %v673_v21 = vadd.f32 %v2069_v50, %v2065_v40 }
 0x229   : > { %2387 = vst [vmem:[#allocation28_spill] sm:$0xff] %v2073_v51  ;;  %1363 = vpow2.f32 %v862_v8  ;;  %v611_v36 = vsub.f32 %v1947_v22, %v2073_v51  ;;  %v612_v59 = vsub.f32 %v1949_v24, %v2073_v51 }
 0x22a   : > { %1365 = vpow2.f32 %v617_v44  ;;  %v864_v18 = vmul.f32 1.442695, %v852_v4  ;;  %v866_v20 = vmul.f32 1.442695, %v853_v14  ;;  %674 = vadd.xlane.f32.xlu0 %v673_v21  ;;  %v2089_v8 = vpop.eup %1351 }
 0x22b   : > { %1367 = vpow2.f32 %v820_v55  ;;  %v2085_v26 = vpop.xlane.xlu1 %810  ;;  %v2095_v13 = vpop.eup %1353  ;;  %v623_v55 = vmul.f32 1.442695, %v611_v36 }
 0x22c   : > { %2388 = vst [vmem:[#allocation29_spill] sm:$0xff] %v2085_v26  ;;  %v2087_v11 = vpop.xlane.xlu0 %593  ;;  %1369 = vpow2.f32 %v864_v18  ;;  %v854_v2 = vsub.f32 %v1971_v45, %v2085_v26  ;;  %v855_v44 = vsub.f32 %v1973_v46, %v2085_v26  ;;  %v625_v18 = vmul.f32 1.442695, %v612_v59 }
 0x22d   : > { %2389 = vst [vmem:[#allocation30_spill] sm:$0xff] %v2087_v11  ;;  %1371 = vpow2.f32 %v866_v20  ;;  %v613_v19 = vsub.f32 %v1964_v23, %v2087_v11  ;;  %v614_v32 = vsub.f32 %v1967_v57, %v2087_v11  ;;  %v676_v51 = vadd.f32 %v2095_v13, %v2089_v8 }
 0x22e   : > { %v2097_v4 = vpop.eup %1355  ;;  %1373 = vpow2.f32 %v822_v39  ;;  %v868_v14 = vmul.f32 1.442695, %v854_v2  ;;  %v870_v21 = vmul.f32 1.442695, %v855_v44 }
 0x22f   : > { %v2101_v30 = vpop.eup %1357  ;;  %v2105_v1 = vpop.xlane.xlu1 %587  ;;  %v627_v59 = vmul.f32 1.442695, %v613_v19 }
 0x230   : > { %2390 = vst [vmem:[#allocation31_spill] sm:$0xff] %v2105_v1  ;;  %1375 = vpow2.f32 %v868_v14  ;;  %v609_v36 = vsub.f32 %v1979_v28, %v2105_v1  ;;  %v610_v39 = vsub.f32 %v1983_v29, %v2105_v1  ;;  %v872_v2 = vadd.f32 %v2101_v30, %v2097_v4  ;;  %v1360_v20 = vpop.eup %1359 }
 0x231   : > { %1377 = vpow2.f32 %v870_v21  ;;  %v629_v14 = vmul.f32 1.442695, %v614_v32 }
 0x232   : > { %v2113_v44 = vpop.eup %1361  ;;  %1379 = vpow2.f32 %v623_v55  ;;  %v619_v26 = vmul.f32 1.442695, %v609_v36  ;;  %v621_v11 = vmul.f32 1.442695, %v610_v39  ;;  %873 = vadd.xlane.f32.xlu0 %v872_v2 }
 0x233   : > { %v2115_v31 = vpop.eup %1363  ;;  %1381 = vpow2.f32 %v625_v18  ;;  %v2117_v60 = vpop.xlane.xlu1 %792 }
 0x234   : > { %2391 = vst [vmem:[#allocation32_spill] sm:$0xff] %v2117_v60  ;;  %v1366_v53 = vpop.eup %1365  ;;  %1383 = vpow2.f32 %v619_v26  ;;  %v814_v21 = vsub.f32 %v1989_v48, %v2117_v60  ;;  %v815_v19 = vsub.f32 %v1991_v52, %v2117_v60  ;;  %v875_v55 = vadd.f32 %v2115_v31, %v2113_v44 }
 0x235   : > { %v1368_v36 = vpop.eup %1367  ;;  %1385 = vpow2.f32 %v621_v11  ;;  %v631_v12 = vadd.f32 %v1366_v53, %v1360_v20 }
 0x236   : > { %v2127_v18 = vpop.eup %1369  ;;  %1387 = vpow2.f32 %v627_v59  ;;  %v824_v32 = vmul.f32 1.442695, %v814_v21  ;;  %v826_v39 = vmul.f32 1.442695, %v815_v19  ;;  %677 = vadd.xlane.f32.xlu0 %v676_v51  ;;  %876 = vadd.xlane.f32.xlu1 %v875_v55 }
 0x237   : > { %v2129_v2 = vpop.eup %1371  ;;  %1389 = vpow2.f32 %v629_v14  ;;  %v2131_v26 = vpop.xlane.xlu1 %795 }
 0x238   : > { %2392 = vst [vmem:[#allocation33_spill] sm:$0xff] %v2131_v26  ;;  %v1374_v1 = vpop.eup %1373  ;;  %1391 = vpow2.f32 %v824_v32  ;;  %v816_v60 = vsub.f32 %v1995_v9, %v2131_v26  ;;  %v817_v11 = vsub.f32 %v1997_v10, %v2131_v26  ;;  %v878_v59 = vadd.f32 %v2129_v2, %v2127_v18 }
 0x239   : > { %1393 = vpow2.f32 %v826_v39  ;;  %v836_v20 = vadd.f32 %v1374_v1, %v1368_v36 }
 0x23a   : > { %v2139_v51 = vpop.eup %1375  ;;  %v828_v21 = vmul.f32 1.442695, %v816_v60  ;;  %v830_v19 = vmul.f32 1.442695, %v817_v11  ;;  %632 = vadd.xlane.f32.xlu0 %v631_v12  ;;  %879 = vadd.xlane.f32.xlu1 %v878_v59 }
 0x23b   : > { %2393 = vst [vmem:[#allocation34_spill] sm:$0xff] %v2139_v51  ;;  %v2141_v14 = vpop.eup %1377  ;;  %v2143_v53 = vpop.xlane.xlu1 %798 }
 0x23c   : > { %2394 = vst [vmem:[#allocation35_spill] sm:$0xff] %v2141_v14  ;;  %2395 = vst [vmem:[#allocation36_spill] sm:$0xff] %v2143_v53  ;;  %v1380_v55 = vpop.eup %1379  ;;  %1395 = vpow2.f32 %v828_v21  ;;  %v818_v32 = vsub.f32 %v2001_v56, %v2143_v53  ;;  %v819_v26 = vsub.f32 %v2003_v63, %v2143_v53  ;;  %v881_v39 = vadd.f32 %v2141_v14, %v2139_v51 }
 0x23d   : > { %v1382_v60 = vpop.eup %1381  ;;  %1397 = vpow2.f32 %v830_v19 }
 0x23e   : > { %v1384_v12 = vpop.eup %1383  ;;  %v832_v11 = vmul.f32 1.442695, %v818_v32  ;;  %v834_v59 = vmul.f32 1.442695, %v819_v26  ;;  %837 = vadd.xlane.f32.xlu0 %v836_v20  ;;  %882 = vadd.xlane.f32.xlu1 %v881_v39  ;;  %v637_v36 = vadd.f32 %v1382_v60, %v1380_v55 }
 0x23f   : > { %v1386_v54 = vpop.eup %1385 }
 0x240   : > { %v1388_v1 = vpop.eup %1387  ;;  %1399 = vpow2.f32 %v832_v11  ;;  %v634_v21 = vadd.f32 %v1386_v54, %v1384_v12 }
 0x241   : > { %v1390_v33 = vpop.eup %1389  ;;  %1401 = vpow2.f32 %v834_v59 }
 0x242   : > { %v1392_v46 = vpop.eup %1391  ;;  %638 = vadd.xlane.f32.xlu0 %v637_v36  ;;  %635 = vadd.xlane.f32.xlu1 %v634_v21  ;;  %v640_v63 = vadd.f32 %v1390_v33, %v1388_v1  ;;  %v717_v1 = vsub.f32 %v1869_v15, %v1979_v28  ;;  %v718_v36 = vsub.f32 %v1872_v17, %v1983_v29 }
 0x243   : > { %v1394_v53 = vpop.eup %1393  ;;  %v719_v15 = vsub.f32 %v1886_v25, %v1947_v22  ;;  %v720_v17 = vsub.f32 %v1888_v27, %v1949_v24  ;;  %v920_v22 = vsub.f32 %v1920_v47, %v1930_v61  ;;  %v921_v24 = vsub.f32 %v1922_v49, %v1932_v62 }
 0x244   : > { %v839_v14 = vadd.f32 %v1394_v53, %v1392_v46  ;;  %v922_v62 = vsub.f32 %v1937_v3, %v1989_v48 }
 0x246   : > { %v1396_v51 = vpop.eup %1395  ;;  %641 = vadd.xlane.f32.xlu0 %v640_v63  ;;  %840 = vadd.xlane.f32.xlu1 %v839_v14  ;;  %v715_v63 = vsub.f32 %v1846_v5, %v1913_v42 }
 0x247   : > { %v1398_v19 = vpop.eup %1397 }
 0x248   : > { %v842_v26 = vadd.f32 %v1398_v19, %v1396_v51  ;;  %v716_v51 = vsub.f32 %v1848_v7, %v1915_v43 }
 0x24a   : > { %v1400_v20 = vpop.eup %1399  ;;  %843 = vadd.xlane.f32.xlu1 %v842_v26 }
 0x24b   : > { %v1402_v32 = vpop.eup %1401 }
 0x24c   : > { %v845_v39 = vadd.f32 %v1402_v32, %v1400_v20 }
 0x24e   : > { %846 = vadd.xlane.f32.xlu1 %v845_v39 }
 0x2af   : > { %v2151_v55 = vpop.xlane.xlu0 %668 }
 0x2b0   : > { %1403 = vrcp.f32 %v2151_v55 }
 0x2b3   : > { %v2154_v54 = vpop.xlane.xlu1 %671 }
 0x2b4   : > { %1405 = vrcp.f32 %v2154_v54 }
 0x2b7   : > { %v2157_v33 = vpop.xlane.xlu0 %674 }
 0x2b8   : > { %1407 = vrcp.f32 %v2157_v33 }
 0x2ba   : > { %v1404_v46 = vpop.eup %1403 }
 0x2bb   : > { %v707_v14 = vmul.f32 %v1404_v46, %v2031_v41  ;;  %v708_v53 = vmul.f32 %v1404_v46, %v2033_v58 }
 0x2bd   : > { %v723_v12 = vmul.f32 %v715_v63, %v707_v14  ;;  %v724_v11 = vmul.f32 %v716_v51, %v708_v53  ;;  %v721_v51 = vsub.f32 %v1904_v35, %v1964_v23  ;;  %v722_v14 = vsub.f32 %v1907_v37, %v1967_v57 }
 0x2be   : > { %v1406_v59 = vpop.eup %1405  ;;  %v923_v35 = vsub.f32 %v1939_v6, %v1991_v52  ;;  %v924_v23 = vsub.f32 %v1954_v34, %v1995_v9  ;;  %v926_v6 = vsub.f32 %v1971_v45, %v2001_v56  ;;  %v2396_v52 = vld [vmem:[#allocation18_spill] sm:$0xff]  ;;  %v2397_v34 = vld [vmem:[#allocation17_spill] sm:$0xff] }
 0x2bf   : > { %v2166_v60 = vpop.xlane.xlu0 %873  ;;  %v731_v5 = vadd.f32 %v724_v11, %v723_v12  ;;  %v709_v7 = vmul.f32 %v1406_v59, %v2047_v0  ;;  %v710_v42 = vmul.f32 %v1406_v59, %v2051_v16  ;;  %v927_v9 = vsub.f32 %v2397_v34, %v2396_v52 }
 0x2c0   : > { %1409 = vrcp.f32 %v2166_v60 }
 0x2c1   : > { %732 = vadd.xlane.f32.xlu0 %v731_v5  ;;  %v725_v58 = vmul.f32 %v717_v1, %v709_v7  ;;  %v726_v21 = vmul.f32 %v718_v36, %v710_v42  ;;  %v2398_v7 = vld [vmem:[#allocation34_spill] sm:$0xff] }
 0x2c2   : > { %v1408_v19 = vpop.eup %1407 }
 0x2c3   : > { %v2175_v43 = vpop.xlane.xlu0 %677  ;;  %v2177_v41 = vpop.xlane.xlu1 %876  ;;  %v734_v28 = vadd.f32 %v726_v21, %v725_v58  ;;  %v711_v29 = vmul.f32 %v1408_v19, %v2065_v40  ;;  %v712_v0 = vmul.f32 %v1408_v19, %v2069_v50 }
 0x2c4   : > { %1411 = vrcp.f32 %v2175_v43 }
 0x2c5   : > { %1413 = vrcp.f32 %v2177_v41  ;;  %735 = vadd.xlane.f32.xlu1 %v734_v28  ;;  %v727_v26 = vmul.f32 %v719_v15, %v711_v29  ;;  %v728_v20 = vmul.f32 %v720_v17, %v712_v0 }
 0x2c7   : > { %v2187_v16 = vpop.xlane.xlu1 %879  ;;  %v737_v32 = vadd.f32 %v728_v20, %v727_v26  ;;  %v633_v21 = vpop.xlane.xlu0 %632 }
 0x2c8   : > { %1415 = vrcp.f32 %v2187_v16 }
 0x2c9   : > { %738 = vadd.xlane.f32.xlu0 %v737_v32 }
 0x2ca   : > { %v1410_v25 = vpop.eup %1409 }
 0x2cb   : > { %v2190_v27 = vpop.xlane.xlu1 %882  ;;  %v912_v40 = vmul.f32 %v1410_v25, %v2097_v4  ;;  %v913_v50 = vmul.f32 %v1410_v25, %v2101_v30  ;;  %v838_v19 = vpop.xlane.xlu0 %837 }
 0x2cc   : > { %1417 = vrcp.f32 %v2190_v27 }
 0x2cd   : > { %v928_v39 = vmul.f32 %v920_v22, %v912_v40  ;;  %v929_v46 = vmul.f32 %v921_v24, %v913_v50  ;;  %1419 = vlog2.f32 %v633_v21  ;;  %v2400_v24 = vld [vmem:[#allocation24_spill] sm:$0xff] }
 0x2ce   : > { %v1412_v63 = vpop.eup %1411  ;;  %1421 = vlog2.f32 %v2151_v55 }
 0x2cf   : > { %v936_v53 = vadd.f32 %v929_v46, %v928_v39  ;;  %v713_v47 = vmul.f32 %v1412_v63, %v2089_v8  ;;  %v714_v49 = vmul.f32 %v1412_v63, %v2095_v13  ;;  %v1414_v61 = vpop.eup %1413  ;;  %v925_v13 = vsub.f32 %v1956_v38, %v1997_v10  ;;  %v2399_v10 = vld [vmem:[#allocation35_spill] sm:$0xff]  ;;  %v636_v15 = vpop.xlane.xlu1 %635 }
 0x2d0   : > { %v914_v12 = vmul.f32 %v1414_v61, %v2113_v44  ;;  %v915_v11 = vmul.f32 %v1414_v61, %v2115_v31  ;;  %1423 = vlog2.f32 %v636_v15  ;;  %v639_v45 = vpop.xlane.xlu0 %638 }
 0x2d1   : > { %937 = vadd.xlane.f32.xlu0 %v936_v53  ;;  %v729_v30 = vmul.f32 %v721_v51, %v713_v47  ;;  %v730_v4 = vmul.f32 %v722_v14, %v714_v49  ;;  %1425 = vlog2.f32 %v2154_v54  ;;  %v2401_v54 = vld [vmem:[#allocation19_spill] sm:$0xff] }
 0x2d2   : > { %v1416_v37 = vpop.eup %1415  ;;  %v930_v8 = vmul.f32 %v922_v62, %v914_v12  ;;  %v931_v3 = vmul.f32 %v923_v35, %v915_v11  ;;  %1427 = vlog2.f32 %v639_v45  ;;  %v2402_v51 = vld [vmem:[#allocation31_spill] sm:$0xff]  ;;  %v2403_v62 = vld [vmem:[#allocation20_spill] sm:$0xff]  ;;  %v2410_v45 = vld [vmem:[#allocation30_spill] sm:$0xff] }
 0x2d3   : > { %v740_v57 = vadd.f32 %v730_v4, %v729_v30  ;;  %v916_v48 = vmul.f32 %v1416_v37, %v2127_v18  ;;  %v917_v59 = vmul.f32 %v1416_v37, %v2129_v2  ;;  %1429 = vlog2.f32 %v2157_v33  ;;  %v841_v17 = vpop.xlane.xlu1 %840  ;;  %v2404_v4 = vld [vmem:[#allocation13_spill] sm:$0xff]  ;;  %v2405_v11 = vld [vmem:[#allocation28_spill] sm:$0xff] }
 0x2d4   : > { %v939_v44 = vadd.f32 %v931_v3, %v930_v8  ;;  %v642_v32 = vpop.xlane.xlu0 %641  ;;  %1431 = vlog2.f32 %v838_v19  ;;  %vm512_vm0 = vcmp.lt.s32.totalorder %v2404_v4, 16  ;;  %v2419_v4 = vld [vmem:[#allocation29_spill] sm:$0xff] }
 0x2d5   : > { %741 = vadd.xlane.f32.xlu0 %v740_v57  ;;  %v932_v31 = vmul.f32 %v924_v23, %v916_v48  ;;  %v933_v1 = vmul.f32 %v925_v13, %v917_v59  ;;  %1433 = vlog2.f32 %v642_v32  ;;  %v2407_v57 = vld [vmem:[#allocation21_spill] sm:$0xff] }
 0x2d6   : > { %v1418_v36 = vpop.eup %1417  ;;  %940 = vadd.xlane.f32.xlu1 %v939_v44  ;;  %1435 = vlog2.f32 %v2166_v60 }
 0x2d7   : > { %v942_v5 = vadd.f32 %v933_v1, %v932_v31  ;;  %v918_v38 = vmul.f32 %v1418_v36, %v2398_v7  ;;  %v919_v42 = vmul.f32 %v1418_v36, %v2399_v10  ;;  %v1420_v56 = vpop.eup %1419  ;;  %v844_v25 = vpop.xlane.xlu1 %843  ;;  %1437 = vlog2.f32 %v2175_v43  ;;  %v2406_v43 = vld [vmem:[#allocation14_spill] sm:$0xff]  ;;  %v2408_v1 = vld [vmem:[#allocation15_spill] sm:$0xff] }
 0x2d8   : > { %v1422_v28 = vpop.eup %1421  ;;  %v680_v29 = vmul.f32 0.6931472, %v1420_v56  ;;  %1439 = vlog2.f32 %v841_v17  ;;  %vm513_vm2 = vcmp.lt.s32.totalorder %v2406_v43, 16  ;;  %vm514_vm3 = vcmp.lt.s32.totalorder %v2408_v1, 16 }
 0x2d9   : > { %v934_v18 = vmul.f32 %v926_v6, %v918_v38  ;;  %v935_v58 = vmul.f32 %v927_v9, %v919_v42  ;;  %v692_v26 = vmul.f32 0.6931472, %v1422_v28  ;;  %1441 = vlog2.f32 %v2177_v41 }
 0x2da   : > { %943 = vadd.xlane.f32.xlu1 %v942_v5  ;;  %v1424_v0 = vpop.eup %1423  ;;  %v687_v40 = vadd.f32 %v680_v29, %v2400_v24  ;;  %1443 = vlog2.f32 %v844_v25  ;;  %v2411_v29 = vld [vmem:[#allocation23_spill] sm:$0xff] }
 0x2db   : > { %v945_v2 = vadd.f32 %v935_v58, %v934_v18  ;;  %v1426_v20 = vpop.eup %1425  ;;  %v682_v22 = vmul.f32 0.6931472, %v1424_v0  ;;  %v699_v39 = vadd.f32 %v692_v26, %v2401_v54  ;;  %v847_v53 = vpop.xlane.xlu1 %846  ;;  %1445 = vlog2.f32 %v2187_v16  ;;  %v2412_v26 = vld [vmem:[#allocation22_spill] sm:$0xff] }
 0x2dc   : > { %v1428_v55 = vpop.eup %1427  ;;  %v694_v50 = vmul.f32 0.6931472, %v1426_v20  ;;  %1447 = vlog2.f32 %v847_v53 }
 0x2dd   : > { %v1430_v46 = vpop.eup %1429  ;;  %v684_v33 = vmul.f32 0.6931472, %v1428_v55  ;;  %v743_v63 = vsub.f32 %v687_v40, %v699_v39  ;;  %v688_v14 = vadd.f32 %v682_v22, %v2402_v51  ;;  %1449 = vlog2.f32 %v2190_v27  ;;  %v2413_v22 = vld [vmem:[#allocation32_spill] sm:$0xff] }
 0x2de   : > { %946 = vadd.xlane.f32.xlu1 %v945_v2  ;;  %v696_v49 = vmul.f32 0.6931472, %v1430_v46  ;;  %v700_v30 = vadd.f32 %v694_v50, %v2403_v62  ;;  %v1432_v13 = vpop.eup %1431  ;;  %v2409_v2 = vld [vmem:[#allocation26_spill] sm:$0xff]  ;;  %v2414_v39 = vld [vmem:[#allocation16_spill] sm:$0xff] }
 0x2df   : > { %v689_v60 = vadd.f32 %v684_v33, %v2405_v11  ;;  %v1434_v41 = vpop.eup %1433  ;;  %v885_v6 = vmul.f32 0.6931472, %v1432_v13  ;;  %vm515_vm4 = vcmp.lt.s32.totalorder %v2414_v39, 16  ;;  %v2415_v33 = vld [vmem:[#allocation25_spill] sm:$0xff] }
 0x2e0   : > { %v744_v12 = vsub.f32 %v688_v14, %v700_v30  ;;  %v701_v8 = vadd.f32 %v696_v49, %v2407_v57  ;;  %v1436_v59 = vpop.eup %1435  ;;  %v686_v5 = vmul.f32 0.6931472, %v1434_v41  ;;  %v2416_v49 = vld [vmem:[#allocation33_spill] sm:$0xff]  ;;  %v2418_v41 = vld [vmem:[#allocation36_spill] sm:$0xff] }
 0x2e1   : > { %v1438_v36 = vpop.eup %1437  ;;  %v897_v7 = vmul.f32 0.6931472, %v1436_v59  ;;  %v892_v21 = vadd.f32 %v885_v6, %v2409_v2 }
 0x2e2   : > { %v745_v48 = vsub.f32 %v689_v60, %v701_v8  ;;  %v1440_v9 = vpop.eup %1439  ;;  %v698_v42 = vmul.f32 0.6931472, %v1438_v36  ;;  %v690_v56 = vadd.f32 %v686_v5, %v2410_v45 }
 0x2e3   : > { %v1442_v10 = vpop.eup %1441  ;;  %v887_v58 = vmul.f32 0.6931472, %v1440_v9  ;;  %v904_v27 = vadd.f32 %v897_v7, %v2411_v29 }
 0x2e4   : > { %v1444_v15 = vpop.eup %1443  ;;  %v899_v28 = vmul.f32 0.6931472, %v1442_v10  ;;  %v702_v20 = vadd.f32 %v698_v42, %v2412_v26 }
 0x2e5   : > { %v1446_v17 = vpop.eup %1445  ;;  %v889_v32 = vmul.f32 0.6931472, %v1444_v15  ;;  %v948_v25 = vsub.f32 %v892_v21, %v904_v27  ;;  %v893_v24 = vadd.f32 %v887_v58, %v2413_v22 }
 0x2e6   : > { %v1448_v40 = vpop.eup %1447  ;;  %v901_v55 = vmul.f32 0.6931472, %v1446_v17  ;;  %v746_v50 = vsub.f32 %v690_v56, %v702_v20 }
 0x2e7   : > { %v1450_v51 = vpop.eup %1449  ;;  %v891_v53 = vmul.f32 0.6931472, %v1448_v40 }
 0x2e8   : > { %v903_v60 = vmul.f32 0.6931472, %v1450_v51 }
 0x2ea   : > { %v907_v36 = vadd.f32 %v903_v60, %v2419_v4 }
 0x34e   : > { %v733_v47 = vpop.xlane.xlu0 %732 }
 0x34f   : > { %v747_v61 = vadd.f32 %v743_v63, %v733_v47  ;;  %v905_v63 = vadd.f32 %v899_v28, %v2415_v33 }
 0x351   : > { %v751_v37 = vsel %vm512_vm0, %v747_v61, 0.0  ;;  %v949_v47 = vsub.f32 %v893_v24, %v905_v63  ;;  %v894_v61 = vadd.f32 %v889_v32, %v2416_v49 }
 0x352   : > { %v736_v35 = vpop.xlane.xlu1 %735  ;;  %v756_v44 = vsel %vm755_vm1, %v751_v37, 0.0 }
 0x353   : > { %v748_v23 = vadd.f32 %v744_v12, %v736_v35  ;;  %v2417_v12 = vld [vmem:[#allocation27_spill] sm:$0xff] }
 0x354   : > { %v906_v11 = vadd.f32 %v901_v55, %v2417_v12 }
 0x355   : > { %v752_v3 = vsel %vm513_vm2, %v748_v23, 0.0 }
 0x356   : > { %v757_v31 = vsel %vm755_vm1, %v752_v3, 0.0  ;;  %v739_v16 = vpop.xlane.xlu0 %738  ;;  %v950_v13 = vsub.f32 %v894_v61, %v906_v11  ;;  %v895_v3 = vadd.f32 %v891_v53, %v2418_v41 }
 0x357   : > { %v758_v52 = vadd.f32 %v757_v31, %v756_v44  ;;  %v749_v34 = vadd.f32 %v745_v48, %v739_v16 }
 0x359   : > { %v753_v38 = vsel %vm514_vm3, %v749_v34, 0.0 }
 0x35a   : > { %v759_v18 = vsel %vm755_vm1, %v753_v38, 0.0 }
 0x35b   : > { %v760_v19 = vadd.f32 %v759_v18, %v758_v52  ;;  %v951_v52 = vsub.f32 %v895_v3, %v907_v36 }
 0x35e   : > { %v938_v0 = vpop.xlane.xlu0 %937 }
 0x35f   : > { %v952_v54 = vadd.f32 %v948_v25, %v938_v0  ;;  %v2420_v0 = vld [vmem:[#allocation12_spill] sm:$0xff] }
 0x360   : > { %vm977_vm5 = vcmp.eq.s32.totalorder %v2420_v0, 1  ;;  %vm976_vm6 = vcmp.eq.s32.totalorder %v2420_v0, 0 }
 0x361   : > { %v956_v35 = vsel %vm512_vm0, %v952_v54, 0.0 }
 0x362   : > { %v742_v46 = vpop.xlane.xlu0 %741  ;;  %v960_v48 = vsel %vm755_vm1, %v956_v35, 0.0 }
 0x363   : > { %v750_v14 = vadd.f32 %v746_v50, %v742_v46  ;;  %v941_v30 = vpop.xlane.xlu1 %940 }
 0x364   : > { %v953_v37 = vadd.f32 %v949_v47, %v941_v30 }
 0x365   : > { %v754_v62 = vsel %vm515_vm4, %v750_v14, 0.0 }
 0x366   : > { %v761_v23 = vsel %vm755_vm1, %v754_v62, 0.0  ;;  %v957_v8 = vsel %vm513_vm2, %v953_v37, 0.0 }
 0x367   : > { %v762_v57 = vadd.f32 %v761_v23, %v760_v19  ;;  %v961_v59 = vsel %vm755_vm1, %v957_v8, 0.0  ;;  %v944_v44 = vpop.xlane.xlu1 %943 }
 0x368   : > { %v962_v31 = vadd.f32 %v961_v59, %v960_v48  ;;  %v954_v16 = vadd.f32 %v950_v13, %v944_v44 }
 0x369   : > { %763 = vadd.xlane.f32.xlu0 %v762_v57 }
 0x36a   : > { %v958_v6 = vsel %vm514_vm3, %v954_v16, 0.0 }
 0x36b   : > { %v963_v43 = vsel %vm755_vm1, %v958_v6, 0.0  ;;  %v947_v34 = vpop.xlane.xlu1 %946 }
 0x36c   : > { %v955_v9 = vadd.f32 %v951_v52, %v947_v34  ;;  %v964_v5 = vadd.f32 %v963_v43, %v962_v31 }
 0x36e   : > { %v959_v7 = vsel %vm515_vm4, %v955_v9, 0.0 }
 0x36f   : > { %v965_v38 = vsel %vm755_vm1, %v959_v7, 0.0 }
 0x370   : > { %v966_v10 = vadd.f32 %v965_v38, %v964_v5 }
 0x372   : > { %967 = vadd.xlane.f32.xlu1 %v966_v10 }
 0x3f6   : > { %v764_v42 = vpop.xlane.xlu0 %763 }
 0x3f7   : > { %v765_v18 = vrot.slane %v764_v42, 4 }
 0x3f9   : > { %v766_v58 = vadd.f32 %v765_v18, %v764_v42 }
 0x3fb   : > { %v767_v1 = vrot.slane %v766_v58, 2 }
 0x3fd   : > { %v768_v2 = vadd.f32 %v767_v1, %v766_v58 }
 0x3ff   : > { %v769_v21 = vrot.slane %v768_v2, 1  ;;  %v968_v19 = vpop.xlane.xlu1 %967 }
 0x400   : > { %v969_v45 = vrot.slane %v968_v19, 4 }
 0x401   : > { %v770_v15 = vadd.f32 %v769_v21, %v768_v2 }
 0x402   : > { %v970_v56 = vadd.f32 %v969_v45, %v968_v19 }
 0x403   : > { %1263 = vpush %v770_v15 }
 0x404   : > { %v971_v17 = vrot.slane %v970_v56, 2 }
 0x406   : > { %v972_v28 = vadd.f32 %v971_v17, %v970_v56 }
 0x408   : > { %v973_v29 = vrot.slane %v972_v28, 1 }
 0x40a   : > { %v974_v27 = vadd.f32 %v973_v29, %v972_v28 }
 0x40c   : > { %1265 = vpush %v974_v27 }
 0x434   : > { %s1264_s25 = spop %1263 }
 0x435   : > { %v980_v20 = vstv %s1264_s25 }
 0x43d   : > { %s1266_s30 = spop %1265 }
 0x43e   : > { %v978_v26 = vstv %s1266_s30 }
 0x43f   : > { %v979_v32 = vsel %vm977_vm5, %v978_v26, 0.0 }
 0x440   : > { %v981_v25 = vsel %vm976_vm6, %v980_v20, %v979_v32 }
 0x441   : > { %982 = vst [vmem:[%s189_s19] sm:$0x1] %v981_v25 }
 0x442   : > { %1548 = shalt.err (!%p1545_p6)
}
 0x443   : > { %s1549_s29 = scalar_lea.hbm %s2282_s7, 16  ;;  %s1553_s27 = scalar_lea.hbm %s2327_s3, 64 }
 0x444   : > { %p1550_p9 = scmp.ne.s32.totalorder %s2282_s7, %s1549_s29  ;;  %p1554_p3 = scmp.lt.u32.totalorder %s2282_s7, %s2327_s3 }
 0x445   : > { %p1555_p5 = scmp.lt.u32.totalorder %s1553_s27, %s1549_s29  ;;  %p1557_p12 = scmp.lt.u32.totalorder %s1549_s29, %s2282_s7 }
 0x446   : > { %p1551_p2 = pnand %p1550_p9, %p2421_p4 }
 0x447   : > { %p1556_p10 = por %p1555_p5, %p1554_p3 }
 0x448   : > { %p1552_p0 = pneg %p1551_p2 }
 0x449   : > { %p1558_p7 = por %p1557_p12, %p1556_p10 }
 0x44b   : > { %p1559_p8 = pnand %p1558_p7, %p1552_p0 }
 0x44d   : > { %1562 = shalt.err (!%p1559_p8)
}
 0x44e   : > { %1279 = dma.vmem_to_hbm [thread:$0]  (%p2421_p4), %s2284_s28, 16, %s2282_s7, %s984_s16  }
 0x44f PF: > { %p1301_p11 = scmp.ge.s32.totalorder %s1605_s15, 2  ;;  %s1008_s20 = sand.u32 1, %s1593_s12  }
 0x450   : > { %p2422_p13 = scmp.ne.s32.totalorder %s2362_s23, 0  ;;  %s1009_s25 = scalar_lea.sflag [#allocation4], %s1008_s20 }
 0x452   : > { %p1292_p1 = pnand %p1301_p11, %p2422_p13 }
 0x454   : > { %1588 = dma.done.wait (!%p1292_p1), %s1009_s25, 16  }
 0x455   : > { %1590 = vsyncadd (!%p1292_p1), %s1009_s25, 4294967280  ;;  %p15_p6 = scmp.ge.s32.totalorder %s1658_s18, 6   ;;  %s2423_s12 = smov %s1597_s13 }
 0x456   : > { %s2424_s13 = smov %s1601_s14  ;;  %s2425_s14 = smov %s1669_s21 }
 0x457   : > { %s2426_s15 = smov %s1658_s18  ;;  %17 = sbr.rel (!%p15_p6) target bundleno = 5 (0x5), region = 81 }
 0x45e   :  { %1013 = vsyncpa [#allocation3], 1 }
 0x45f   :  { %1015 = vsyncpa [#allocation3 + $0x1], 1 }
 0x460   :  { %1016 = vsyncpa [#allocation6], 1 }
 0x461   :  { %1017 = vsyncpa [#allocation4], 1 }
 0x462   :  { %1019 = vsyncpa [#allocation4 + $0x1], 1 }

</bundles_post_ra>
